<compile_context>
chip_gen: v7x
topology: tpu7x:2x2x1
jax: 0.10.0
libtpu: 0.0.40
codegen_flags: <defaults>
</compile_context>

<pallas_src>
import jax
import jax.numpy as jnp
import numpy as np
from jax.experimental import pallas as pl
from jax.experimental.pallas import tpu as pltpu

NUM_ACTIONS = 4

K_PATCH = 144            # 12*12 conv kernel elements
P_OUT = 64               # 8*8 conv output pixels
KP = K_PATCH * P_OUT     # 9216 = 72*128, fused (lane-aligned) contraction dim
A_PAD = 128              # lane-dense padded action dim


def dqn_conv_kernel(pat_ref, w_ref, b_ref, out_ref):
    # pat_ref : (Btile, 9216) uint8  raw pixel im2col patches of the 80x80 crop
    # w_ref   : (9216, 128)   f32    fused conv1 (x) fc1 weight (zero-padded past A)
    # b_ref   : (1, 128)      f32    fused bias (zero-padded past A)
    # out_ref : (Btile, 128)  f32
    x = pat_ref[...].astype(jnp.float32)
    # prepro threshold: 144 -> 0, 109 -> 0, any other nonzero -> 1  (single select)
    ones = ((x != 0.0) & (x != 144.0) & (x != 109.0)).astype(jnp.float32)
    out_ref[...] = (
        jnp.dot(ones, w_ref[...], preferred_element_type=jnp.float32) + b_ref[...]
    )


def _round_up(n, m):
    return -(-n // m) * m


def dqn_conv_forward(x, conv_w, conv_b, fc_w, fc_b, *, btile_max=128):
    """x: (B, 210, 160) raw grayscale frames with integer pixel values (0..255)."""
    B = x.shape[0]
    A = fc_w.shape[0]

    # --- prepro crop / 2x downsample (pure indexing glue), kept as 1 byte/elem ---
    # Pixel values are integers, so the uint8 round-trip and the exact 144/109
    # comparisons inside the kernel match the PyTorch prepro semantics.
    x_ds = x[:, 35:195:2, ::2].astype(jnp.uint8)                       # (B, 80, 80)

    # --- im2col gather (data-movement glue; all math runs inside the kernel) ---
    idx = (jnp.arange(8) * 9)[:, None] + jnp.arange(12)[None, :]       # (8, 12)
    g = x_ds[:, idx, :][:, :, :, idx]                                  # (b, i, p, j, q)
    patches = jnp.transpose(g, (0, 2, 4, 1, 3)).reshape(B, KP)         # (B, 9216) uint8

    # --- fuse conv1 + fc1 into one (9216, A_pad) weight and (1, A_pad) bias ---
    wc = conv_w.reshape(K_PATCH).astype(jnp.float32)                   # (144,)
    fcw_t = fc_w.astype(jnp.float32).T                                 # (64, A)
    w_comp = (wc[:, None, None] * fcw_t[None, :, :]).reshape(KP, A)    # (9216, A)
    b_comp = conv_b.astype(jnp.float32)[0] * fcw_t.sum(axis=0) + fc_b.astype(jnp.float32)

    w_pad = jnp.zeros((KP, A_PAD), jnp.float32).at[:, :A].set(w_comp)
    b_pad = jnp.zeros((1, A_PAD), jnp.float32).at[0, :A].set(b_comp)

    # --- batch tiling: Btile examples per grid step ---
    if B >= btile_max:
        btile = btile_max                       # 128: multiple of 32 (u8 sublanes) & MXU M
    else:
        btile = max(8, _round_up(B, 8))         # single full-dim block for tiny batches
    b_padded = _round_up(B, btile)
    if b_padded != B:
        patches = jnp.pad(patches, ((0, b_padded - B), (0, 0)))

    out = pl.pallas_call(
        dqn_conv_kernel,
        out_shape=jax.ShapeDtypeStruct((b_padded, A_PAD), jnp.float32),
        grid_spec=pltpu.PrefetchScalarGridSpec(
            num_scalar_prefetch=0,
            grid=(b_padded // btile,),
            in_specs=[
                pl.BlockSpec((btile, KP), lambda i: (i, 0)),
                pl.BlockSpec((KP, A_PAD), lambda i: (0, 0)),
                pl.BlockSpec((1, A_PAD), lambda i: (0, 0)),
            ],
            out_specs=pl.BlockSpec((btile, A_PAD), lambda i: (i, 0)),
        ),
        compiler_params=pltpu.CompilerParams(
            dimension_semantics=("parallel",)),
    )(patches, w_pad, b_pad)

    return out[:B, :A]


def reference_forward(x, conv_w, conv_b, fc_w, fc_b):
    """Pure-JAX reference mirroring the PyTorch module."""
    I = x[:, 35:195, :][:, ::2, ::2]
    I = jnp.where((I == 144.0) | (I == 109.0), 0.0, I)
    I = jnp.where(I != 0.0, 1.0, 0.0)
    I = I[:, None, :, :]                                    # NCHW
    c = jax.lax.conv_general_dilated(
        I, conv_w, window_strides=(9, 9), padding="VALID",
        dimension_numbers=("NCHW", "OIHW", "NCHW"))
    c = c + conv_b.reshape(1, 1, 1, 1)
    flat = c.reshape(c.shape[0], -1)                        # (B, 64)
    return flat @ fc_w.T + fc_b


if __name__ == "__main__":
    key = jax.random.PRNGKey(0)
    k1, k2, k3, k4, kx = jax.random.split(key, 5)

    # Deterministic parameter init (PyTorch-like uniform(-1/sqrt(fan_in), 1/sqrt(fan_in)))
    conv_w = jax.random.uniform(k1, (1, 1, 12, 12), jnp.float32, -1.0 / 12.0, 1.0 / 12.0)
    conv_b = jax.random.uniform(k2, (1,), jnp.float32, -1.0 / 12.0, 1.0 / 12.0)
    fc_w = jax.random.uniform(k3, (NUM_ACTIONS, 64), jnp.float32, -1.0 / 8.0, 1.0 / 8.0)
    fc_b = jax.random.uniform(k4, (NUM_ACTIONS,), jnp.float32, -1.0 / 8.0, 1.0 / 8.0)

    # Example input: batch of 2 raw 210x160 grayscale frames (integer pixel values).
    x = jax.random.randint(kx, (2, 210, 160), 0, 256).astype(jnp.float32)

    out = dqn_conv_forward(x, conv_w, conv_b, fc_w, fc_b)
    out = jax.block_until_ready(out)

    ref = reference_forward(x, conv_w, conv_b, fc_w, fc_b)
    assert out.shape == (2, NUM_ACTIONS)
    np.testing.assert_allclose(np.asarray(out), np.asarray(ref), rtol=1e-3, atol=1e-3)

    print("KERNEL_OK")
</pallas_src>

<mosaic_0001>
module attributes {stable_mosaic.version = 11 : i64} {
  func.func @dqn_conv_kernel(%arg0: i32, %arg1: memref<8x9216xi8, #tpu.memory_space<vmem>>, %arg2: memref<9216x128xf32, #tpu.memory_space<vmem>>, %arg3: memref<1x128xf32, #tpu.memory_space<vmem>>, %arg4: memref<8x128xf32, #tpu.memory_space<vmem>>) attributes {dimension_semantics = [#tpu.dimension_semantics<parallel>], iteration_bounds = array<i64: 1>, scalar_prefetch = 0 : i64, scratch_operands = 0 : i64, tpu.core_type = #tpu.core_type<tc>, window_params = [{transform_indices = @transform_0, window_bounds = array<i64: 8, 9216>}, {pipeline_mode = #tpu.pipeline_mode<synchronous>, transform_indices = @transform_1, window_bounds = array<i64: 9216, 128>}, {pipeline_mode = #tpu.pipeline_mode<synchronous>, transform_indices = @transform_2, window_bounds = array<i64: 1, 128>}, {transform_indices = @transform_3, window_bounds = array<i64: 8, 128>}]} {
    %c0 = arith.constant 0 : index
    %c0_0 = arith.constant 0 : index
    %0 = vector.load %arg1[%c0, %c0_0] : memref<8x9216xi8, #tpu.memory_space<vmem>>, vector<8x9216xi8>
    %1 = arith.uitofp %0 : vector<8x9216xi8> to vector<8x9216xf32>
    %cst = arith.constant 0.000000e+00 : f32
    %2 = vector.broadcast %cst : f32 to vector<8x9216xf32>
    %3 = arith.cmpf one, %1, %2 : vector<8x9216xf32>
    %cst_1 = arith.constant 1.440000e+02 : f32
    %4 = vector.broadcast %cst_1 : f32 to vector<8x9216xf32>
    %5 = arith.cmpf one, %1, %4 : vector<8x9216xf32>
    %6 = arith.andi %3, %5 : vector<8x9216xi1>
    %cst_2 = arith.constant 1.090000e+02 : f32
    %7 = vector.broadcast %cst_2 : f32 to vector<8x9216xf32>
    %8 = arith.cmpf one, %1, %7 : vector<8x9216xf32>
    %9 = arith.andi %6, %8 : vector<8x9216xi1>
    %10 = arith.extui %9 : vector<8x9216xi1> to vector<8x9216xi32>
    %11 = arith.sitofp %10 : vector<8x9216xi32> to vector<8x9216xf32>
    %c0_3 = arith.constant 0 : index
    %c0_4 = arith.constant 0 : index
    %12 = vector.load %arg2[%c0_3, %c0_4] : memref<9216x128xf32, #tpu.memory_space<vmem>>, vector<9216x128xf32>
    %cst_5 = arith.constant dense<0.000000e+00> : vector<8x128xf32>
    %13 = tpu.matmul %11, %12, %cst_5 {dimension_numbers = #tpu.dot_dimension_numbers<[1], [0], [0], [1], [0, 0, 1, 1], [], []>} : vector<8x9216xf32>, vector<9216x128xf32>, vector<8x128xf32> -> vector<8x128xf32>
    %c0_6 = arith.constant 0 : index
    %c0_7 = arith.constant 0 : index
    %14 = vector.load %arg3[%c0_6, %c0_7] : memref<1x128xf32, #tpu.memory_space<vmem>>, vector<1x128xf32>
    %15 = vector.broadcast %14 : vector<1x128xf32> to vector<8x128xf32>
    %16 = arith.addf %13, %15 : vector<8x128xf32>
    %c0_8 = arith.constant 0 : index
    %c0_9 = arith.constant 0 : index
    %17 = vector.load %arg4[%c0_8, %c0_9] : memref<8x128xf32, #tpu.memory_space<vmem>>, vector<8x128xf32>
    tpu.vector_store %arg4[%c0_8, %c0_9], %16 {strides = array<i32>} : memref<8x128xf32, #tpu.memory_space<vmem>>, vector<8x128xf32>,
    return
  }
  func.func @transform_0(%arg0: i32) -> (i32, i32) {
    %c0_i32 = arith.constant 0 : i32
    %c0_i32_0 = arith.constant 0 : i32
    return %arg0, %c0_i32 : i32, i32
  }
  func.func @transform_1(%arg0: i32) -> (i32, i32) {
    %c0_i32 = arith.constant 0 : i32
    %c0_i32_0 = arith.constant 0 : i32
    %c0_i32_1 = arith.constant 0 : i32
    return %c0_i32, %c0_i32_0 : i32, i32
  }
  func.func @transform_2(%arg0: i32) -> (i32, i32) {
    %c0_i32 = arith.constant 0 : i32
    %c0_i32_0 = arith.constant 0 : i32
    %c0_i32_1 = arith.constant 0 : i32
    return %c0_i32, %c0_i32_0 : i32, i32
  }
  func.func @transform_3(%arg0: i32) -> (i32, i32) {
    %c0_i32 = arith.constant 0 : i32
    %c0_i32_0 = arith.constant 0 : i32
    return %arg0, %c0_i32 : i32, i32
  }
}

</mosaic_0001>

<bundles_post_ra>
// kernel: tpu_custom_call.1
= control target key start
LH: loop header
LB: loop body
LE: loop exit
PB: predicated region body
PF: predicated region fallthrough
CT: control target
= control target key end

     0   :  { %8 = vsyncpa [#allocation3], 0  ;;  %s8216_s0 = inlined_call_operand.hbm [shape: u8[8,9216], index: 0, kind: input, shape index: {}]   ;;  %s8217_s1 = inlined_call_operand.hbm [shape: f32[9216,128], index: 1, kind: input, shape index: {}]   ;;  %s8218_s2 = inlined_call_operand.hbm [shape: f32[1,128], index: 2, kind: input, shape index: {}]   ;;  %s8219_s3 = inlined_call_operand.hbm [shape: f32[8,128], index: 3, kind: output, shape index: {}]  }
   0x1   :  { %9 = vsyncpa [#allocation6], 0 }
   0x2   :  { %10 = vsyncpa [#allocation4], 0  ;;  %s7144_s12 = smov [#allocation5]   ;;  %s7050_s16 = scalar_lea.hbm %s8217_s1, 147456 }
   0x3   :  { %s26_s13 = sshll.u32 %s7144_s12, 4  ;;  %p7051_p0 = scmp.ne.s32.totalorder %s8217_s1, %s7050_s16  ;;  %s27_s13 = int_to_ptr.vmem [resolvable:$true] %s26_s13 }
   0x4   :  { %p7054_p1 = scmp.lt.u32.totalorder %s7050_s16, %s8217_s1 }
   0x6   :  { %p7056_p2 = pnand %p7054_p1, %p7051_p0 }
   0x8   :  { %7059 = shalt.err (!%p7056_p2)
}
   0x9   :  { %s7060_s21 = scalar_lea.vmem %s27_s13, 147456  ;;  %p7065_p4 = scmp.lt.s32.totalorder %s27_s13, %s27_s13 }
   0xa   :  { %p7061_p3 = scmp.ne.s32.totalorder %s27_s13, %s7060_s21  ;;  %p7066_p5 = scmp.lt.s32.totalorder %s7060_s21, %s7060_s21 }
   0xc   :  { %p7067_p6 = por %p7066_p5, %p7065_p4 }
   0xe   :  { %p7068_p7 = pnand %p7067_p6, %p7061_p3 }
  0x10   :  { %7071 = shalt.err (!%p7068_p7)
}
  0x11   :  { %s7145_s22 = smov 128   ;;  %s7146_s23 = smov 8  }
  0x12   :  { %32 = dma.hbm_to_vmem [thread:$0]  %s8217_s1, 147456, %s27_s13, [#allocation6], %s7145_s22, %s7145_s22, %s7146_s23  }
  0x13   :  { %s7147_s26 = smov [#allocation2]   ;;  %s7148_s28 = smov [#allocation7]  }
  0x14   :  { %s17_s27 = sshll.u32 %s7147_s26, 4  ;;  %s39_s29 = sshll.u32 %s7148_s28, 4  ;;  %s18_s27 = int_to_ptr.vmem [resolvable:$true] %s17_s27  ;;  %s40_s29 = int_to_ptr.vmem [resolvable:$true] %s39_s29 }
  0x15   :  { %s7072_s5 = scalar_lea.hbm %s8216_s0, 2304 }
  0x16   :  { %p7073_p8 = scmp.ne.s32.totalorder %s8216_s0, %s7072_s5  ;;  %p7076_p9 = scmp.lt.u32.totalorder %s7072_s5, %s8216_s0 }
  0x18   :  { %p7078_p10 = pnand %p7076_p9, %p7073_p8 }
  0x1a   :  { %7081 = shalt.err (!%p7078_p10)
}
  0x1b   :  { %s7082_s1 = scalar_lea.vmem %s18_s27, 2304  ;;  %p7087_p12 = scmp.lt.s32.totalorder %s18_s27, %s18_s27 }
  0x1c   :  { %p7083_p11 = scmp.ne.s32.totalorder %s18_s27, %s7082_s1  ;;  %p7088_p13 = scmp.lt.s32.totalorder %s7082_s1, %s7082_s1 }
  0x1e   :  { %p7089_p0 = por %p7088_p13, %p7087_p12 }
  0x20   :  { %p7090_p1 = pnand %p7089_p0, %p7083_p11 }
  0x22   :  { %7093 = shalt.err (!%p7090_p1)
}
  0x23   :  { %20 = dma.hbm_to_vmem [thread:$0]  %s8216_s0, 2304, %s18_s27, [#allocation3]  }
  0x24   :  { %s7094_s14 = scalar_lea.hbm %s8218_s2, 16 }
  0x25   :  { %p7095_p2 = scmp.ne.s32.totalorder %s8218_s2, %s7094_s14  ;;  %p7098_p3 = scmp.lt.u32.totalorder %s7094_s14, %s8218_s2 }
  0x27   :  { %p7100_p4 = pnand %p7098_p3, %p7095_p2 }
  0x29   :  { %7103 = shalt.err (!%p7100_p4)
}
  0x2a   :  { %s7104_s19 = scalar_lea.vmem %s40_s29, 16  ;;  %s7108_s20 = scalar_lea.vmem %s40_s29, 32 }
  0x2b   :  { %p7105_p5 = scmp.ne.s32.totalorder %s40_s29, %s7104_s19  ;;  %p7109_p6 = scmp.lt.s32.totalorder %s40_s29, %s40_s29 }
  0x2c   :  { %p7110_p7 = scmp.lt.s32.totalorder %s7108_s20, %s7104_s19 }
  0x2e   :  { %p7111_p8 = por %p7110_p7, %p7109_p6 }
  0x30   :  { %p7112_p9 = pnand %p7111_p8, %p7105_p5 }
  0x32   :  { %7115 = shalt.err (!%p7112_p9)
}
  0x33   :  { %42 = dma.hbm_to_vmem [thread:$0]  %s8218_s2, 16, %s40_s29, [#allocation6]  }
  0x34   :  { %7138 = dma.done.wait [#allocation3], 2304  }
  0x35   :  { %7139 = vsyncadd [#allocation3], 4294964992 }
  0x36   :  { %7140 = dma.done.wait [#allocation6], 147472  }
  0x37   :  { %7141 = vsyncadd [#allocation6], 4294819824  ;;  %v806_v0 = vld [vmem:[#allocation5 + $0x80] sm:$0xff]  ;;  %v807_v1 = vld [vmem:[#allocation5 + $0x88] sm:$0xff]  ;;  %s7150_s2 = smov [#allocation8]  }
  0x38   :  { %v790_v2 = vld [vmem:[#allocation5] sm:$0xff]  ;;  %v5891_v3 = vpack.c.bf16 %v807_v1, %v806_v0  ;;  %v791_v4 = vld [vmem:[#allocation5 + $0x8] sm:$0xff]  ;;  %v808_v11 = vld [vmem:[#allocation5 + $0x90] sm:$0xff]  ;;  %s4476_s22 = sshll.u32 %s7150_s2, 4  ;;  %s4477_s22 = int_to_ptr.vmem [resolvable:$true] %s4476_s22 }
  0x39   :  { %v838_v5 = vld [vmem:[#allocation5 + $0x180] sm:$0xff]  ;;  %v839_v6 = vld [vmem:[#allocation5 + $0x188] sm:$0xff]  ;;  %v5893_v7 = vpack.c.bf16 %v791_v4, %v790_v2  ;;  %v809_v13 = vld [vmem:[#allocation5 + $0x98] sm:$0xff]  ;;  %s7116_s23 = scalar_lea.vmem %s4477_s22, 128  ;;  %p7121_p11 = scmp.lt.s32.totalorder %s4477_s22, %s4477_s22 }
  0x3a   :  { %v5923_v8 = vpack.c.bf16 %v839_v6, %v838_v5  ;;  %v822_v9 = vld [vmem:[#allocation5 + $0x100] sm:$0xff]  ;;  %v823_v10 = vld [vmem:[#allocation5 + $0x108] sm:$0xff]  ;;  %5892 = vmatprep.subr.bf16.mxu0 %v5891_v3  ;;  %v792_v14 = vld [vmem:[#allocation5 + $0x10] sm:$0xff]  ;;  %v5895_v16 = vpack.c.bf16 %v809_v13, %v808_v11  ;;  %p7117_p10 = scmp.ne.s32.totalorder %s4477_s22, %s7116_s23  ;;  %p7122_p12 = scmp.lt.s32.totalorder %s7116_s23, %s7116_s23 }
  0x3b   :  { %v5925_v12 = vpack.c.bf16 %v823_v10, %v822_v9  ;;  %v793_v15 = vld [vmem:[#allocation5 + $0x18] sm:$0xff]  ;;  %5894 = vmatpush3.bf16.msra.mxu0 %v5893_v7  ;;  %v840_v18 = vld [vmem:[#allocation5 + $0x190] sm:$0xff]  ;;  %v810_v23 = vld [vmem:[#allocation5 + $0xa0] sm:$0xff] }
  0x3c   :  { %5924 = vmatprep.subr.bf16.mxu1 %v5923_v8  ;;  %v5897_v17 = vpack.c.bf16 %v793_v15, %v792_v14  ;;  %v841_v19 = vld [vmem:[#allocation5 + $0x198] sm:$0xff]  ;;  %v824_v20 = vld [vmem:[#allocation5 + $0x110] sm:$0xff]  ;;  %v811_v24 = vld [vmem:[#allocation5 + $0xa8] sm:$0xff]  ;;  %5896 = vmatprep.subr.bf16.mxu0 %v5895_v16  ;;  %p7123_p13 = por %p7122_p12, %p7121_p11 }
  0x3d   :  { %5926 = vmatpush3.bf16.msra.mxu1 %v5925_v12  ;;  %v5927_v21 = vpack.c.bf16 %v841_v19, %v840_v18  ;;  %v825_v22 = vld [vmem:[#allocation5 + $0x118] sm:$0xff]  ;;  %v5899_v26 = vpack.c.bf16 %v811_v24, %v810_v23  ;;  %v794_v27 = vld [vmem:[#allocation5 + $0x20] sm:$0xff]  ;;  %v795_v28 = vld [vmem:[#allocation5 + $0x28] sm:$0xff] }
  0x3e   :  { %v5929_v25 = vpack.c.bf16 %v825_v22, %v824_v20  ;;  %v842_v29 = vld [vmem:[#allocation5 + $0x1a0] sm:$0xff]  ;;  %v843_v30 = vld [vmem:[#allocation5 + $0x1a8] sm:$0xff]  ;;  %v5901_v33 = vpack.c.bf16 %v795_v28, %v794_v27  ;;  %v812_v35 = vld [vmem:[#allocation5 + $0xb0] sm:$0xff]  ;;  %p7124_p0 = pnand %p7123_p13, %p7117_p10 }
  0x3f   :  { %5928 = vmatprep.subr.bf16.mxu1 %v5927_v21  ;;  %v826_v31 = vld [vmem:[#allocation5 + $0x120] sm:$0xff]  ;;  %v827_v32 = vld [vmem:[#allocation5 + $0x128] sm:$0xff]  ;;  %5898 = vmatpush3.bf16.msra.mxu0 %v5897_v17  ;;  %v5931_v34 = vpack.c.bf16 %v843_v30, %v842_v29  ;;  %v813_v36 = vld [vmem:[#allocation5 + $0xb8] sm:$0xff] }
  0x40   :  { %v796_v37 = vld [vmem:[#allocation5 + $0x30] sm:$0xff]  ;;  %5900 = vmatprep.subr.bf16.mxu0 %v5899_v26  ;;  %v5933_v38 = vpack.c.bf16 %v827_v32, %v826_v31  ;;  %v5903_v39 = vpack.c.bf16 %v813_v36, %v812_v35  ;;  %v797_v40 = vld [vmem:[#allocation5 + $0x38] sm:$0xff]  ;;  %v814_v46 = vld [vmem:[#allocation5 + $0xc0] sm:$0xff] }
  0x41   :  { %5930 = vmatpush3.bf16.msra.mxu1 %v5929_v25  ;;  %v844_v41 = vld [vmem:[#allocation5 + $0x1b0] sm:$0xff]  ;;  %v845_v42 = vld [vmem:[#allocation5 + $0x1b8] sm:$0xff]  ;;  %v815_v47 = vld [vmem:[#allocation5 + $0xc8] sm:$0xff]  ;;  %v5905_v48 = vpack.c.bf16 %v797_v40, %v796_v37 }
  0x42   :  { %5932 = vmatprep.subr.bf16.mxu1 %v5931_v34  ;;  %v5935_v43 = vpack.c.bf16 %v845_v42, %v844_v41  ;;  %v828_v44 = vld [vmem:[#allocation5 + $0x130] sm:$0xff]  ;;  %v829_v45 = vld [vmem:[#allocation5 + $0x138] sm:$0xff]  ;;  %v846_v49 = vld [vmem:[#allocation5 + $0x1c0] sm:$0xff]  ;;  %v5907_v52 = vpack.c.bf16 %v815_v47, %v814_v46 }
  0x43   :  { %5902 = vmatpush3.bf16.msra.mxu0 %v5901_v33  ;;  %v847_v50 = vld [vmem:[#allocation5 + $0x1c8] sm:$0xff]  ;;  %v5937_v51 = vpack.c.bf16 %v829_v45, %v828_v44  ;;  %v798_v53 = vld [vmem:[#allocation5 + $0x40] sm:$0xff]  ;;  %v816_v58 = vld [vmem:[#allocation5 + $0xd0] sm:$0xff] }
  0x44   :  { %5904 = vmatprep.subr.bf16.mxu0 %v5903_v39  ;;  %v799_v54 = vld [vmem:[#allocation5 + $0x48] sm:$0xff]  ;;  %v830_v55 = vld [vmem:[#allocation5 + $0x140] sm:$0xff]  ;;  %v5939_v56 = vpack.c.bf16 %v847_v50, %v846_v49  ;;  %v817_v59 = vld [vmem:[#allocation5 + $0xd8] sm:$0xff] }
  0x45   :  { %5934 = vmatpush3.bf16.msra.mxu1 %v5933_v38  ;;  %v831_v57 = vld [vmem:[#allocation5 + $0x148] sm:$0xff]  ;;  %v848_v60 = vld [vmem:[#allocation5 + $0x1d0] sm:$0xff]  ;;  %v849_v61 = vld [vmem:[#allocation5 + $0x1d8] sm:$0xff]  ;;  %v5909_v62 = vpack.c.bf16 %v799_v54, %v798_v53  ;;  %v5911_v0 = vpack.c.bf16 %v817_v59, %v816_v58 }
  0x46   :  { %5936 = vmatprep.subr.bf16.mxu1 %v5935_v43  ;;  %v5941_v63 = vpack.c.bf16 %v831_v57, %v830_v55  ;;  %v800_v1 = vld [vmem:[#allocation5 + $0x50] sm:$0xff]  ;;  %v801_v2 = vld [vmem:[#allocation5 + $0x58] sm:$0xff]  ;;  %v5943_v4 = vpack.c.bf16 %v849_v61, %v848_v60  ;;  %v818_v6 = vld [vmem:[#allocation5 + $0xe0] sm:$0xff]  ;;  %v7149_v55 = vmov 1.0  }
  0x47   :  { %5906 = vmatpush3.bf16.msra.mxu0 %v5905_v48  ;;  %v832_v3 = vld [vmem:[#allocation5 + $0x150] sm:$0xff]  ;;  %v833_v5 = vld [vmem:[#allocation5 + $0x158] sm:$0xff]  ;;  %v819_v7 = vld [vmem:[#allocation5 + $0xe8] sm:$0xff]  ;;  %v5913_v10 = vpack.c.bf16 %v801_v2, %v800_v1 }
  0x48   :  { %5908 = vmatprep.subr.bf16.mxu0 %v5907_v52  ;;  %v850_v8 = vld [vmem:[#allocation5 + $0x1e0] sm:$0xff]  ;;  %v851_v9 = vld [vmem:[#allocation5 + $0x1e8] sm:$0xff]  ;;  %v5945_v12 = vpack.c.bf16 %v833_v5, %v832_v3  ;;  %v5915_v13 = vpack.c.bf16 %v819_v7, %v818_v6  ;;  %v52_v16 = vld [vmem:[#allocation2] sm:$0xff] }
  0x49   :  { %5938 = vmatpush3.bf16.msra.mxu1 %v5937_v51  ;;  %v802_v11 = vld [vmem:[#allocation5 + $0x60] sm:$0xff]  ;;  %v803_v14 = vld [vmem:[#allocation5 + $0x68] sm:$0xff]  ;;  %v5947_v17 = vpack.c.bf16 %v851_v9, %v850_v8  ;;  %v820_v19 = vld [vmem:[#allocation5 + $0xf0] sm:$0xff]  ;;  %v71_v21 = vunpack.c.1.s8 %v52_v16  ;;  %v70_v22 = vunpack.c.0.s8 %v52_v16  ;;  %v73_v23 = vunpack.c.3.s8 %v52_v16 }
  0x4a   :  { %5940 = vmatprep.subr.bf16.mxu1 %v5939_v56  ;;  %v834_v15 = vld [vmem:[#allocation5 + $0x160] sm:$0xff]  ;;  %v835_v18 = vld [vmem:[#allocation5 + $0x168] sm:$0xff]  ;;  %v821_v20 = vld [vmem:[#allocation5 + $0xf8] sm:$0xff]  ;;  %v72_v26 = vunpack.c.2.s8 %v52_v16  ;;  %v5917_v27 = vpack.c.bf16 %v803_v14, %v802_v11 }
  0x4b   :  { %5910 = vmatpush3.bf16.msra.mxu0 %v5909_v62  ;;  %v852_v24 = vld [vmem:[#allocation5 + $0x1f0] sm:$0xff]  ;;  %v853_v25 = vld [vmem:[#allocation5 + $0x1f8] sm:$0xff]  ;;  %v143_v30 = vand.u32 255, %v71_v21  ;;  %v142_v31 = vand.u32 255, %v70_v22  ;;  %v145_v32 = vand.u32 255, %v73_v23  ;;  %v5949_v33 = vpack.c.bf16 %v835_v18, %v834_v15  ;;  %v870_v41 = vld [vmem:[#allocation5 + $0x280] sm:$0xff] }
  0x4c   :  { %5912 = vmatprep.subr.bf16.mxu0 %v5911_v0  ;;  %v804_v28 = vld [vmem:[#allocation5 + $0x70] sm:$0xff]  ;;  %v805_v29 = vld [vmem:[#allocation5 + $0x78] sm:$0xff]  ;;  %v5919_v34 = vpack.c.bf16 %v821_v20, %v820_v19  ;;  %v144_v36 = vand.u32 255, %v72_v26  ;;  %v5951_v37 = vpack.c.bf16 %v853_v25, %v852_v24  ;;  %v871_v42 = vld [vmem:[#allocation5 + $0x288] sm:$0xff] }
  0x4d   :  { %5942 = vmatpush3.bf16.msra.mxu1 %v5941_v63  ;;  %v836_v35 = vld [vmem:[#allocation5 + $0x170] sm:$0xff]  ;;  %v837_v38 = vld [vmem:[#allocation5 + $0x178] sm:$0xff]  ;;  %v215_v39 = vcvt.s32.f32 %v143_v30  ;;  %v214_v40 = vcvt.s32.f32 %v142_v31  ;;  %v217_v43 = vcvt.s32.f32 %v145_v32  ;;  %v5921_v44 = vpack.c.bf16 %v805_v29, %v804_v28  ;;  %v902_v45 = vld [vmem:[#allocation5 + $0x380] sm:$0xff] }
  0x4e   :  { %5944 = vmatprep.subr.bf16.mxu1 %v5943_v4  ;;  %v903_v46 = vld [vmem:[#allocation5 + $0x388] sm:$0xff]  ;;  %v216_v47 = vcvt.s32.f32 %v144_v36  ;;  %v5953_v48 = vpack.c.bf16 %v837_v38, %v836_v35  ;;  %v5955_v49 = vpack.c.bf16 %v871_v42, %v870_v41  ;;  %v854_v50 = vld [vmem:[#allocation5 + $0x200] sm:$0xff]  ;;  %v872_v53 = vld [vmem:[#allocation5 + $0x290] sm:$0xff] }
  0x4f   :  { %5914 = vmatpush3.bf16.msra.mxu0 %v5913_v10  ;;  %vm287_vm0 = vcmp.ne.f32.partialorder %v215_v39, 0.0  ;;  %vm359_vm1 = vcmp.ne.f32.partialorder %v215_v39, 144.0  ;;  %vm503_vm2 = vcmp.ne.f32.partialorder %v215_v39, 109.0  ;;  %vm286_vm3 = vcmp.ne.f32.partialorder %v214_v40, 0.0  ;;  %v855_v51 = vld [vmem:[#allocation5 + $0x208] sm:$0xff]  ;;  %v873_v54 = vld [vmem:[#allocation5 + $0x298] sm:$0xff] }
  0x50   :  { %5916 = vmatprep.subr.bf16.mxu0 %v5915_v13  ;;  %vm431_vm4 = vmand %vm287_vm0, %vm359_vm1  ;;  %vm358_vm5 = vcmp.ne.f32.partialorder %v214_v40, 144.0  ;;  %vm502_vm6 = vcmp.ne.f32.partialorder %v214_v40, 109.0  ;;  %vm289_vm8 = vcmp.ne.f32.partialorder %v217_v43, 0.0  ;;  %vm361_vm9 = vcmp.ne.f32.partialorder %v217_v43, 144.0  ;;  %v886_v56 = vld [vmem:[#allocation5 + $0x300] sm:$0xff]  ;;  %v887_v57 = vld [vmem:[#allocation5 + $0x308] sm:$0xff] }
  0x51   :  { %5946 = vmatpush3.bf16.msra.mxu1 %v5945_v12  ;;  %vm575_vm7 = vmand %vm431_vm4, %vm503_vm2  ;;  %v5987_v52 = vpack.c.bf16 %v903_v46, %v902_v45  ;;  %vm505_vm11 = vcmp.ne.f32.partialorder %v217_v43, 109.0  ;;  %v5957_v59 = vpack.c.bf16 %v855_v51, %v854_v50  ;;  %vm288_vm13 = vcmp.ne.f32.partialorder %v216_v47, 0.0  ;;  %v904_v60 = vld [vmem:[#allocation5 + $0x390] sm:$0xff]  ;;  %v905_v61 = vld [vmem:[#allocation5 + $0x398] sm:$0xff] }
  0x52   :  { %5948 = vmatprep.subr.bf16.mxu1 %v5947_v17  ;;  %4559 = vmatprep.mubr.msk.f32.mxu0 %vm575_vm7, %v7149_v55  ;;  %vm430_vm10 = vmand %vm286_vm3, %vm358_vm5  ;;  %vm360_vm14 = vcmp.ne.f32.partialorder %v216_v47, 144.0  ;;  %vm504_vm0 = vcmp.ne.f32.partialorder %v216_v47, 109.0  ;;  %v5959_v62 = vpack.c.bf16 %v873_v54, %v872_v53  ;;  %v856_v63 = vld [vmem:[#allocation5 + $0x210] sm:$0xff]  ;;  %v857_v0 = vld [vmem:[#allocation5 + $0x218] sm:$0xff]  ;;  %v5989_v1 = vpack.c.bf16 %v887_v57, %v886_v56 }
  0x53   :  { %5918 = vmatpush3.bf16.msra.mxu0 %v5917_v27  ;;  %vm7210_vm12 = vmand %vm430_vm10, %vm502_vm6  ;;  %v874_v2 = vld [vmem:[#allocation5 + $0x2a0] sm:$0xff]  ;;  %v875_v3 = vld [vmem:[#allocation5 + $0x2a8] sm:$0xff]  ;;  %v5991_v4 = vpack.c.bf16 %v905_v61, %v904_v60  ;;  %v5961_v7 = vpack.c.bf16 %v857_v0, %v856_v63 }
  0x54   :  { %5920 = vmatprep.subr.bf16.mxu0 %v5919_v34  ;;  %vm433_vm15 = vmand %vm289_vm8, %vm361_vm9  ;;  %v888_v5 = vld [vmem:[#allocation5 + $0x310] sm:$0xff]  ;;  %v889_v6 = vld [vmem:[#allocation5 + $0x318] sm:$0xff]  ;;  %v5963_v10 = vpack.c.bf16 %v875_v3, %v874_v2 }
  0x55   :  { %5950 = vmatpush3.bf16.msra.mxu1 %v5949_v33  ;;  %vm577_vm1 = vmand %vm433_vm15, %vm505_vm11  ;;  %v906_v8 = vld [vmem:[#allocation5 + $0x3a0] sm:$0xff]  ;;  %v907_v9 = vld [vmem:[#allocation5 + $0x3a8] sm:$0xff]  ;;  %v5993_v13 = vpack.c.bf16 %v889_v6, %v888_v5 }
  0x56   :  { %5952 = vmatprep.subr.bf16.mxu1 %v5951_v37  ;;  %4561 = vmatprep.mubr.msk.f32.mxu1 %vm577_vm1, %v7149_v55  ;;  %vm432_vm2 = vmand %vm288_vm13, %vm360_vm14  ;;  %v858_v11 = vld [vmem:[#allocation5 + $0x220] sm:$0xff]  ;;  %v859_v12 = vld [vmem:[#allocation5 + $0x228] sm:$0xff]  ;;  %v5995_v16 = vpack.c.bf16 %v907_v9, %v906_v8 }
  0x57   :  { %5922 = vmatpush3.bf16.msra.mxu0 %v5921_v44  ;;  %vm576_vm3 = vmand %vm432_vm2, %vm504_vm0  ;;  %v876_v14 = vld [vmem:[#allocation5 + $0x2b0] sm:$0xff]  ;;  %v877_v15 = vld [vmem:[#allocation5 + $0x2b8] sm:$0xff]  ;;  %v5965_v19 = vpack.c.bf16 %v859_v12, %v858_v11 }
  0x58   :  { %5956 = vmatprep.subr.bf16.mxu0 %v5955_v49  ;;  %v890_v17 = vld [vmem:[#allocation5 + $0x320] sm:$0xff]  ;;  %v891_v18 = vld [vmem:[#allocation5 + $0x328] sm:$0xff]  ;;  %v908_v20 = vld [vmem:[#allocation5 + $0x3b0] sm:$0xff]  ;;  %v5967_v22 = vpack.c.bf16 %v877_v15, %v876_v14 }
  0x59   :  { %5954 = vmatpush3.bf16.msra.mxu1 %v5953_v48  ;;  %v909_v21 = vld [vmem:[#allocation5 + $0x3b8] sm:$0xff]  ;;  %v860_v23 = vld [vmem:[#allocation5 + $0x230] sm:$0xff]  ;;  %v5997_v25 = vpack.c.bf16 %v891_v18, %v890_v17  ;;  %v878_v26 = vld [vmem:[#allocation5 + $0x2c0] sm:$0xff] }
  0x5a   :  { %5988 = vmatprep.subr.bf16.mxu1 %v5987_v52  ;;  %4560 = vmatmul.mubr.msk.f32.vlgmr.msra.gmra.mrb[0].mxu0 %vm7210_vm12, %v7149_v55  ;;  %v861_v24 = vld [vmem:[#allocation5 + $0x238] sm:$0xff]  ;;  %v879_v27 = vld [vmem:[#allocation5 + $0x2c8] sm:$0xff]  ;;  %v5999_v28 = vpack.c.bf16 %v909_v21, %v908_v20  ;;  %v892_v29 = vld [vmem:[#allocation5 + $0x330] sm:$0xff] }
  0x5b   :  { %5958 = vmatpush3.bf16.msra.mxu0 %v5957_v59  ;;  %v893_v30 = vld [vmem:[#allocation5 + $0x338] sm:$0xff]  ;;  %v5969_v31 = vpack.c.bf16 %v861_v24, %v860_v23  ;;  %v910_v32 = vld [vmem:[#allocation5 + $0x3c0] sm:$0xff]  ;;  %v911_v33 = vld [vmem:[#allocation5 + $0x3c8] sm:$0xff]  ;;  %v5971_v34 = vpack.c.bf16 %v879_v27, %v878_v26 }
  0x5c   :  { %4562 = vmatmul.mubr.msk.f32.vlgmr.msra.gmra.mrb[0].mxu1 %vm576_vm3, %v7149_v55  ;;  %5960 = vmatprep.subr.bf16.mxu0 %v5959_v62  ;;  %v862_v35 = vld [vmem:[#allocation5 + $0x240] sm:$0xff]  ;;  %v863_v36 = vld [vmem:[#allocation5 + $0x248] sm:$0xff]  ;;  %v6001_v37 = vpack.c.bf16 %v893_v30, %v892_v29  ;;  %v880_v38 = vld [vmem:[#allocation5 + $0x2d0] sm:$0xff]  ;;  %v6003_v41 = vpack.c.bf16 %v911_v33, %v910_v32 }
  0x5d   :  { %5990 = vmatpush3.bf16.msra.mxu1 %v5989_v1  ;;  %v881_v39 = vld [vmem:[#allocation5 + $0x2d8] sm:$0xff]  ;;  %v894_v42 = vld [vmem:[#allocation5 + $0x340] sm:$0xff]  ;;  %v895_v43 = vld [vmem:[#allocation5 + $0x348] sm:$0xff]  ;;  %v5973_v47 = vpack.c.bf16 %v863_v36, %v862_v35 }
  0x5e   :  { %5992 = vmatprep.subr.bf16.mxu1 %v5991_v4  ;;  %v53_v40 = vld [vmem:[#allocation2 + $0x8] sm:$0xff]  ;;  %v912_v48 = vld [vmem:[#allocation5 + $0x3d0] sm:$0xff]  ;;  %v5975_v51 = vpack.c.bf16 %v881_v39, %v880_v38  ;;  %v6005_v57 = vpack.c.bf16 %v895_v43, %v894_v42  ;;  %v882_v58 = vld [vmem:[#allocation5 + $0x2e0] sm:$0xff] }
  0x5f   :  { %5962 = vmatpush3.bf16.msra.mxu0 %v5961_v7  ;;  %v75_v44 = vunpack.c.1.s8 %v53_v40  ;;  %v74_v45 = vunpack.c.0.s8 %v53_v40  ;;  %v77_v46 = vunpack.c.3.s8 %v53_v40  ;;  %v913_v49 = vld [vmem:[#allocation5 + $0x3d8] sm:$0xff]  ;;  %v76_v50 = vunpack.c.2.s8 %v53_v40  ;;  %v864_v52 = vld [vmem:[#allocation5 + $0x250] sm:$0xff]  ;;  %v883_v59 = vld [vmem:[#allocation5 + $0x2e8] sm:$0xff] }
  0x60   :  { %5964 = vmatprep.subr.bf16.mxu0 %v5963_v10  ;;  %v865_v53 = vld [vmem:[#allocation5 + $0x258] sm:$0xff]  ;;  %v6007_v61 = vpack.c.bf16 %v913_v49, %v912_v48  ;;  %v896_v62 = vld [vmem:[#allocation5 + $0x350] sm:$0xff]  ;;  %v914_v3 = vld [vmem:[#allocation5 + $0x3e0] sm:$0xff]  ;;  %v5979_v6 = vpack.c.bf16 %v883_v59, %v882_v58 }
  0x61   :  { %5994 = vmatpush3.bf16.msra.mxu1 %v5993_v13  ;;  %v147_v54 = vand.u32 255, %v75_v44  ;;  %v149_v56 = vand.u32 255, %v77_v46  ;;  %v146_v60 = vand.u32 255, %v74_v45  ;;  %v897_v63 = vld [vmem:[#allocation5 + $0x358] sm:$0xff]  ;;  %v5977_v2 = vpack.c.bf16 %v865_v53, %v864_v52  ;;  %v915_v4 = vld [vmem:[#allocation5 + $0x3e8] sm:$0xff]  ;;  %v866_v7 = vld [vmem:[#allocation5 + $0x260] sm:$0xff] }
  0x62   :  { %5996 = vmatprep.subr.bf16.mxu1 %v5995_v16  ;;  %v148_v5 = vand.u32 255, %v76_v50  ;;  %v867_v8 = vld [vmem:[#allocation5 + $0x268] sm:$0xff]  ;;  %v6009_v9 = vpack.c.bf16 %v897_v63, %v896_v62  ;;  %v884_v10 = vld [vmem:[#allocation5 + $0x2f0] sm:$0xff]  ;;  %v885_v11 = vld [vmem:[#allocation5 + $0x2f8] sm:$0xff]  ;;  %v6011_v13 = vpack.c.bf16 %v915_v4, %v914_v3 }
  0x63   :  { %5966 = vmatpush3.bf16.msra.mxu0 %v5965_v19  ;;  %v219_v0 = vcvt.s32.f32 %v147_v54  ;;  %v221_v1 = vcvt.s32.f32 %v149_v56  ;;  %v218_v12 = vcvt.s32.f32 %v146_v60  ;;  %v898_v14 = vld [vmem:[#allocation5 + $0x360] sm:$0xff]  ;;  %v899_v15 = vld [vmem:[#allocation5 + $0x368] sm:$0xff]  ;;  %v5981_v16 = vpack.c.bf16 %v867_v8, %v866_v7  ;;  %v916_v17 = vld [vmem:[#allocation5 + $0x3f0] sm:$0xff] }
  0x64   :  { %5968 = vmatprep.subr.bf16.mxu0 %v5967_v22  ;;  %v917_v18 = vld [vmem:[#allocation5 + $0x3f8] sm:$0xff]  ;;  %v220_v19 = vcvt.s32.f32 %v148_v5  ;;  %v5983_v20 = vpack.c.bf16 %v885_v11, %v884_v10  ;;  %v868_v21 = vld [vmem:[#allocation5 + $0x270] sm:$0xff]  ;;  %v6013_v23 = vpack.c.bf16 %v899_v15, %v898_v14  ;;  %v934_v24 = vld [vmem:[#allocation5 + $0x480] sm:$0xff] }
  0x65   :  { %5998 = vmatpush3.bf16.msra.mxu1 %v5997_v25  ;;  %vm291_vm4 = vcmp.ne.f32.partialorder %v219_v0, 0.0  ;;  %vm363_vm5 = vcmp.ne.f32.partialorder %v219_v0, 144.0  ;;  %vm507_vm6 = vcmp.ne.f32.partialorder %v219_v0, 109.0  ;;  %vm293_vm9 = vcmp.ne.f32.partialorder %v221_v1, 0.0  ;;  %v869_v22 = vld [vmem:[#allocation5 + $0x278] sm:$0xff]  ;;  %v935_v25 = vld [vmem:[#allocation5 + $0x488] sm:$0xff] }
  0x66   :  { %6000 = vmatprep.subr.bf16.mxu1 %v5999_v28  ;;  %vm435_vm7 = vmand %vm291_vm4, %vm363_vm5  ;;  %vm365_vm10 = vcmp.ne.f32.partialorder %v221_v1, 144.0  ;;  %vm509_vm11 = vcmp.ne.f32.partialorder %v221_v1, 109.0  ;;  %vm290_vm12 = vcmp.ne.f32.partialorder %v218_v12, 0.0  ;;  %vm362_vm13 = vcmp.ne.f32.partialorder %v218_v12, 144.0  ;;  %v900_v27 = vld [vmem:[#allocation5 + $0x370] sm:$0xff]  ;;  %v901_v28 = vld [vmem:[#allocation5 + $0x378] sm:$0xff] }
  0x67   :  { %5970 = vmatpush3.bf16.msra.mxu0 %v5969_v31  ;;  %vm579_vm8 = vmand %vm435_vm7, %vm507_vm6  ;;  %v6015_v26 = vpack.c.bf16 %v917_v18, %v916_v17  ;;  %v5985_v29 = vpack.c.bf16 %v869_v22, %v868_v21  ;;  %v966_v30 = vld [vmem:[#allocation5 + $0x580] sm:$0xff]  ;;  %v967_v31 = vld [vmem:[#allocation5 + $0x588] sm:$0xff]  ;;  %vm292_vm0 = vcmp.ne.f32.partialorder %v220_v19, 0.0  ;;  %vm364_vm1 = vcmp.ne.f32.partialorder %v220_v19, 144.0 }
  0x68   :  { %5972 = vmatprep.subr.bf16.mxu0 %v5971_v34  ;;  %4563 = vmatprep.mubr.msk.f32.mxu0 %vm579_vm8, %v7149_v55  ;;  %vm437_vm14 = vmand %vm293_vm9, %vm365_vm10  ;;  %vm506_vm3 = vcmp.ne.f32.partialorder %v218_v12, 109.0  ;;  %v6019_v33 = vpack.c.bf16 %v935_v25, %v934_v24  ;;  %v918_v34 = vld [vmem:[#allocation5 + $0x400] sm:$0xff]  ;;  %v919_v35 = vld [vmem:[#allocation5 + $0x408] sm:$0xff]  ;;  %v6017_v36 = vpack.c.bf16 %v901_v28, %v900_v27  ;;  %v6051_v39 = vpack.c.bf16 %v967_v31, %v966_v30 }
  0x69   :  { %6002 = vmatpush3.bf16.msra.mxu1 %v6001_v37  ;;  %vm581_vm15 = vmand %vm437_vm14, %vm509_vm11  ;;  %v936_v37 = vld [vmem:[#allocation5 + $0x490] sm:$0xff]  ;;  %v937_v38 = vld [vmem:[#allocation5 + $0x498] sm:$0xff]  ;;  %vm508_vm5 = vcmp.ne.f32.partialorder %v220_v19, 109.0  ;;  %v6021_v42 = vpack.c.bf16 %v919_v35, %v918_v34 }
  0x6a   :  { %6004 = vmatprep.subr.bf16.mxu1 %v6003_v41  ;;  %4565 = vmatprep.mubr.msk.f32.mxu1 %vm581_vm15, %v7149_v55  ;;  %vm7232_vm2 = vmand %vm290_vm12, %vm362_vm13  ;;  %v950_v40 = vld [vmem:[#allocation5 + $0x500] sm:$0xff]  ;;  %v951_v41 = vld [vmem:[#allocation5 + $0x508] sm:$0xff]  ;;  %v6023_v45 = vpack.c.bf16 %v937_v38, %v936_v37 }
  0x6b   :  { %5974 = vmatpush3.bf16.msra.mxu0 %v5973_v47  ;;  %vm436_vm4 = vmand %vm292_vm0, %vm364_vm1  ;;  %v968_v43 = vld [vmem:[#allocation5 + $0x590] sm:$0xff]  ;;  %v969_v44 = vld [vmem:[#allocation5 + $0x598] sm:$0xff]  ;;  %v6053_v48 = vpack.c.bf16 %v951_v41, %v950_v40 }
  0x6c   :  { %5976 = vmatprep.subr.bf16.mxu0 %v5975_v51  ;;  %vm578_vm6 = vmand %vm7232_vm2, %vm506_vm3  ;;  %v920_v46 = vld [vmem:[#allocation5 + $0x410] sm:$0xff]  ;;  %v921_v47 = vld [vmem:[#allocation5 + $0x418] sm:$0xff]  ;;  %v6055_v51 = vpack.c.bf16 %v969_v44, %v968_v43 }
  0x6d   :  { %6006 = vmatpush3.bf16.msra.mxu1 %v6005_v57  ;;  %vm580_vm7 = vmand %vm436_vm4, %vm508_vm5  ;;  %v938_v49 = vld [vmem:[#allocation5 + $0x4a0] sm:$0xff]  ;;  %v939_v50 = vld [vmem:[#allocation5 + $0x4a8] sm:$0xff]  ;;  %v6025_v54 = vpack.c.bf16 %v921_v47, %v920_v46 }
  0x6e   :  { %6008 = vmatprep.subr.bf16.mxu1 %v6007_v61  ;;  %v952_v52 = vld [vmem:[#allocation5 + $0x510] sm:$0xff]  ;;  %v953_v53 = vld [vmem:[#allocation5 + $0x518] sm:$0xff]  ;;  %v970_v56 = vld [vmem:[#allocation5 + $0x5a0] sm:$0xff]  ;;  %v6027_v58 = vpack.c.bf16 %v939_v50, %v938_v49 }
  0x6f   :  { %5978 = vmatpush3.bf16.msra.mxu0 %v5977_v2  ;;  %v971_v57 = vld [vmem:[#allocation5 + $0x5a8] sm:$0xff]  ;;  %v922_v59 = vld [vmem:[#allocation5 + $0x420] sm:$0xff]  ;;  %v6057_v61 = vpack.c.bf16 %v953_v53, %v952_v52  ;;  %v940_v62 = vld [vmem:[#allocation5 + $0x4b0] sm:$0xff] }
  0x70   :  { %5980 = vmatprep.subr.bf16.mxu0 %v5979_v6  ;;  %v923_v60 = vld [vmem:[#allocation5 + $0x428] sm:$0xff]  ;;  %v941_v63 = vld [vmem:[#allocation5 + $0x4b8] sm:$0xff]  ;;  %v7241_v0 = vld [vmem:[#allocation2 + $0x10] sm:$0xff]  ;;  %v6059_v1 = vpack.c.bf16 %v971_v57, %v970_v56 }
  0x71   :  { %6010 = vmatpush3.bf16.msra.mxu1 %v6009_v9  ;;  %v954_v2 = vld [vmem:[#allocation5 + $0x520] sm:$0xff]  ;;  %v955_v3 = vld [vmem:[#allocation5 + $0x528] sm:$0xff]  ;;  %v79_v4 = vunpack.c.1.s8 %v7241_v0  ;;  %v81_v5 = vunpack.c.3.s8 %v7241_v0  ;;  %v6029_v6 = vpack.c.bf16 %v923_v60, %v922_v59  ;;  %v972_v7 = vld [vmem:[#allocation5 + $0x5b0] sm:$0xff]  ;;  %v6031_v9 = vpack.c.bf16 %v941_v63, %v940_v62 }
  0x72   :  { %6012 = vmatprep.subr.bf16.mxu1 %v6011_v13  ;;  %v973_v8 = vld [vmem:[#allocation5 + $0x5b8] sm:$0xff]  ;;  %v924_v10 = vld [vmem:[#allocation5 + $0x430] sm:$0xff]  ;;  %v6061_v14 = vpack.c.bf16 %v955_v3, %v954_v2  ;;  %v942_v15 = vld [vmem:[#allocation5 + $0x4c0] sm:$0xff]  ;;  %v78_v31 = vunpack.c.0.s8 %v7241_v0  ;;  %v80_v38 = vunpack.c.2.s8 %v7241_v0 }
  0x73   :  { %5982 = vmatpush3.bf16.msra.mxu0 %v5981_v16  ;;  %v925_v11 = vld [vmem:[#allocation5 + $0x438] sm:$0xff]  ;;  %v151_v12 = vand.u32 255, %v79_v4  ;;  %v153_v13 = vand.u32 255, %v81_v5  ;;  %v943_v16 = vld [vmem:[#allocation5 + $0x4c8] sm:$0xff]  ;;  %v6063_v17 = vpack.c.bf16 %v973_v8, %v972_v7  ;;  %v956_v18 = vld [vmem:[#allocation5 + $0x530] sm:$0xff] }
  0x74   :  { %5984 = vmatprep.subr.bf16.mxu0 %v5983_v20  ;;  %v957_v19 = vld [vmem:[#allocation5 + $0x538] sm:$0xff]  ;;  %v6033_v22 = vpack.c.bf16 %v925_v11, %v924_v10  ;;  %v975_v24 = vld [vmem:[#allocation5 + $0x5c8] sm:$0xff]  ;;  %v6035_v25 = vpack.c.bf16 %v943_v16, %v942_v15  ;;  %v928_v40 = vld [vmem:[#allocation5 + $0x450] sm:$0xff]  ;;  %v152_v52 = vand.u32 255, %v80_v38 }
  0x75   :  { %6014 = vmatpush3.bf16.msra.mxu1 %v6013_v23  ;;  %v223_v20 = vcvt.s32.f32 %v151_v12  ;;  %v225_v21 = vcvt.s32.f32 %v153_v13  ;;  %v974_v23 = vld [vmem:[#allocation5 + $0x5c0] sm:$0xff]  ;;  %v927_v27 = vld [vmem:[#allocation5 + $0x448] sm:$0xff]  ;;  %v6065_v28 = vpack.c.bf16 %v957_v19, %v956_v18  ;;  %v945_v30 = vld [vmem:[#allocation5 + $0x4d8] sm:$0xff] }
  0x76   :  { %6016 = vmatprep.subr.bf16.mxu1 %v6015_v26  ;;  %v926_v26 = vld [vmem:[#allocation5 + $0x440] sm:$0xff]  ;;  %v6067_v32 = vpack.c.bf16 %v975_v24, %v974_v23  ;;  %v959_v34 = vld [vmem:[#allocation5 + $0x548] sm:$0xff]  ;;  %v977_v37 = vld [vmem:[#allocation5 + $0x5d8] sm:$0xff]  ;;  %v224_v3 = vcvt.s32.f32 %v152_v52 }
  0x77   :  { %5986 = vmatpush3.bf16.msra.mxu0 %v5985_v29  ;;  %vm295_vm8 = vcmp.ne.f32.partialorder %v223_v20, 0.0  ;;  %vm367_vm9 = vcmp.ne.f32.partialorder %v223_v20, 144.0  ;;  %vm511_vm10 = vcmp.ne.f32.partialorder %v223_v20, 109.0  ;;  %v944_v29 = vld [vmem:[#allocation5 + $0x4d0] sm:$0xff]  ;;  %vm297_vm13 = vcmp.ne.f32.partialorder %v225_v21, 0.0  ;;  %v929_v41 = vld [vmem:[#allocation5 + $0x458] sm:$0xff] }
  0x78   :  { %6020 = vmatprep.subr.bf16.mxu0 %v6019_v33  ;;  %vm439_vm11 = vmand %vm295_vm8, %vm367_vm9  ;;  %v958_v33 = vld [vmem:[#allocation5 + $0x540] sm:$0xff]  ;;  %vm369_vm14 = vcmp.ne.f32.partialorder %v225_v21, 144.0  ;;  %v6037_v35 = vpack.c.bf16 %v927_v27, %v926_v26  ;;  %vm513_vm15 = vcmp.ne.f32.partialorder %v225_v21, 109.0  ;;  %v947_v44 = vld [vmem:[#allocation5 + $0x4e8] sm:$0xff]  ;;  %v6041_v49 = vpack.c.bf16 %v929_v41, %v928_v40 }
  0x79   :  { %6018 = vmatpush3.bf16.msra.mxu1 %v6017_v36  ;;  %vm583_vm12 = vmand %vm439_vm11, %vm511_vm10  ;;  %v976_v36 = vld [vmem:[#allocation5 + $0x5d0] sm:$0xff]  ;;  %v946_v43 = vld [vmem:[#allocation5 + $0x4e0] sm:$0xff]  ;;  %vm296_vm4 = vcmp.ne.f32.partialorder %v224_v3, 0.0  ;;  %vm368_vm5 = vcmp.ne.f32.partialorder %v224_v3, 144.0  ;;  %vm512_vm9 = vcmp.ne.f32.partialorder %v224_v3, 109.0 }
  0x7a   :  { %4564 = vmatmul.mubr.msk.f32.vlgmr.msra.gmra.mrb[2].mxu0 %vm578_vm6, %v7149_v55  ;;  %6052 = vmatprep.subr.bf16.mxu1 %v6051_v39  ;;  %v6039_v39 = vpack.c.bf16 %v945_v30, %v944_v29  ;;  %vm441_vm0 = vmand %vm297_vm13, %vm369_vm14  ;;  %v6071_v46 = vpack.c.bf16 %v977_v37, %v976_v36  ;;  %v960_v47 = vld [vmem:[#allocation5 + $0x550] sm:$0xff]  ;;  %v978_v50 = vld [vmem:[#allocation5 + $0x5e0] sm:$0xff]  ;;  %v6043_v53 = vpack.c.bf16 %v947_v44, %v946_v43 }
  0x7b   :  { %6022 = vmatpush3.bf16.msra.mxu0 %v6021_v42  ;;  %4567 = vmatprep.mubr.msk.f32.mxu0 %vm583_vm12, %v7149_v55  ;;  %v6069_v42 = vpack.c.bf16 %v959_v34, %v958_v33  ;;  %vm585_vm1 = vmand %vm441_vm0, %vm513_vm15  ;;  %v931_v56 = vld [vmem:[#allocation5 + $0x468] sm:$0xff]  ;;  %v949_v59 = vld [vmem:[#allocation5 + $0x4f8] sm:$0xff] }
  0x7c   :  { %4566 = vmatmul.mubr.msk.f32.vlgmr.msra.gmra.mrb[2].mxu1 %vm580_vm7, %v7149_v55  ;;  %6024 = vmatprep.subr.bf16.mxu0 %v6023_v45  ;;  %v150_v45 = vand.u32 255, %v78_v31  ;;  %v962_v62 = vld [vmem:[#allocation5 + $0x560] sm:$0xff]  ;;  %v963_v63 = vld [vmem:[#allocation5 + $0x568] sm:$0xff]  ;;  %v981_v2 = vld [vmem:[#allocation5 + $0x5f8] sm:$0xff] }
  0x7d   :  { %6054 = vmatpush3.bf16.msra.mxu1 %v6053_v48  ;;  %v961_v48 = vld [vmem:[#allocation5 + $0x558] sm:$0xff]  ;;  %4569 = vmatprep.mubr.msk.f32.mxu1 %vm585_vm1, %v7149_v55  ;;  %v932_v5 = vld [vmem:[#allocation5 + $0x470] sm:$0xff]  ;;  %v6077_v7 = vpack.c.bf16 %v963_v63, %v962_v62  ;;  %v998_v8 = vld [vmem:[#allocation5 + $0x680] sm:$0xff] }
  0x7e   :  { %6056 = vmatprep.subr.bf16.mxu1 %v6055_v51  ;;  %v979_v51 = vld [vmem:[#allocation5 + $0x5e8] sm:$0xff]  ;;  %v6073_v57 = vpack.c.bf16 %v961_v48, %v960_v47  ;;  %v222_v60 = vcvt.s32.f32 %v150_v45  ;;  %v964_v11 = vld [vmem:[#allocation5 + $0x570] sm:$0xff]  ;;  %v965_v12 = vld [vmem:[#allocation5 + $0x578] sm:$0xff] }
  0x7f   :  { %6026 = vmatpush3.bf16.msra.mxu0 %v6025_v54  ;;  %v930_v54 = vld [vmem:[#allocation5 + $0x460] sm:$0xff]  ;;  %v1031_v15 = vld [vmem:[#allocation5 + $0x788] sm:$0xff]  ;;  %v6081_v20 = vpack.c.bf16 %v965_v12, %v964_v11  ;;  %v1001_v23 = vld [vmem:[#allocation5 + $0x698] sm:$0xff] }
  0x80   :  { %6028 = vmatprep.subr.bf16.mxu0 %v6027_v58  ;;  %v948_v58 = vld [vmem:[#allocation5 + $0x4f0] sm:$0xff]  ;;  %v6045_v0 = vpack.c.bf16 %v931_v56, %v930_v54  ;;  %vm294_vm2 = vcmp.ne.f32.partialorder %v222_v60, 0.0  ;;  %vm366_vm3 = vcmp.ne.f32.partialorder %v222_v60, 144.0  ;;  %vm510_vm7 = vcmp.ne.f32.partialorder %v222_v60, 109.0  ;;  %v982_v18 = vld [vmem:[#allocation5 + $0x600] sm:$0xff]  ;;  %v983_v19 = vld [vmem:[#allocation5 + $0x608] sm:$0xff] }
  0x81   :  { %6058 = vmatpush3.bf16.msra.mxu1 %v6057_v61  ;;  %v6075_v61 = vpack.c.bf16 %v979_v51, %v978_v50  ;;  %v6047_v4 = vpack.c.bf16 %v949_v59, %v948_v58  ;;  %vm7253_vm6 = vmand %vm294_vm2, %vm366_vm3  ;;  %v1014_v21 = vld [vmem:[#allocation5 + $0x700] sm:$0xff]  ;;  %v1015_v26 = vld [vmem:[#allocation5 + $0x708] sm:$0xff]  ;;  %v6085_v29 = vpack.c.bf16 %v983_v19, %v982_v18 }
  0x82   :  { %6060 = vmatprep.subr.bf16.mxu1 %v6059_v1  ;;  %v980_v1 = vld [vmem:[#allocation5 + $0x5f0] sm:$0xff]  ;;  %vm7258_vm8 = vmand %vm296_vm4, %vm368_vm5  ;;  %v7262_v27 = vld [vmem:[#allocation2 + $0x18] sm:$0xff]  ;;  %v6117_v38 = vpack.c.bf16 %v1015_v26, %v1014_v21 }
  0x83   :  { %6030 = vmatpush3.bf16.msra.mxu0 %v6029_v6  ;;  %v933_v6 = vld [vmem:[#allocation5 + $0x478] sm:$0xff]  ;;  %v6079_v10 = vpack.c.bf16 %v981_v2, %v980_v1  ;;  %vm7267_vm10 = vmand %vm7253_vm6, %vm510_vm7  ;;  %v1032_v30 = vld [vmem:[#allocation5 + $0x790] sm:$0xff]  ;;  %v85_v33 = vunpack.c.3.s8 %v7262_v27  ;;  %v82_v12 = vunpack.c.0.s8 %v7262_v27  ;;  %v84_v26 = vunpack.c.2.s8 %v7262_v27 }
  0x84   :  { %6032 = vmatprep.subr.bf16.mxu0 %v6031_v9  ;;  %v999_v9 = vld [vmem:[#allocation5 + $0x688] sm:$0xff]  ;;  %v6049_v13 = vpack.c.bf16 %v933_v6, %v932_v5  ;;  %v1033_v31 = vld [vmem:[#allocation5 + $0x798] sm:$0xff]  ;;  %vm7276_vm11 = vmand %vm7258_vm8, %vm512_vm9 }
  0x85   :  { %6062 = vmatpush3.bf16.msra.mxu1 %v6061_v14  ;;  %v1030_v14 = vld [vmem:[#allocation5 + $0x780] sm:$0xff]  ;;  %v985_v36 = vld [vmem:[#allocation5 + $0x618] sm:$0xff]  ;;  %v1003_v40 = vld [vmem:[#allocation5 + $0x6a8] sm:$0xff]  ;;  %v6119_v43 = vpack.c.bf16 %v1033_v31, %v1032_v30 }
  0x86   :  { %6064 = vmatprep.subr.bf16.mxu1 %v6063_v17  ;;  %v6083_v17 = vpack.c.bf16 %v999_v9, %v998_v8  ;;  %v6115_v24 = vpack.c.bf16 %v1031_v15, %v1030_v14  ;;  %v1016_v44 = vld [vmem:[#allocation5 + $0x710] sm:$0xff]  ;;  %v1017_v45 = vld [vmem:[#allocation5 + $0x718] sm:$0xff]  ;;  %v1034_v47 = vld [vmem:[#allocation5 + $0x7a0] sm:$0xff] }
  0x87   :  { %6034 = vmatpush3.bf16.msra.mxu0 %v6033_v22  ;;  %v1000_v22 = vld [vmem:[#allocation5 + $0x690] sm:$0xff]  ;;  %v1035_v48 = vld [vmem:[#allocation5 + $0x7a8] sm:$0xff]  ;;  %v986_v52 = vld [vmem:[#allocation5 + $0x620] sm:$0xff]  ;;  %v6121_v54 = vpack.c.bf16 %v1017_v45, %v1016_v44 }
  0x88   :  { %6036 = vmatprep.subr.bf16.mxu0 %v6035_v25  ;;  %v6087_v34 = vpack.c.bf16 %v1001_v23, %v1000_v22  ;;  %v1004_v56 = vld [vmem:[#allocation5 + $0x6b0] sm:$0xff]  ;;  %v6123_v58 = vpack.c.bf16 %v1035_v48, %v1034_v47  ;;  %v1018_v59 = vld [vmem:[#allocation5 + $0x720] sm:$0xff]  ;;  %v1019_v60 = vld [vmem:[#allocation5 + $0x728] sm:$0xff]  ;;  %v154_v25 = vand.u32 255, %v82_v12 }
  0x89   :  { %6066 = vmatpush3.bf16.msra.mxu1 %v6065_v28  ;;  %v1036_v62 = vld [vmem:[#allocation5 + $0x7b0] sm:$0xff]  ;;  %v1037_v63 = vld [vmem:[#allocation5 + $0x7b8] sm:$0xff]  ;;  %v6125_v3 = vpack.c.bf16 %v1019_v60, %v1018_v59  ;;  %v1007_v5 = vld [vmem:[#allocation5 + $0x6c8] sm:$0xff] }
  0x8a   :  { %6068 = vmatprep.subr.bf16.mxu1 %v6067_v32  ;;  %v83_v32 = vunpack.c.1.s8 %v7262_v27  ;;  %v988_v1 = vld [vmem:[#allocation5 + $0x630] sm:$0xff]  ;;  %v989_v2 = vld [vmem:[#allocation5 + $0x638] sm:$0xff]  ;;  %v6127_v6 = vpack.c.bf16 %v1037_v63, %v1036_v62  ;;  %v1039_v11 = vld [vmem:[#allocation5 + $0x7c8] sm:$0xff] }
  0x8b   :  { %6038 = vmatpush3.bf16.msra.mxu0 %v6037_v35  ;;  %v984_v35 = vld [vmem:[#allocation5 + $0x610] sm:$0xff]  ;;  %v1021_v8 = vld [vmem:[#allocation5 + $0x738] sm:$0xff]  ;;  %v6097_v9 = vpack.c.bf16 %v989_v2, %v988_v1  ;;  %v990_v14 = vld [vmem:[#allocation5 + $0x640] sm:$0xff] }
  0x8c   :  { %6040 = vmatprep.subr.bf16.mxu0 %v6039_v39  ;;  %v1002_v39 = vld [vmem:[#allocation5 + $0x6a0] sm:$0xff]  ;;  %v155_v41 = vand.u32 255, %v83_v32  ;;  %v991_v15 = vld [vmem:[#allocation5 + $0x648] sm:$0xff]  ;;  %v1009_v18 = vld [vmem:[#allocation5 + $0x6d8] sm:$0xff] }
  0x8d   :  { %6070 = vmatpush3.bf16.msra.mxu1 %v6069_v42  ;;  %v157_v42 = vand.u32 255, %v85_v33  ;;  %v6091_v51 = vpack.c.bf16 %v1003_v40, %v1002_v39  ;;  %v1023_v21 = vld [vmem:[#allocation5 + $0x748] sm:$0xff]  ;;  %v6101_v22 = vpack.c.bf16 %v991_v15, %v990_v14  ;;  %v1040_v23 = vld [vmem:[#allocation5 + $0x7d0] sm:$0xff]  ;;  %v993_v30 = vld [vmem:[#allocation5 + $0x658] sm:$0xff]  ;;  %v226_v40 = vcvt.s32.f32 %v154_v25 }
  0x8e   :  { %6072 = vmatprep.subr.bf16.mxu1 %v6071_v46  ;;  %v6089_v46 = vpack.c.bf16 %v985_v36, %v984_v35  ;;  %v1010_v32 = vld [vmem:[#allocation5 + $0x6e0] sm:$0xff]  ;;  %v1011_v33 = vld [vmem:[#allocation5 + $0x6e8] sm:$0xff]  ;;  %v1024_v35 = vld [vmem:[#allocation5 + $0x750] sm:$0xff] }
  0x8f   :  { %6042 = vmatpush3.bf16.msra.mxu0 %v6041_v49  ;;  %v227_v49 = vcvt.s32.f32 %v155_v41  ;;  %v229_v50 = vcvt.s32.f32 %v157_v42  ;;  %v1025_v36 = vld [vmem:[#allocation5 + $0x758] sm:$0xff]  ;;  %v1043_v39 = vld [vmem:[#allocation5 + $0x7e8] sm:$0xff]  ;;  %v156_v41 = vand.u32 255, %v84_v26  ;;  %v6107_v27 = vpack.c.bf16 %v1011_v33, %v1010_v32  ;;  %v994_v42 = vld [vmem:[#allocation5 + $0x660] sm:$0xff] }
  0x90   :  { %6044 = vmatprep.subr.bf16.mxu0 %v6043_v53  ;;  %v987_v53 = vld [vmem:[#allocation5 + $0x628] sm:$0xff]  ;;  %v6137_v44 = vpack.c.bf16 %v1025_v36, %v1024_v35  ;;  %v1012_v45 = vld [vmem:[#allocation5 + $0x6f0] sm:$0xff]  ;;  %v1026_v48 = vld [vmem:[#allocation5 + $0x760] sm:$0xff]  ;;  %vm298_vm6 = vcmp.ne.f32.partialorder %v226_v40, 0.0  ;;  %vm370_vm7 = vcmp.ne.f32.partialorder %v226_v40, 144.0  ;;  %vm514_vm9 = vcmp.ne.f32.partialorder %v226_v40, 109.0 }
  0x91   :  { %6074 = vmatpush3.bf16.msra.mxu1 %v6073_v57  ;;  %v1005_v57 = vld [vmem:[#allocation5 + $0x6b8] sm:$0xff]  ;;  %vm299_vm12 = vcmp.ne.f32.partialorder %v227_v49, 0.0  ;;  %vm371_vm13 = vcmp.ne.f32.partialorder %v227_v49, 144.0  ;;  %vm515_vm14 = vcmp.ne.f32.partialorder %v227_v49, 109.0  ;;  %vm301_vm1 = vcmp.ne.f32.partialorder %v229_v50, 0.0  ;;  %v1027_v49 = vld [vmem:[#allocation5 + $0x768] sm:$0xff]  ;;  %vm7299_vm8 = vmand %vm298_vm6, %vm370_vm7 }
  0x92   :  { %6076 = vmatprep.subr.bf16.mxu1 %v6075_v61  ;;  %vm443_vm15 = vmand %vm299_vm12, %vm371_vm13  ;;  %v6093_v61 = vpack.c.bf16 %v987_v53, %v986_v52  ;;  %vm373_vm2 = vcmp.ne.f32.partialorder %v229_v50, 144.0  ;;  %vm517_vm3 = vcmp.ne.f32.partialorder %v229_v50, 109.0  ;;  %v1045_v52 = vld [vmem:[#allocation5 + $0x7f8] sm:$0xff]  ;;  %v228_v53 = vcvt.s32.f32 %v156_v41  ;;  %v1028_v59 = vld [vmem:[#allocation5 + $0x770] sm:$0xff] }
  0x93   :  { %6046 = vmatpush3.bf16.msra.mxu0 %v6045_v0  ;;  %vm587_vm0 = vmand %vm443_vm15, %vm515_vm14  ;;  %v6095_v0 = vpack.c.bf16 %v1005_v57, %v1004_v56  ;;  %v996_v57 = vld [vmem:[#allocation5 + $0x670] sm:$0xff]  ;;  %v6141_v62 = vpack.c.bf16 %v1027_v49, %v1026_v48  ;;  %v1029_v63 = vld [vmem:[#allocation5 + $0x778] sm:$0xff] }
  0x94   :  { %6048 = vmatprep.subr.bf16.mxu0 %v6047_v4  ;;  %v1006_v4 = vld [vmem:[#allocation5 + $0x6c0] sm:$0xff]  ;;  %vm445_vm4 = vmand %vm301_vm1, %vm373_vm2  ;;  %v1063_v1 = vld [vmem:[#allocation5 + $0x888] sm:$0xff]  ;;  %v6145_v14 = vpack.c.bf16 %v1029_v63, %v1028_v59  ;;  %vm516_vm14 = vcmp.ne.f32.partialorder %v228_v53, 109.0 }
  0x95   :  { %6078 = vmatpush3.bf16.msra.mxu1 %v6077_v7  ;;  %v1020_v7 = vld [vmem:[#allocation5 + $0x730] sm:$0xff]  ;;  %vm589_vm5 = vmand %vm445_vm4, %vm517_vm3  ;;  %v1066_v32 = vld [vmem:[#allocation5 + $0x8a0] sm:$0xff] }
  0x96   :  { %6080 = vmatprep.subr.bf16.mxu1 %v6079_v10  ;;  %v1038_v10 = vld [vmem:[#allocation5 + $0x7c0] sm:$0xff]  ;;  %v6129_v16 = vpack.c.bf16 %v1021_v8, %v1020_v7  ;;  %vm7306_vm12 = vmand %vm7299_vm8, %vm514_vm9  ;;  %v1048_v26 = vld [vmem:[#allocation5 + $0x810] sm:$0xff] }
  0x97   :  { %6050 = vmatpush3.bf16.msra.mxu0 %v6049_v13  ;;  %v6099_v13 = vpack.c.bf16 %v1007_v5, %v1006_v4  ;;  %v6131_v19 = vpack.c.bf16 %v1039_v11, %v1038_v10  ;;  %v1094_v4 = vld [vmem:[#allocation5 + $0x980] sm:$0xff]  ;;  %v1095_v5 = vld [vmem:[#allocation5 + $0x988] sm:$0xff]  ;;  %v1080_v35 = vld [vmem:[#allocation5 + $0x910] sm:$0xff] }
  0x98   :  { %6084 = vmatprep.subr.bf16.mxu0 %v6083_v17  ;;  %v1008_v17 = vld [vmem:[#allocation5 + $0x6d0] sm:$0xff]  ;;  %v1046_v10 = vld [vmem:[#allocation5 + $0x800] sm:$0xff]  ;;  %v1047_v11 = vld [vmem:[#allocation5 + $0x808] sm:$0xff] }
  0x99   :  { %6082 = vmatpush3.bf16.msra.mxu1 %v6081_v20  ;;  %v1022_v20 = vld [vmem:[#allocation5 + $0x740] sm:$0xff]  ;;  %v6103_v28 = vpack.c.bf16 %v1009_v18, %v1008_v17  ;;  %v1064_v17 = vld [vmem:[#allocation5 + $0x890] sm:$0xff]  ;;  %v1065_v18 = vld [vmem:[#allocation5 + $0x898] sm:$0xff] }
  0x9a   :  { %4568 = vmatmul.mubr.msk.f32.vlgmr.msra.gmra.mrb[4].mxu0 %vm7267_vm10, %v7149_v55  ;;  %6116 = vmatprep.subr.bf16.mxu1 %v6115_v24  ;;  %v1041_v24 = vld [vmem:[#allocation5 + $0x7d8] sm:$0xff]  ;;  %v6133_v31 = vpack.c.bf16 %v1023_v21, %v1022_v20  ;;  %vm300_vm10 = vcmp.ne.f32.partialorder %v228_v53, 0.0  ;;  %v1078_v20 = vld [vmem:[#allocation5 + $0x900] sm:$0xff]  ;;  %v1079_v21 = vld [vmem:[#allocation5 + $0x908] sm:$0xff]  ;;  %v6151_v25 = vpack.c.bf16 %v1065_v18, %v1064_v17 }
  0x9b   :  { %6086 = vmatpush3.bf16.msra.mxu0 %v6085_v29  ;;  %4571 = vmatprep.mubr.msk.f32.mxu0 %vm587_vm0, %v7149_v55  ;;  %v992_v29 = vld [vmem:[#allocation5 + $0x650] sm:$0xff]  ;;  %v1067_v33 = vld [vmem:[#allocation5 + $0x8a8] sm:$0xff]  ;;  %v1081_v36 = vld [vmem:[#allocation5 + $0x918] sm:$0xff] }
  0x9c   :  { %4570 = vmatmul.mubr.msk.f32.vlgmr.msra.gmra.mrb[4].mxu1 %vm7276_vm11, %v7149_v55  ;;  %6088 = vmatprep.subr.bf16.mxu0 %v6087_v34  ;;  %v6135_v34 = vpack.c.bf16 %v1041_v24, %v1040_v23  ;;  %v6105_v37 = vpack.c.bf16 %v993_v30, %v992_v29  ;;  %vm372_vm11 = vcmp.ne.f32.partialorder %v228_v53, 144.0  ;;  %v1096_v23 = vld [vmem:[#allocation5 + $0x990] sm:$0xff]  ;;  %v1097_v24 = vld [vmem:[#allocation5 + $0x998] sm:$0xff]  ;;  %v6155_v40 = vpack.c.bf16 %v1067_v33, %v1066_v32  ;;  %v1050_v41 = vld [vmem:[#allocation5 + $0x820] sm:$0xff] }
  0x9d   :  { %6118 = vmatpush3.bf16.msra.mxu1 %v6117_v38  ;;  %4573 = vmatprep.mubr.msk.f32.mxu1 %vm589_vm5, %v7149_v55  ;;  %v1042_v38 = vld [vmem:[#allocation5 + $0x7e0] sm:$0xff]  ;;  %vm7311_vm13 = vmand %vm300_vm10, %vm372_vm11  ;;  %v1100_v49 = vld [vmem:[#allocation5 + $0x9b0] sm:$0xff] }
  0x9e   :  { %6120 = vmatprep.subr.bf16.mxu1 %v6119_v43  ;;  %v995_v43 = vld [vmem:[#allocation5 + $0x668] sm:$0xff]  ;;  %v6139_v47 = vpack.c.bf16 %v1043_v39, %v1042_v38  ;;  %vm7322_vm6 = vmand %vm7311_vm13, %vm516_vm14  ;;  %v1098_v38 = vld [vmem:[#allocation5 + $0x9a0] sm:$0xff] }
  0x9f   :  { %6090 = vmatpush3.bf16.msra.mxu0 %v6089_v46  ;;  %v1013_v46 = vld [vmem:[#allocation5 + $0x6f8] sm:$0xff]  ;;  %v6109_v50 = vpack.c.bf16 %v995_v43, %v994_v42  ;;  %v1099_v39 = vld [vmem:[#allocation5 + $0x9a8] sm:$0xff]  ;;  %v6185_v42 = vpack.c.bf16 %v1081_v36, %v1080_v35  ;;  %v1068_v43 = vld [vmem:[#allocation5 + $0x8b0] sm:$0xff] }
  0xa0   :  { %6092 = vmatprep.subr.bf16.mxu0 %v6091_v51  ;;  %v1044_v51 = vld [vmem:[#allocation5 + $0x7f0] sm:$0xff]  ;;  %v6111_v56 = vpack.c.bf16 %v1013_v46, %v1012_v45  ;;  %v6187_v45 = vpack.c.bf16 %v1099_v39, %v1098_v38  ;;  %v1082_v46 = vld [vmem:[#allocation5 + $0x920] sm:$0xff]  ;;  %v1053_v53 = vld [vmem:[#allocation5 + $0x838] sm:$0xff] }
  0xa1   :  { %6122 = vmatpush3.bf16.msra.mxu1 %v6121_v54  ;;  %v7293_v54 = vld [vmem:[#allocation2 + $0x20] sm:$0xff]  ;;  %v6143_v2 = vpack.c.bf16 %v1045_v52, %v1044_v51  ;;  %v1107_v32 = vld [vmem:[#allocation5 + $0x9e8] sm:$0xff]  ;;  %v1058_v35 = vld [vmem:[#allocation5 + $0x860] sm:$0xff] }
  0xa2   :  { %6124 = vmatprep.subr.bf16.mxu1 %v6123_v58  ;;  %v997_v58 = vld [vmem:[#allocation5 + $0x678] sm:$0xff]  ;;  %v87_v60 = vunpack.c.1.s8 %v7293_v54  ;;  %v1052_v52 = vld [vmem:[#allocation5 + $0x830] sm:$0xff]  ;;  %v88_v15 = vunpack.c.2.s8 %v7293_v54  ;;  %v1059_v36 = vld [vmem:[#allocation5 + $0x868] sm:$0xff] }
  0xa3   :  { %6094 = vmatpush3.bf16.msra.mxu0 %v6093_v61  ;;  %v89_v61 = vunpack.c.3.s8 %v7293_v54  ;;  %v6113_v8 = vpack.c.bf16 %v997_v58, %v996_v57  ;;  %v1070_v57 = vld [vmem:[#allocation5 + $0x8c0] sm:$0xff]  ;;  %v1071_v58 = vld [vmem:[#allocation5 + $0x8c8] sm:$0xff]  ;;  %v6161_v63 = vpack.c.bf16 %v1053_v53, %v1052_v52  ;;  %v1056_v18 = vld [vmem:[#allocation5 + $0x850] sm:$0xff] }
  0xa4   :  { %6096 = vmatprep.subr.bf16.mxu0 %v6095_v0  ;;  %v1062_v0 = vld [vmem:[#allocation5 + $0x880] sm:$0xff]  ;;  %v160_v33 = vand.u32 255, %v88_v15  ;;  %v1076_v39 = vld [vmem:[#allocation5 + $0x8f0] sm:$0xff]  ;;  %v1167_v53 = vld [vmem:[#allocation5 + $0xbc8] sm:$0xff] }
  0xa5   :  { %6126 = vmatpush3.bf16.msra.mxu1 %v6125_v3  ;;  %v161_v7 = vand.u32 255, %v89_v61  ;;  %v1085_v61 = vld [vmem:[#allocation5 + $0x938] sm:$0xff]  ;;  %v1054_v3 = vld [vmem:[#allocation5 + $0x840] sm:$0xff] }
  0xa6   :  { %6128 = vmatprep.subr.bf16.mxu1 %v6127_v6  ;;  %v159_v6 = vand.u32 255, %v87_v60  ;;  %v1084_v60 = vld [vmem:[#allocation5 + $0x930] sm:$0xff] }
  0xa7   :  { %6098 = vmatpush3.bf16.msra.mxu0 %v6097_v9  ;;  %v6147_v9 = vpack.c.bf16 %v1063_v1, %v1062_v0  ;;  %v1102_v0 = vld [vmem:[#allocation5 + $0x9c0] sm:$0xff]  ;;  %v1103_v1 = vld [vmem:[#allocation5 + $0x9c8] sm:$0xff] }
  0xa8   :  { %6100 = vmatprep.subr.bf16.mxu0 %v6099_v13  ;;  %v231_v12 = vcvt.s32.f32 %v159_v6  ;;  %v233_v13 = vcvt.s32.f32 %v161_v7  ;;  %v1072_v6 = vld [vmem:[#allocation5 + $0x8d0] sm:$0xff]  ;;  %v1073_v7 = vld [vmem:[#allocation5 + $0x8d8] sm:$0xff] }
  0xa9   :  { %6130 = vmatpush3.bf16.msra.mxu1 %v6129_v16  ;;  %v6179_v16 = vpack.c.bf16 %v1095_v5, %v1094_v4  ;;  %v1055_v4 = vld [vmem:[#allocation5 + $0x848] sm:$0xff]  ;;  %v6193_v5 = vpack.c.bf16 %v1085_v61, %v1084_v60  ;;  %v6167_v17 = vpack.c.bf16 %v1073_v7, %v1072_v6  ;;  %v1093_v60 = vld [vmem:[#allocation5 + $0x978] sm:$0xff] }
  0xaa   :  { %6132 = vmatprep.subr.bf16.mxu1 %v6131_v19  ;;  %vm303_vm15 = vcmp.ne.f32.partialorder %v231_v12, 0.0  ;;  %vm375_vm0 = vcmp.ne.f32.partialorder %v231_v12, 144.0  ;;  %vm519_vm1 = vcmp.ne.f32.partialorder %v231_v12, 109.0  ;;  %vm305_vm4 = vcmp.ne.f32.partialorder %v233_v13, 0.0  ;;  %v1057_v19 = vld [vmem:[#allocation5 + $0x858] sm:$0xff] }
  0xab   :  { %6102 = vmatpush3.bf16.msra.mxu0 %v6101_v22  ;;  %v6149_v22 = vpack.c.bf16 %v1047_v11, %v1046_v10  ;;  %vm447_vm2 = vmand %vm303_vm15, %vm375_vm0  ;;  %vm377_vm5 = vcmp.ne.f32.partialorder %v233_v13, 144.0  ;;  %vm521_vm7 = vcmp.ne.f32.partialorder %v233_v13, 109.0  ;;  %v1087_v10 = vld [vmem:[#allocation5 + $0x948] sm:$0xff]  ;;  %v6165_v12 = vpack.c.bf16 %v1055_v4, %v1054_v3  ;;  %v1104_v13 = vld [vmem:[#allocation5 + $0x9d0] sm:$0xff] }
  0xac   :  { %6104 = vmatprep.subr.bf16.mxu0 %v6103_v28  ;;  %v1049_v28 = vld [vmem:[#allocation5 + $0x818] sm:$0xff]  ;;  %vm7315_vm3 = vmand %vm447_vm2, %vm519_vm1  ;;  %v6169_v30 = vpack.c.bf16 %v1057_v19, %v1056_v18  ;;  %v1111_v3 = vld [vmem:[#allocation5 + $0xa08] sm:$0xff] }
  0xad   :  { %6134 = vmatpush3.bf16.msra.mxu1 %v6133_v31  ;;  %v6181_v31 = vpack.c.bf16 %v1079_v21, %v1078_v20  ;;  %vm449_vm8 = vmand %vm305_vm4, %vm377_vm5  ;;  %v1129_v6 = vld [vmem:[#allocation5 + $0xa98] sm:$0xff]  ;;  %v1112_v18 = vld [vmem:[#allocation5 + $0xa10] sm:$0xff] }
  0xae   :  { %6136 = vmatprep.subr.bf16.mxu1 %v6135_v34  ;;  %v6183_v34 = vpack.c.bf16 %v1097_v24, %v1096_v23  ;;  %vm593_vm9 = vmand %vm449_vm8, %vm521_vm7  ;;  %v1074_v23 = vld [vmem:[#allocation5 + $0x8e0] sm:$0xff]  ;;  %v1075_v24 = vld [vmem:[#allocation5 + $0x8e8] sm:$0xff] }
  0xaf   :  { %6106 = vmatpush3.bf16.msra.mxu0 %v6105_v37  ;;  %v6153_v37 = vpack.c.bf16 %v1049_v28, %v1048_v26  ;;  %v1088_v26 = vld [vmem:[#allocation5 + $0x950] sm:$0xff]  ;;  %v1089_v28 = vld [vmem:[#allocation5 + $0x958] sm:$0xff] }
  0xb0   :  { %6108 = vmatprep.subr.bf16.mxu0 %v6107_v27  ;;  %v1051_v27 = vld [vmem:[#allocation5 + $0x828] sm:$0xff]  ;;  %v6201_v38 = vpack.c.bf16 %v1089_v28, %v1088_v26  ;;  %v1113_v19 = vld [vmem:[#allocation5 + $0xa18] sm:$0xff] }
  0xb1   :  { %6138 = vmatpush3.bf16.msra.mxu1 %v6137_v44  ;;  %v1069_v44 = vld [vmem:[#allocation5 + $0x8b8] sm:$0xff]  ;;  %v6157_v48 = vpack.c.bf16 %v1051_v27, %v1050_v41  ;;  %v1090_v27 = vld [vmem:[#allocation5 + $0x960] sm:$0xff]  ;;  %v6217_v28 = vpack.c.bf16 %v1113_v19, %v1112_v18 }
  0xb2   :  { %6140 = vmatprep.subr.bf16.mxu1 %v6139_v47  ;;  %v1083_v47 = vld [vmem:[#allocation5 + $0x928] sm:$0xff]  ;;  %v6159_v51 = vpack.c.bf16 %v1069_v44, %v1068_v43  ;;  %v6173_v44 = vpack.c.bf16 %v1059_v36, %v1058_v35  ;;  %v1145_v26 = vld [vmem:[#allocation5 + $0xb18] sm:$0xff] }
  0xb3   :  { %6110 = vmatpush3.bf16.msra.mxu0 %v6109_v50  ;;  %v1101_v50 = vld [vmem:[#allocation5 + $0x9b8] sm:$0xff] }
  0xb4   :  { %6112 = vmatprep.subr.bf16.mxu0 %v6111_v56  ;;  %v6189_v56 = vpack.c.bf16 %v1083_v47, %v1082_v46  ;;  %v6191_v59 = vpack.c.bf16 %v1101_v50, %v1100_v49  ;;  %v1109_v46 = vld [vmem:[#allocation5 + $0x9f8] sm:$0xff]  ;;  %v232_v47 = vcvt.s32.f32 %v160_v33  ;;  %v1060_v49 = vld [vmem:[#allocation5 + $0x870] sm:$0xff] }
  0xb5   :  { %6142 = vmatpush3.bf16.msra.mxu1 %v6141_v62  ;;  %v86_v62 = vunpack.c.0.s8 %v7293_v54  ;;  %v1061_v50 = vld [vmem:[#allocation5 + $0x878] sm:$0xff] }
  0xb6   :  { %6144 = vmatprep.subr.bf16.mxu1 %v6143_v2  ;;  %v6163_v2 = vpack.c.bf16 %v1071_v58, %v1070_v57  ;;  %v1127_v57 = vld [vmem:[#allocation5 + $0xa88] sm:$0xff]  ;;  %v6177_v61 = vpack.c.bf16 %v1061_v50, %v1060_v49  ;;  %vm304_vm0 = vcmp.ne.f32.partialorder %v232_v47, 0.0  ;;  %vm376_vm1 = vcmp.ne.f32.partialorder %v232_v47, 144.0  ;;  %v1133_v35 = vld [vmem:[#allocation5 + $0xab8] sm:$0xff] }
  0xb7   :  { %6114 = vmatpush3.bf16.msra.mxu0 %v6113_v8  ;;  %v6195_v8 = vpack.c.bf16 %v1103_v1, %v1102_v0  ;;  %v158_v11 = vand.u32 255, %v86_v62  ;;  %v1158_v62 = vld [vmem:[#allocation5 + $0xb80] sm:$0xff]  ;;  %vm7365_vm7 = vmand %vm304_vm0, %vm376_vm1  ;;  %vm520_vm8 = vcmp.ne.f32.partialorder %v232_v47, 109.0  ;;  %v1149_v49 = vld [vmem:[#allocation5 + $0xb38] sm:$0xff] }
  0xb8   :  { %6148 = vmatprep.subr.bf16.mxu0 %v6147_v9  ;;  %v1086_v9 = vld [vmem:[#allocation5 + $0x940] sm:$0xff]  ;;  %v1153_v18 = vld [vmem:[#allocation5 + $0xb58] sm:$0xff] }
  0xb9   :  { %6146 = vmatpush3.bf16.msra.mxu1 %v6145_v14  ;;  %v1105_v14 = vld [vmem:[#allocation5 + $0x9d8] sm:$0xff]  ;;  %v230_v29 = vcvt.s32.f32 %v158_v11  ;;  %v1143_v11 = vld [vmem:[#allocation5 + $0xb08] sm:$0xff]  ;;  %v1150_v0 = vld [vmem:[#allocation5 + $0xb40] sm:$0xff] }
  0xba   :  { %4572 = vmatmul.mubr.msk.f32.vlgmr.msra.gmra.mrb[6].mxu0 %vm7306_vm12, %v7149_v55  ;;  %6180 = vmatprep.subr.bf16.mxu1 %v6179_v16  ;;  %v7341_v16 = vld [vmem:[#allocation2 + $0x28] sm:$0xff] }
  0xbb   :  { %6150 = vmatpush3.bf16.msra.mxu0 %v6149_v22  ;;  %4575 = vmatprep.mubr.msk.f32.mxu0 %vm7315_vm3, %v7149_v55  ;;  %v91_v20 = vunpack.c.1.s8 %v7341_v16  ;;  %v93_v21 = vunpack.c.3.s8 %v7341_v16  ;;  %v6197_v22 = vpack.c.bf16 %v1087_v10, %v1086_v9  ;;  %vm302_vm10 = vcmp.ne.f32.partialorder %v230_v29, 0.0  ;;  %v1142_v10 = vld [vmem:[#allocation5 + $0xb00] sm:$0xff]  ;;  %v1120_v9 = vld [vmem:[#allocation5 + $0xa50] sm:$0xff] }
  0xbc   :  { %4574 = vmatmul.mubr.msk.f32.vlgmr.msra.gmra.mrb[6].mxu1 %vm7322_vm6, %v7149_v55  ;;  %6152 = vmatprep.subr.bf16.mxu0 %v6151_v25  ;;  %v6199_v25 = vpack.c.bf16 %v1105_v14, %v1104_v13  ;;  %vm374_vm11 = vcmp.ne.f32.partialorder %v230_v29, 144.0  ;;  %vm518_vm13 = vcmp.ne.f32.partialorder %v230_v29, 109.0  ;;  %v1160_v13 = vld [vmem:[#allocation5 + $0xb90] sm:$0xff]  ;;  %v1161_v14 = vld [vmem:[#allocation5 + $0xb98] sm:$0xff]  ;;  %v1162_v29 = vld [vmem:[#allocation5 + $0xba0] sm:$0xff]  ;;  %v90_v50 = vunpack.c.0.s8 %v7341_v16 }
  0xbd   :  { %6182 = vmatpush3.bf16.msra.mxu1 %v6181_v31  ;;  %4577 = vmatprep.mubr.msk.f32.mxu1 %vm593_vm9, %v7149_v55  ;;  %v163_v54 = vand.u32 255, %v91_v20  ;;  %v1106_v31 = vld [vmem:[#allocation5 + $0x9e0] sm:$0xff]  ;;  %vm7346_vm12 = vmand %vm302_vm10, %vm374_vm11  ;;  %v92_v7 = vunpack.c.2.s8 %v7341_v16  ;;  %v1171_v16 = vld [vmem:[#allocation5 + $0xbe8] sm:$0xff] }
  0xbe   :  { %6184 = vmatprep.subr.bf16.mxu1 %v6183_v34  ;;  %v6171_v34 = vpack.c.bf16 %v1075_v24, %v1074_v23  ;;  %v6203_v41 = vpack.c.bf16 %v1107_v32, %v1106_v31  ;;  %vm7353_vm2 = vmand %vm7346_vm12, %vm518_vm13  ;;  %v1131_v23 = vld [vmem:[#allocation5 + $0xaa8] sm:$0xff]  ;;  %v6247_v24 = vpack.c.bf16 %v1161_v14, %v1160_v13  ;;  %v1114_v31 = vld [vmem:[#allocation5 + $0xa20] sm:$0xff] }
  0xbf   :  { %6154 = vmatpush3.bf16.msra.mxu0 %v6153_v37  ;;  %v165_v37 = vand.u32 255, %v93_v21  ;;  %v235_v43 = vcvt.s32.f32 %v163_v54  ;;  %vm592_vm12 = vmand %vm7365_vm7, %vm520_vm8  ;;  %v6245_v21 = vpack.c.bf16 %v1143_v11, %v1142_v10  ;;  %v1163_v54 = vld [vmem:[#allocation5 + $0xba8] sm:$0xff]  ;;  %v1121_v10 = vld [vmem:[#allocation5 + $0xa58] sm:$0xff] }
  0xc0   :  { %6156 = vmatprep.subr.bf16.mxu0 %v6155_v40  ;;  %v1077_v40 = vld [vmem:[#allocation5 + $0x8f8] sm:$0xff]  ;;  %v1115_v32 = vld [vmem:[#allocation5 + $0xa28] sm:$0xff]  ;;  %v6251_v36 = vpack.c.bf16 %v1163_v54, %v1162_v29  ;;  %v1138_v13 = vld [vmem:[#allocation5 + $0xae0] sm:$0xff] }
  0xc1   :  { %6186 = vmatpush3.bf16.msra.mxu1 %v6185_v42  ;;  %v1091_v42 = vld [vmem:[#allocation5 + $0x968] sm:$0xff]  ;;  %vm307_vm14 = vcmp.ne.f32.partialorder %v235_v43, 0.0  ;;  %vm379_vm15 = vcmp.ne.f32.partialorder %v235_v43, 144.0  ;;  %vm523_vm6 = vcmp.ne.f32.partialorder %v235_v43, 109.0  ;;  %v1117_v43 = vld [vmem:[#allocation5 + $0xa38] sm:$0xff]  ;;  %v1140_v54 = vld [vmem:[#allocation5 + $0xaf0] sm:$0xff] }
  0xc2   :  { %6188 = vmatprep.subr.bf16.mxu1 %v6187_v45  ;;  %v1108_v45 = vld [vmem:[#allocation5 + $0x9f0] sm:$0xff]  ;;  %v6205_v52 = vpack.c.bf16 %v1091_v42, %v1090_v27  ;;  %vm7359_vm5 = vmand %vm307_vm14, %vm379_vm15  ;;  %v1139_v14 = vld [vmem:[#allocation5 + $0xae8] sm:$0xff] }
  0xc3   :  { %6158 = vmatpush3.bf16.msra.mxu0 %v6157_v48  ;;  %v6175_v48 = vpack.c.bf16 %v1077_v40, %v1076_v39  ;;  %v6207_v58 = vpack.c.bf16 %v1109_v46, %v1108_v45  ;;  %vm7378_vm11 = vmand %vm7359_vm5, %vm523_vm6  ;;  %v6221_v39 = vpack.c.bf16 %v1115_v32, %v1114_v31  ;;  %v1164_v40 = vld [vmem:[#allocation5 + $0xbb0] sm:$0xff]  ;;  %v1134_v45 = vld [vmem:[#allocation5 + $0xac0] sm:$0xff] }
  0xc4   :  { %6160 = vmatprep.subr.bf16.mxu0 %v6159_v51  ;;  %v237_v51 = vcvt.s32.f32 %v165_v37  ;;  %v1146_v37 = vld [vmem:[#allocation5 + $0xb20] sm:$0xff]  ;;  %v1116_v42 = vld [vmem:[#allocation5 + $0xa30] sm:$0xff]  ;;  %v1135_v46 = vld [vmem:[#allocation5 + $0xac8] sm:$0xff] }
  0xc5   :  { %6190 = vmatpush3.bf16.msra.mxu1 %v6189_v56  ;;  %v1126_v56 = vld [vmem:[#allocation5 + $0xa80] sm:$0xff] }
  0xc6   :  { %6192 = vmatprep.subr.bf16.mxu1 %v6191_v59  ;;  %v1092_v59 = vld [vmem:[#allocation5 + $0x970] sm:$0xff]  ;;  %v6211_v1 = vpack.c.bf16 %v1127_v57, %v1126_v56  ;;  %vm309_vm3 = vcmp.ne.f32.partialorder %v237_v51, 0.0  ;;  %vm381_vm4 = vcmp.ne.f32.partialorder %v237_v51, 144.0  ;;  %vm525_vm10 = vcmp.ne.f32.partialorder %v237_v51, 109.0  ;;  %v7397_v56 = vld [vmem:[#allocation2 + $0x30] sm:$0xff] }
  0xc7   :  { %6162 = vmatpush3.bf16.msra.mxu0 %v6161_v63  ;;  %v1159_v63 = vld [vmem:[#allocation5 + $0xb88] sm:$0xff]  ;;  %v6209_v4 = vpack.c.bf16 %v1093_v60, %v1092_v59  ;;  %vm7371_vm9 = vmand %vm309_vm3, %vm381_vm4  ;;  %v6225_v51 = vpack.c.bf16 %v1117_v43, %v1116_v42  ;;  %v6227_v57 = vpack.c.bf16 %v1135_v46, %v1134_v45  ;;  %v97_v11 = vunpack.c.3.s8 %v7397_v56  ;;  %v1154_v32 = vld [vmem:[#allocation5 + $0xb60] sm:$0xff] }
  0xc8   :  { %6164 = vmatprep.subr.bf16.mxu0 %v6163_v2  ;;  %v1110_v2 = vld [vmem:[#allocation5 + $0xa00] sm:$0xff]  ;;  %vm597_vm13 = vmand %vm7371_vm9, %vm525_vm10  ;;  %v1119_v59 = vld [vmem:[#allocation5 + $0xa48] sm:$0xff] }
  0xc9   :  { %6194 = vmatpush3.bf16.msra.mxu1 %v6193_v5  ;;  %v1128_v5 = vld [vmem:[#allocation5 + $0xa90] sm:$0xff]  ;;  %v1191_v45 = vld [vmem:[#allocation5 + $0xc88] sm:$0xff] }
  0xca   :  { %6196 = vmatprep.subr.bf16.mxu1 %v6195_v8  ;;  %v6243_v8 = vpack.c.bf16 %v1159_v63, %v1158_v62  ;;  %v1137_v62 = vld [vmem:[#allocation5 + $0xad8] sm:$0xff]  ;;  %v1231_v43 = vld [vmem:[#allocation5 + $0xdc8] sm:$0xff] }
  0xcb   :  { %6166 = vmatpush3.bf16.msra.mxu0 %v6165_v12  ;;  %v6213_v12 = vpack.c.bf16 %v1111_v3, %v1110_v2  ;;  %v162_v2 = vand.u32 255, %v90_v50  ;;  %v95_v3 = vunpack.c.1.s8 %v7397_v56  ;;  %v1222_v50 = vld [vmem:[#allocation5 + $0xd80] sm:$0xff] }
  0xcc   :  { %6168 = vmatprep.subr.bf16.mxu0 %v6167_v17  ;;  %v6215_v17 = vpack.c.bf16 %v1129_v6, %v1128_v5  ;;  %v1168_v5 = vld [vmem:[#allocation5 + $0xbd0] sm:$0xff]  ;;  %v1169_v6 = vld [vmem:[#allocation5 + $0xbd8] sm:$0xff] }
  0xcd   :  { %6198 = vmatpush3.bf16.msra.mxu1 %v6197_v22  ;;  %v1130_v22 = vld [vmem:[#allocation5 + $0xaa0] sm:$0xff]  ;;  %v6263_v15 = vpack.c.bf16 %v1169_v6, %v1168_v5  ;;  %v234_v19 = vcvt.s32.f32 %v162_v2  ;;  %v167_v20 = vand.u32 255, %v95_v3  ;;  %v1207_v2 = vld [vmem:[#allocation5 + $0xd08] sm:$0xff]  ;;  %v1225_v5 = vld [vmem:[#allocation5 + $0xd98] sm:$0xff] }
  0xce   :  { %6200 = vmatprep.subr.bf16.mxu1 %v6199_v25  ;;  %v1144_v25 = vld [vmem:[#allocation5 + $0xb10] sm:$0xff] }
  0xcf   :  { %6170 = vmatpush3.bf16.msra.mxu0 %v6169_v30  ;;  %v6219_v30 = vpack.c.bf16 %v1131_v23, %v1130_v22  ;;  %v6249_v33 = vpack.c.bf16 %v1145_v26, %v1144_v25  ;;  %v1170_v22 = vld [vmem:[#allocation5 + $0xbe0] sm:$0xff]  ;;  %v164_v23 = vand.u32 255, %v92_v7  ;;  %v1123_v26 = vld [vmem:[#allocation5 + $0xa68] sm:$0xff]  ;;  %vm306_vm14 = vcmp.ne.f32.partialorder %v234_v19, 0.0 }
  0xd0   :  { %6172 = vmatprep.subr.bf16.mxu0 %v6171_v34  ;;  %v1132_v34 = vld [vmem:[#allocation5 + $0xab0] sm:$0xff]  ;;  %v1122_v25 = vld [vmem:[#allocation5 + $0xa60] sm:$0xff]  ;;  %v6267_v31 = vpack.c.bf16 %v1171_v16, %v1170_v22  ;;  %vm378_vm15 = vcmp.ne.f32.partialorder %v234_v19, 144.0  ;;  %vm522_vm1 = vcmp.ne.f32.partialorder %v234_v19, 109.0  ;;  %v1179_v16 = vld [vmem:[#allocation5 + $0xc28] sm:$0xff] }
  0xd1   :  { %6202 = vmatpush3.bf16.msra.mxu1 %v6201_v38  ;;  %v1147_v38 = vld [vmem:[#allocation5 + $0xb28] sm:$0xff]  ;;  %v6223_v27 = vpack.c.bf16 %v1133_v35, %v1132_v34  ;;  %v239_v34 = vcvt.s32.f32 %v167_v20  ;;  %v6237_v35 = vpack.c.bf16 %v1123_v26, %v1122_v25  ;;  %vm7403_vm0 = vmand %vm306_vm14, %vm378_vm15  ;;  %v1226_v19 = vld [vmem:[#allocation5 + $0xda0] sm:$0xff] }
  0xd2   :  { %6204 = vmatprep.subr.bf16.mxu1 %v6203_v41  ;;  %v1165_v41 = vld [vmem:[#allocation5 + $0xbb8] sm:$0xff]  ;;  %vm7410_vm6 = vmand %vm7403_vm0, %vm522_vm1  ;;  %v1227_v20 = vld [vmem:[#allocation5 + $0xda8] sm:$0xff] }
  0xd3   :  { %6174 = vmatpush3.bf16.msra.mxu0 %v6173_v44  ;;  %v6253_v44 = vpack.c.bf16 %v1147_v38, %v1146_v37  ;;  %v6255_v47 = vpack.c.bf16 %v1165_v41, %v1164_v40  ;;  %v1173_v37 = vld [vmem:[#allocation5 + $0xbf8] sm:$0xff]  ;;  %v236_v38 = vcvt.s32.f32 %v164_v23  ;;  %v1124_v40 = vld [vmem:[#allocation5 + $0xa70] sm:$0xff]  ;;  %vm383_vm3 = vcmp.ne.f32.partialorder %v239_v34, 144.0  ;;  %v1178_v22 = vld [vmem:[#allocation5 + $0xc20] sm:$0xff] }
  0xd4   :  { %6176 = vmatprep.subr.bf16.mxu0 %v6175_v48  ;;  %v1148_v48 = vld [vmem:[#allocation5 + $0xb30] sm:$0xff]  ;;  %v1125_v41 = vld [vmem:[#allocation5 + $0xa78] sm:$0xff]  ;;  %vm527_vm10 = vcmp.ne.f32.partialorder %v239_v34, 109.0  ;;  %v6315_v26 = vpack.c.bf16 %v1227_v20, %v1226_v19 }
  0xd5   :  { %6206 = vmatpush3.bf16.msra.mxu1 %v6205_v52  ;;  %v1166_v52 = vld [vmem:[#allocation5 + $0xbc0] sm:$0xff]  ;;  %v6257_v60 = vpack.c.bf16 %v1149_v49, %v1148_v48  ;;  %v1157_v48 = vld [vmem:[#allocation5 + $0xb78] sm:$0xff]  ;;  %v6241_v49 = vpack.c.bf16 %v1125_v41, %v1124_v40  ;;  %vm308_vm4 = vcmp.ne.f32.partialorder %v236_v38, 0.0  ;;  %vm380_vm5 = vcmp.ne.f32.partialorder %v236_v38, 144.0  ;;  %v1204_v20 = vld [vmem:[#allocation5 + $0xcf0] sm:$0xff] }
  0xd6   :  { %6208 = vmatprep.subr.bf16.mxu1 %v6207_v58  ;;  %v1118_v58 = vld [vmem:[#allocation5 + $0xa40] sm:$0xff]  ;;  %v6259_v63 = vpack.c.bf16 %v1167_v53, %v1166_v52  ;;  %v1197_v25 = vld [vmem:[#allocation5 + $0xcb8] sm:$0xff]  ;;  %v94_v41 = vunpack.c.0.s8 %v7397_v56 }
  0xd7   :  { %6178 = vmatpush3.bf16.msra.mxu0 %v6177_v61  ;;  %v1136_v61 = vld [vmem:[#allocation5 + $0xad0] sm:$0xff]  ;;  %v1213_v40 = vld [vmem:[#allocation5 + $0xd38] sm:$0xff]  ;;  %v1214_v52 = vld [vmem:[#allocation5 + $0xd40] sm:$0xff] }
  0xd8   :  { %6212 = vmatprep.subr.bf16.mxu0 %v6211_v1  ;;  %v1151_v1 = vld [vmem:[#allocation5 + $0xb48] sm:$0xff] }
  0xd9   :  { %6210 = vmatpush3.bf16.msra.mxu1 %v6209_v4  ;;  %v6229_v4 = vpack.c.bf16 %v1119_v59, %v1118_v58  ;;  %v1175_v58 = vld [vmem:[#allocation5 + $0xc08] sm:$0xff] }
  0xda   :  { %4576 = vmatmul.mubr.msk.f32.vlgmr.msra.gmra.mrb[8].mxu0 %vm7353_vm2, %v7149_v55  ;;  %6244 = vmatprep.subr.bf16.mxu1 %v6243_v8  ;;  %v6231_v8 = vpack.c.bf16 %v1137_v62, %v1136_v61  ;;  %vm311_vm2 = vcmp.ne.f32.partialorder %v239_v34, 0.0  ;;  %v1193_v61 = vld [vmem:[#allocation5 + $0xc98] sm:$0xff]  ;;  %v96_v62 = vunpack.c.2.s8 %v7397_v56  ;;  %v1235_v56 = vld [vmem:[#allocation5 + $0xde8] sm:$0xff] }
  0xdb   :  { %6214 = vmatpush3.bf16.msra.mxu0 %v6213_v12  ;;  %4579 = vmatprep.mubr.msk.f32.mxu0 %vm7378_vm11, %v7149_v55  ;;  %v6261_v12 = vpack.c.bf16 %v1151_v1, %v1150_v0  ;;  %vm7416_vm9 = vmand %vm311_vm2, %vm383_vm3  ;;  %v1206_v1 = vld [vmem:[#allocation5 + $0xd00] sm:$0xff]  ;;  %v1181_v34 = vld [vmem:[#allocation5 + $0xc38] sm:$0xff] }
  0xdc   :  { %4578 = vmatmul.mubr.msk.f32.vlgmr.msra.gmra.mrb[8].mxu1 %vm592_vm12, %v7149_v55  ;;  %6216 = vmatprep.subr.bf16.mxu0 %v6215_v17  ;;  %v1152_v17 = vld [vmem:[#allocation5 + $0xb50] sm:$0xff]  ;;  %vm7422_vm11 = vmand %vm308_vm4, %vm380_vm5  ;;  %vm524_vm12 = vcmp.ne.f32.partialorder %v236_v38, 109.0 }
  0xdd   :  { %6246 = vmatpush3.bf16.msra.mxu1 %v6245_v21  ;;  %4581 = vmatprep.mubr.msk.f32.mxu1 %vm597_vm13, %v7149_v55  ;;  %v6233_v21 = vpack.c.bf16 %v1121_v10, %v1120_v9  ;;  %v6265_v29 = vpack.c.bf16 %v1153_v18, %v1152_v17  ;;  %v1177_v9 = vld [vmem:[#allocation5 + $0xc18] sm:$0xff]  ;;  %vm7435_vm15 = vmand %vm7416_vm9, %vm527_vm10  ;;  %v1184_v0 = vld [vmem:[#allocation5 + $0xc50] sm:$0xff] }
  0xde   :  { %6248 = vmatprep.subr.bf16.mxu1 %v6247_v24  ;;  %v6235_v24 = vpack.c.bf16 %v1139_v14, %v1138_v13  ;;  %vm596_vm0 = vmand %vm7422_vm11, %vm524_vm12  ;;  %v1195_v13 = vld [vmem:[#allocation5 + $0xca8] sm:$0xff]  ;;  %v1209_v17 = vld [vmem:[#allocation5 + $0xd18] sm:$0xff] }
  0xdf   :  { %6218 = vmatpush3.bf16.msra.mxu0 %v6217_v28  ;;  %v169_v28 = vand.u32 255, %v97_v11  ;;  %v6309_v11 = vpack.c.bf16 %v1207_v2, %v1206_v1  ;;  %v1185_v1 = vld [vmem:[#allocation5 + $0xc58] sm:$0xff] }
  0xe0   :  { %6220 = vmatprep.subr.bf16.mxu0 %v6219_v30  ;;  %v1141_v30 = vld [vmem:[#allocation5 + $0xaf8] sm:$0xff] }
  0xe1   :  { %6250 = vmatpush3.bf16.msra.mxu1 %v6249_v33  ;;  %v1155_v33 = vld [vmem:[#allocation5 + $0xb68] sm:$0xff] }
  0xe2   :  { %6252 = vmatprep.subr.bf16.mxu1 %v6251_v36  ;;  %v1172_v36 = vld [vmem:[#allocation5 + $0xbf0] sm:$0xff]  ;;  %v6269_v42 = vpack.c.bf16 %v1155_v33, %v1154_v32 }
  0xe3   :  { %6222 = vmatpush3.bf16.msra.mxu0 %v6221_v39  ;;  %v6239_v39 = vpack.c.bf16 %v1141_v30, %v1140_v54  ;;  %v6271_v46 = vpack.c.bf16 %v1173_v37, %v1172_v36  ;;  %v6285_v54 = vpack.c.bf16 %v1179_v16, %v1178_v22  ;;  %v1228_v30 = vld [vmem:[#allocation5 + $0xdb0] sm:$0xff]  ;;  %v1198_v36 = vld [vmem:[#allocation5 + $0xcc0] sm:$0xff]  ;;  %v1199_v37 = vld [vmem:[#allocation5 + $0xcc8] sm:$0xff] }
  0xe4   :  { %6224 = vmatprep.subr.bf16.mxu0 %v6223_v27  ;;  %v241_v27 = vcvt.s32.f32 %v169_v28  ;;  %v1210_v28 = vld [vmem:[#allocation5 + $0xd20] sm:$0xff]  ;;  %v1180_v33 = vld [vmem:[#allocation5 + $0xc30] sm:$0xff] }
  0xe5   :  { %6254 = vmatpush3.bf16.msra.mxu1 %v6253_v44  ;;  %v1190_v44 = vld [vmem:[#allocation5 + $0xc80] sm:$0xff] }
  0xe6   :  { %6256 = vmatprep.subr.bf16.mxu1 %v6255_v47  ;;  %v1156_v47 = vld [vmem:[#allocation5 + $0xb70] sm:$0xff]  ;;  %v6275_v53 = vpack.c.bf16 %v1191_v45, %v1190_v44  ;;  %vm313_vm7 = vcmp.ne.f32.partialorder %v241_v27, 0.0  ;;  %vm385_vm8 = vcmp.ne.f32.partialorder %v241_v27, 144.0  ;;  %vm529_vm14 = vcmp.ne.f32.partialorder %v241_v27, 109.0  ;;  %v7454_v44 = vld [vmem:[#allocation2 + $0x38] sm:$0xff]  ;;  %v1218_v16 = vld [vmem:[#allocation5 + $0xd60] sm:$0xff] }
  0xe7   :  { %6226 = vmatpush3.bf16.msra.mxu0 %v6225_v51  ;;  %v1223_v51 = vld [vmem:[#allocation5 + $0xd88] sm:$0xff]  ;;  %v6273_v59 = vpack.c.bf16 %v1157_v48, %v1156_v47  ;;  %vm7428_vm13 = vmand %vm313_vm7, %vm385_vm8  ;;  %v6289_v27 = vpack.c.bf16 %v1181_v34, %v1180_v33  ;;  %v6291_v45 = vpack.c.bf16 %v1199_v37, %v1198_v36  ;;  %v101_v2 = vunpack.c.3.s8 %v7454_v44 }
  0xe8   :  { %6228 = vmatprep.subr.bf16.mxu0 %v6227_v57  ;;  %v1174_v57 = vld [vmem:[#allocation5 + $0xc00] sm:$0xff]  ;;  %vm601_vm1 = vmand %vm7428_vm13, %vm529_vm14  ;;  %v1183_v47 = vld [vmem:[#allocation5 + $0xc48] sm:$0xff] }
  0xe9   :  { %6258 = vmatpush3.bf16.msra.mxu1 %v6257_v60  ;;  %v1192_v60 = vld [vmem:[#allocation5 + $0xc90] sm:$0xff]  ;;  %v6277_v3 = vpack.c.bf16 %v1175_v58, %v1174_v57  ;;  %v166_v57 = vand.u32 255, %v94_v41  ;;  %v99_v58 = vunpack.c.1.s8 %v7454_v44  ;;  %v1255_v36 = vld [vmem:[#allocation5 + $0xe88] sm:$0xff]  ;;  %v1286_v41 = vld [vmem:[#allocation5 + $0xf80] sm:$0xff] }
  0xea   :  { %6260 = vmatprep.subr.bf16.mxu1 %v6259_v63  ;;  %v6307_v63 = vpack.c.bf16 %v1223_v51, %v1222_v50  ;;  %v6279_v7 = vpack.c.bf16 %v1193_v61, %v1192_v60  ;;  %v1201_v50 = vld [vmem:[#allocation5 + $0xcd8] sm:$0xff]  ;;  %v1232_v60 = vld [vmem:[#allocation5 + $0xdd0] sm:$0xff]  ;;  %v1295_v34 = vld [vmem:[#allocation5 + $0xfc8] sm:$0xff] }
  0xeb   :  { %6230 = vmatpush3.bf16.msra.mxu0 %v6229_v4  ;;  %v1224_v4 = vld [vmem:[#allocation5 + $0xd90] sm:$0xff]  ;;  %v1233_v61 = vld [vmem:[#allocation5 + $0xdd8] sm:$0xff]  ;;  %v171_v10 = vand.u32 255, %v99_v58 }
  0xec   :  { %6232 = vmatprep.subr.bf16.mxu0 %v6231_v8  ;;  %v1176_v8 = vld [vmem:[#allocation5 + $0xc10] sm:$0xff]  ;;  %v6311_v14 = vpack.c.bf16 %v1225_v5, %v1224_v4  ;;  %v1202_v4 = vld [vmem:[#allocation5 + $0xce0] sm:$0xff]  ;;  %v1203_v5 = vld [vmem:[#allocation5 + $0xce8] sm:$0xff]  ;;  %v6327_v6 = vpack.c.bf16 %v1233_v61, %v1232_v60 }
  0xed   :  { %6262 = vmatpush3.bf16.msra.mxu1 %v6261_v12  ;;  %v1194_v12 = vld [vmem:[#allocation5 + $0xca0] sm:$0xff]  ;;  %v6281_v18 = vpack.c.bf16 %v1177_v9, %v1176_v8  ;;  %v1217_v8 = vld [vmem:[#allocation5 + $0xd58] sm:$0xff]  ;;  %v238_v9 = vcvt.s32.f32 %v166_v57  ;;  %v1271_v57 = vld [vmem:[#allocation5 + $0xf08] sm:$0xff] }
  0xee   :  { %6264 = vmatprep.subr.bf16.mxu1 %v6263_v15  ;;  %v1208_v15 = vld [vmem:[#allocation5 + $0xd10] sm:$0xff]  ;;  %v1289_v60 = vld [vmem:[#allocation5 + $0xf98] sm:$0xff] }
  0xef   :  { %6234 = vmatpush3.bf16.msra.mxu0 %v6233_v21  ;;  %v6283_v21 = vpack.c.bf16 %v1195_v13, %v1194_v12  ;;  %v6313_v23 = vpack.c.bf16 %v1209_v17, %v1208_v15  ;;  %v1234_v12 = vld [vmem:[#allocation5 + $0xde0] sm:$0xff]  ;;  %v168_v13 = vand.u32 255, %v96_v62  ;;  %v1187_v17 = vld [vmem:[#allocation5 + $0xc68] sm:$0xff]  ;;  %vm310_vm2 = vcmp.ne.f32.partialorder %v238_v9, 0.0 }
  0xf0   :  { %6236 = vmatprep.subr.bf16.mxu0 %v6235_v24  ;;  %v1196_v24 = vld [vmem:[#allocation5 + $0xcb0] sm:$0xff]  ;;  %v1186_v15 = vld [vmem:[#allocation5 + $0xc60] sm:$0xff]  ;;  %v6331_v22 = vpack.c.bf16 %v1235_v56, %v1234_v12  ;;  %vm382_vm3 = vcmp.ne.f32.partialorder %v238_v9, 144.0  ;;  %vm526_vm5 = vcmp.ne.f32.partialorder %v238_v9, 109.0  ;;  %v1243_v56 = vld [vmem:[#allocation5 + $0xe28] sm:$0xff] }
  0xf1   :  { %6266 = vmatpush3.bf16.msra.mxu1 %v6265_v29  ;;  %v1211_v29 = vld [vmem:[#allocation5 + $0xd28] sm:$0xff]  ;;  %v6287_v32 = vpack.c.bf16 %v1197_v25, %v1196_v24  ;;  %v243_v24 = vcvt.s32.f32 %v171_v10  ;;  %v6301_v25 = vpack.c.bf16 %v1187_v17, %v1186_v15  ;;  %vm7460_vm4 = vmand %vm310_vm2, %vm382_vm3  ;;  %v1290_v9 = vld [vmem:[#allocation5 + $0xfa0] sm:$0xff] }
  0xf2   :  { %6268 = vmatprep.subr.bf16.mxu1 %v6267_v31  ;;  %v1229_v31 = vld [vmem:[#allocation5 + $0xdb8] sm:$0xff]  ;;  %vm7467_vm10 = vmand %vm7460_vm4, %vm526_vm5  ;;  %v1291_v10 = vld [vmem:[#allocation5 + $0xfa8] sm:$0xff] }
  0xf3   :  { %6238 = vmatpush3.bf16.msra.mxu0 %v6237_v35  ;;  %v6317_v35 = vpack.c.bf16 %v1211_v29, %v1210_v28  ;;  %v6319_v38 = vpack.c.bf16 %v1229_v31, %v1228_v30  ;;  %v1237_v28 = vld [vmem:[#allocation5 + $0xdf8] sm:$0xff]  ;;  %v240_v29 = vcvt.s32.f32 %v168_v13  ;;  %v1188_v30 = vld [vmem:[#allocation5 + $0xc70] sm:$0xff]  ;;  %vm387_vm7 = vcmp.ne.f32.partialorder %v243_v24, 144.0  ;;  %v1242_v12 = vld [vmem:[#allocation5 + $0xe20] sm:$0xff] }
  0xf4   :  { %6240 = vmatprep.subr.bf16.mxu0 %v6239_v39  ;;  %v1212_v39 = vld [vmem:[#allocation5 + $0xd30] sm:$0xff]  ;;  %v1189_v31 = vld [vmem:[#allocation5 + $0xc78] sm:$0xff]  ;;  %vm531_vm14 = vcmp.ne.f32.partialorder %v243_v24, 109.0  ;;  %v6379_v17 = vpack.c.bf16 %v1291_v10, %v1290_v9  ;;  %v4558_v10 = vld [vmem:[#allocation7] ss:$0 sm:$0xff] }
  0xf5   :  { %6270 = vmatpush3.bf16.msra.mxu1 %v6269_v42  ;;  %v1230_v42 = vld [vmem:[#allocation5 + $0xdc0] sm:$0xff]  ;;  %v6321_v48 = vpack.c.bf16 %v1213_v40, %v1212_v39  ;;  %v1221_v39 = vld [vmem:[#allocation5 + $0xd78] sm:$0xff]  ;;  %v6305_v40 = vpack.c.bf16 %v1189_v31, %v1188_v30  ;;  %vm312_vm8 = vcmp.ne.f32.partialorder %v240_v29, 0.0  ;;  %vm384_vm9 = vcmp.ne.f32.partialorder %v240_v29, 144.0 }
  0xf6   :  { %6272 = vmatprep.subr.bf16.mxu1 %v6271_v46  ;;  %v1182_v46 = vld [vmem:[#allocation5 + $0xc40] sm:$0xff]  ;;  %v6323_v51 = vpack.c.bf16 %v1231_v43, %v1230_v42  ;;  %v1261_v15 = vld [vmem:[#allocation5 + $0xeb8] sm:$0xff]  ;;  %v98_v31 = vunpack.c.0.s8 %v7454_v44 }
  0xf7   :  { %6242 = vmatpush3.bf16.msra.mxu0 %v6241_v49  ;;  %v1200_v49 = vld [vmem:[#allocation5 + $0xcd0] sm:$0xff]  ;;  %v1277_v30 = vld [vmem:[#allocation5 + $0xf38] sm:$0xff]  ;;  %v1278_v42 = vld [vmem:[#allocation5 + $0xf40] sm:$0xff] }
  0xf8   :  { %6276 = vmatprep.subr.bf16.mxu0 %v6275_v53  ;;  %v1215_v53 = vld [vmem:[#allocation5 + $0xd48] sm:$0xff] }
  0xf9   :  { %6274 = vmatpush3.bf16.msra.mxu1 %v6273_v59  ;;  %v6293_v59 = vpack.c.bf16 %v1183_v47, %v1182_v46  ;;  %v1239_v46 = vld [vmem:[#allocation5 + $0xe08] sm:$0xff] }
  0xfa   :  { %4580 = vmatmul.mubr.msk.f32.vlgmr.msra.gmra.mrb[10].mxu0 %vm7410_vm6, %v7149_v55  ;;  %6308 = vmatprep.subr.bf16.mxu1 %v6307_v63  ;;  %v6295_v63 = vpack.c.bf16 %v1201_v50, %v1200_v49  ;;  %vm315_vm6 = vcmp.ne.f32.partialorder %v243_v24, 0.0  ;;  %v1257_v49 = vld [vmem:[#allocation5 + $0xe98] sm:$0xff]  ;;  %v100_v50 = vunpack.c.2.s8 %v7454_v44  ;;  %v1299_v44 = vld [vmem:[#allocation5 + $0xfe8] sm:$0xff] }
  0xfb   :  { %6278 = vmatpush3.bf16.msra.mxu0 %v6277_v3  ;;  %4583 = vmatprep.mubr.msk.f32.mxu0 %vm7435_vm15, %v7149_v55  ;;  %v6325_v3 = vpack.c.bf16 %v1215_v53, %v1214_v52  ;;  %vm7473_vm13 = vmand %vm315_vm6, %vm387_vm7  ;;  %v1270_v53 = vld [vmem:[#allocation5 + $0xf00] sm:$0xff]  ;;  %v1245_v24 = vld [vmem:[#allocation5 + $0xe38] sm:$0xff] }
  0xfc   :  { %4582 = vmatmul.mubr.msk.f32.vlgmr.msra.gmra.mrb[10].mxu1 %vm596_vm0, %v7149_v55  ;;  %6280 = vmatprep.subr.bf16.mxu0 %v6279_v7  ;;  %v1216_v7 = vld [vmem:[#allocation5 + $0xd50] sm:$0xff]  ;;  %vm7479_vm15 = vmand %vm312_vm8, %vm384_vm9  ;;  %vm528_vm0 = vcmp.ne.f32.partialorder %v240_v29, 109.0 }
  0xfd   :  { %6310 = vmatpush3.bf16.msra.mxu1 %v6309_v11  ;;  %4585 = vmatprep.mubr.msk.f32.mxu1 %vm601_vm1, %v7149_v55  ;;  %v6297_v11 = vpack.c.bf16 %v1185_v1, %v1184_v0  ;;  %v6329_v19 = vpack.c.bf16 %v1217_v8, %v1216_v7  ;;  %v1241_v0 = vld [vmem:[#allocation5 + $0xe18] sm:$0xff]  ;;  %vm7492_vm3 = vmand %vm7473_vm13, %vm531_vm14  ;;  %v1248_v52 = vld [vmem:[#allocation5 + $0xe50] sm:$0xff] }
  0xfe   :  { %6312 = vmatprep.subr.bf16.mxu1 %v6311_v14  ;;  %v6299_v14 = vpack.c.bf16 %v1203_v5, %v1202_v4  ;;  %vm600_vm4 = vmand %vm7479_vm15, %vm528_vm0  ;;  %v1259_v4 = vld [vmem:[#allocation5 + $0xea8] sm:$0xff]  ;;  %v1273_v7 = vld [vmem:[#allocation5 + $0xf18] sm:$0xff] }
  0xff   :  { %6282 = vmatpush3.bf16.msra.mxu0 %v6281_v18  ;;  %v173_v18 = vand.u32 255, %v101_v2  ;;  %v6373_v2 = vpack.c.bf16 %v1271_v57, %v1270_v53  ;;  %v1249_v53 = vld [vmem:[#allocation5 + $0xe58] sm:$0xff] }
 0x100   :  { %6284 = vmatprep.subr.bf16.mxu0 %v6283_v21  ;;  %v1205_v21 = vld [vmem:[#allocation5 + $0xcf8] sm:$0xff] }
 0x101   :  { %6314 = vmatpush3.bf16.msra.mxu1 %v6313_v23  ;;  %v1219_v23 = vld [vmem:[#allocation5 + $0xd68] sm:$0xff] }
 0x102   :  { %6316 = vmatprep.subr.bf16.mxu1 %v6315_v26  ;;  %v1236_v26 = vld [vmem:[#allocation5 + $0xdf0] sm:$0xff]  ;;  %v6333_v33 = vpack.c.bf16 %v1219_v23, %v1218_v16 }
 0x103   :  { %6286 = vmatpush3.bf16.msra.mxu0 %v6285_v54  ;;  %v6303_v54 = vpack.c.bf16 %v1205_v21, %v1204_v20  ;;  %v6335_v37 = vpack.c.bf16 %v1237_v28, %v1236_v26  ;;  %v6349_v20 = vpack.c.bf16 %v1243_v56, %v1242_v12  ;;  %v1292_v21 = vld [vmem:[#allocation5 + $0xfb0] sm:$0xff]  ;;  %v1262_v26 = vld [vmem:[#allocation5 + $0xec0] sm:$0xff]  ;;  %v1263_v28 = vld [vmem:[#allocation5 + $0xec8] sm:$0xff] }
 0x104   :  { %6288 = vmatprep.subr.bf16.mxu0 %v6287_v32  ;;  %v245_v32 = vcvt.s32.f32 %v173_v18  ;;  %v1274_v18 = vld [vmem:[#allocation5 + $0xf20] sm:$0xff]  ;;  %v1244_v23 = vld [vmem:[#allocation5 + $0xe30] sm:$0xff]  ;;  %v1269_v56 = vld [vmem:[#allocation5 + $0xef8] sm:$0xff] }
 0x105   :  { %6318 = vmatpush3.bf16.msra.mxu1 %v6317_v35  ;;  %v1254_v35 = vld [vmem:[#allocation5 + $0xe80] sm:$0xff]  ;;  %v1268_v12 = vld [vmem:[#allocation5 + $0xef0] sm:$0xff] }
 0x106   :  { %6320 = vmatprep.subr.bf16.mxu1 %v6319_v38  ;;  %v1220_v38 = vld [vmem:[#allocation5 + $0xd70] sm:$0xff]  ;;  %v6339_v43 = vpack.c.bf16 %v1255_v36, %v1254_v35  ;;  %vm317_vm11 = vcmp.ne.f32.partialorder %v245_v32, 0.0  ;;  %vm389_vm12 = vcmp.ne.f32.partialorder %v245_v32, 144.0  ;;  %vm533_vm2 = vcmp.ne.f32.partialorder %v245_v32, 109.0 }
 0x107   :  { %6290 = vmatpush3.bf16.msra.mxu0 %v6289_v27  ;;  %v1287_v27 = vld [vmem:[#allocation5 + $0xf88] sm:$0xff]  ;;  %v6337_v47 = vpack.c.bf16 %v1221_v39, %v1220_v38  ;;  %vm7485_vm1 = vmand %vm317_vm11, %vm389_vm12  ;;  %v6353_v32 = vpack.c.bf16 %v1245_v24, %v1244_v23  ;;  %v7511_v35 = vld [vmem:[#allocation2 + $0x40] sm:$0xff]  ;;  %v6355_v36 = vpack.c.bf16 %v1263_v28, %v1262_v26 }
 0x108   :  { %6292 = vmatprep.subr.bf16.mxu0 %v6291_v45  ;;  %v1238_v45 = vld [vmem:[#allocation5 + $0xe00] sm:$0xff]  ;;  %vm605_vm5 = vmand %vm7485_vm1, %vm533_vm2  ;;  %v1247_v38 = vld [vmem:[#allocation5 + $0xe48] sm:$0xff]  ;;  %v105_v57 = vunpack.c.3.s8 %v7511_v35 }
 0x109   :  { %6322 = vmatpush3.bf16.msra.mxu1 %v6321_v48  ;;  %v1256_v48 = vld [vmem:[#allocation5 + $0xe90] sm:$0xff]  ;;  %v6341_v58 = vpack.c.bf16 %v1239_v46, %v1238_v45  ;;  %v170_v45 = vand.u32 255, %v98_v31  ;;  %v103_v46 = vunpack.c.1.s8 %v7511_v35  ;;  %v1253_v28 = vld [vmem:[#allocation5 + $0xe78] sm:$0xff] }
 0x10a   :  { %6324 = vmatprep.subr.bf16.mxu1 %v6323_v51  ;;  %v6371_v51 = vpack.c.bf16 %v1287_v27, %v1286_v41  ;;  %v6343_v62 = vpack.c.bf16 %v1257_v49, %v1256_v48  ;;  %v1265_v41 = vld [vmem:[#allocation5 + $0xed8] sm:$0xff]  ;;  %v1296_v48 = vld [vmem:[#allocation5 + $0xfd0] sm:$0xff] }
 0x10b   :  { %6294 = vmatpush3.bf16.msra.mxu0 %v6293_v59  ;;  %v1288_v59 = vld [vmem:[#allocation5 + $0xf90] sm:$0xff]  ;;  %v1297_v49 = vld [vmem:[#allocation5 + $0xfd8] sm:$0xff]  ;;  %v175_v1 = vand.u32 255, %v103_v46  ;;  %v1303_v46 = vld [vmem:[#allocation5 + $0x1008] sm:$0xff] }
 0x10c   :  { %6296 = vmatprep.subr.bf16.mxu0 %v6295_v63  ;;  %v1240_v63 = vld [vmem:[#allocation5 + $0xe10] sm:$0xff]  ;;  %v6375_v5 = vpack.c.bf16 %v1289_v60, %v1288_v59  ;;  %v1266_v59 = vld [vmem:[#allocation5 + $0xee0] sm:$0xff]  ;;  %v1267_v60 = vld [vmem:[#allocation5 + $0xee8] sm:$0xff]  ;;  %v6391_v61 = vpack.c.bf16 %v1297_v49, %v1296_v48 }
 0x10d   :  { %6326 = vmatpush3.bf16.msra.mxu1 %v6325_v3  ;;  %v1258_v3 = vld [vmem:[#allocation5 + $0xea0] sm:$0xff]  ;;  %v6345_v8 = vpack.c.bf16 %v1241_v0, %v1240_v63  ;;  %v1281_v63 = vld [vmem:[#allocation5 + $0xf58] sm:$0xff]  ;;  %v242_v0 = vcvt.s32.f32 %v170_v45  ;;  %v1252_v26 = vld [vmem:[#allocation5 + $0xe70] sm:$0xff] }
 0x10e   :  { %6328 = vmatprep.subr.bf16.mxu1 %v6327_v6  ;;  %v1272_v6 = vld [vmem:[#allocation5 + $0xf10] sm:$0xff]  ;;  %v1302_v45 = vld [vmem:[#allocation5 + $0x1000] sm:$0xff]  ;;  %v1321_v49 = vld [vmem:[#allocation5 + $0x1098] sm:$0xff] }
 0x10f   :  { %6298 = vmatpush3.bf16.msra.mxu0 %v6297_v11  ;;  %v6347_v11 = vpack.c.bf16 %v1259_v4, %v1258_v3  ;;  %v6377_v13 = vpack.c.bf16 %v1273_v7, %v1272_v6  ;;  %v1298_v3 = vld [vmem:[#allocation5 + $0xfe0] sm:$0xff]  ;;  %v172_v4 = vand.u32 255, %v100_v50  ;;  %v1251_v7 = vld [vmem:[#allocation5 + $0xe68] sm:$0xff]  ;;  %vm314_vm6 = vcmp.ne.f32.partialorder %v242_v0, 0.0  ;;  %v1320_v48 = vld [vmem:[#allocation5 + $0x1090] sm:$0xff] }
 0x110   :  { %6300 = vmatprep.subr.bf16.mxu0 %v6299_v14  ;;  %v1260_v14 = vld [vmem:[#allocation5 + $0xeb0] sm:$0xff]  ;;  %v1250_v6 = vld [vmem:[#allocation5 + $0xe60] sm:$0xff]  ;;  %vm386_vm7 = vcmp.ne.f32.partialorder %v242_v0, 144.0  ;;  %vm530_vm9 = vcmp.ne.f32.partialorder %v242_v0, 109.0  ;;  %v1305_v0 = vld [vmem:[#allocation5 + $0x1018] sm:$0xff] }
 0x111   :  { %6330 = vmatpush3.bf16.msra.mxu1 %v6329_v19  ;;  %v1275_v19 = vld [vmem:[#allocation5 + $0xf28] sm:$0xff]  ;;  %v6351_v16 = vpack.c.bf16 %v1261_v15, %v1260_v14  ;;  %v6395_v14 = vpack.c.bf16 %v1299_v44, %v1298_v3  ;;  %v1282_v15 = vld [vmem:[#allocation5 + $0xf60] sm:$0xff]  ;;  %v244_v23 = vcvt.s32.f32 %v172_v4  ;;  %vm7520_vm8 = vmand %vm314_vm6, %vm386_vm7 }
 0x112   :  { %6332 = vmatprep.subr.bf16.mxu1 %v6331_v22  ;;  %v1293_v22 = vld [vmem:[#allocation5 + $0xfb8] sm:$0xff]  ;;  %vm7531_vm14 = vmand %vm7520_vm8, %vm530_vm9  ;;  %v1322_v3 = vld [vmem:[#allocation5 + $0x10a0] sm:$0xff] }
 0x113   :  { %6302 = vmatpush3.bf16.msra.mxu0 %v6301_v25  ;;  %v6381_v25 = vpack.c.bf16 %v1275_v19, %v1274_v18  ;;  %v6383_v29 = vpack.c.bf16 %v1293_v22, %v1292_v21  ;;  %v7516_v18 = vcvt.s32.f32 %v175_v1  ;;  %v6365_v21 = vpack.c.bf16 %v1251_v7, %v1250_v6  ;;  %v1300_v22 = vld [vmem:[#allocation5 + $0xff0] sm:$0xff]  ;;  %v1323_v44 = vld [vmem:[#allocation5 + $0x10a8] sm:$0xff]  ;;  %v1337_v6 = vld [vmem:[#allocation5 + $0x1118] sm:$0xff] }
 0x114   :  { %6304 = vmatprep.subr.bf16.mxu0 %v6303_v54  ;;  %v1276_v54 = vld [vmem:[#allocation5 + $0xf30] sm:$0xff]  ;;  %vm316_vm12 = vcmp.ne.f32.partialorder %v244_v23, 0.0  ;;  %vm388_vm13 = vcmp.ne.f32.partialorder %v244_v23, 144.0  ;;  %v1361_v50 = vld [vmem:[#allocation5 + $0x11d8] sm:$0xff] }
 0x115   :  { %6334 = vmatpush3.bf16.msra.mxu1 %v6333_v33  ;;  %v1294_v33 = vld [vmem:[#allocation5 + $0xfc0] sm:$0xff]  ;;  %v6385_v39 = vpack.c.bf16 %v1277_v30, %v1276_v54  ;;  %vm391_vm11 = vcmp.ne.f32.partialorder %v7516_v18, 144.0  ;;  %vm535_vm2 = vcmp.ne.f32.partialorder %v7516_v18, 109.0 }
 0x116   :  { %6336 = vmatprep.subr.bf16.mxu1 %v6335_v37  ;;  %v1246_v37 = vld [vmem:[#allocation5 + $0xe40] sm:$0xff]  ;;  %v6387_v27 = vpack.c.bf16 %v1295_v34, %v1294_v33  ;;  %v1319_v34 = vld [vmem:[#allocation5 + $0x1088] sm:$0xff] }
 0x117   :  { %6306 = vmatpush3.bf16.msra.mxu0 %v6305_v40  ;;  %v1264_v40 = vld [vmem:[#allocation5 + $0xed0] sm:$0xff]  ;;  %v1318_v33 = vld [vmem:[#allocation5 + $0x1080] sm:$0xff] }
 0x118   :  { %6340 = vmatprep.subr.bf16.mxu0 %v6339_v43  ;;  %v1279_v43 = vld [vmem:[#allocation5 + $0xf48] sm:$0xff] }
 0x119   :  { %6338 = vmatpush3.bf16.msra.mxu1 %v6337_v47  ;;  %v6357_v47 = vpack.c.bf16 %v1247_v38, %v1246_v37  ;;  %v1284_v37 = vld [vmem:[#allocation5 + $0xf70] sm:$0xff]  ;;  %v1285_v38 = vld [vmem:[#allocation5 + $0xf78] sm:$0xff] }
 0x11a   :  { %4584 = vmatmul.mubr.msk.f32.vlgmr.msra.gmra.mrb[12].mxu0 %vm7467_vm10, %v7149_v55  ;;  %6372 = vmatprep.subr.bf16.mxu1 %v6371_v51  ;;  %v6359_v51 = vpack.c.bf16 %v1265_v41, %v1264_v40  ;;  %vm319_vm10 = vcmp.ne.f32.partialorder %v7516_v18, 0.0  ;;  %v6369_v40 = vpack.c.bf16 %v1253_v28, %v1252_v26  ;;  %v1350_v41 = vld [vmem:[#allocation5 + $0x1180] sm:$0xff]  ;;  %v1339_v18 = vld [vmem:[#allocation5 + $0x1128] sm:$0xff] }
 0x11b   :  { %6342 = vmatpush3.bf16.msra.mxu0 %v6341_v58  ;;  %4587 = vmatprep.mubr.msk.f32.mxu0 %vm7492_vm3, %v7149_v55  ;;  %v6389_v58 = vpack.c.bf16 %v1279_v43, %v1278_v42  ;;  %v6403_v43 = vpack.c.bf16 %v1319_v34, %v1318_v33  ;;  %vm7539_vm1 = vmand %vm319_vm10, %vm391_vm11  ;;  %v1327_v26 = vld [vmem:[#allocation5 + $0x10c8] sm:$0xff]  ;;  %v7579_v34 = vld [vmem:[#allocation2 + $0x48] sm:$0xff] }
 0x11c   :  { %4586 = vmatmul.mubr.msk.f32.vlgmr.msra.gmra.mrb[12].mxu1 %vm600_vm4, %v7149_v55  ;;  %6344 = vmatprep.subr.bf16.mxu0 %v6343_v62  ;;  %v1280_v62 = vld [vmem:[#allocation5 + $0xf50] sm:$0xff]  ;;  %vm7546_vm3 = vmand %vm316_vm12, %vm388_vm13  ;;  %vm532_vm4 = vcmp.ne.f32.partialorder %v244_v23, 109.0  ;;  %v1309_v23 = vld [vmem:[#allocation5 + $0x1038] sm:$0xff] }
 0x11d   :  { %6374 = vmatpush3.bf16.msra.mxu1 %v6373_v2  ;;  %4589 = vmatprep.mubr.msk.f32.mxu1 %vm605_vm5, %v7149_v55  ;;  %v6361_v2 = vpack.c.bf16 %v1249_v53, %v1248_v52  ;;  %v1334_v53 = vld [vmem:[#allocation5 + $0x1100] sm:$0xff]  ;;  %vm7560_vm7 = vmand %vm7539_vm1, %vm535_vm2  ;;  %v1359_v33 = vld [vmem:[#allocation5 + $0x11c8] sm:$0xff] }
 0x11e   :  { %6376 = vmatprep.subr.bf16.mxu1 %v6375_v5  ;;  %v6363_v5 = vpack.c.bf16 %v1267_v60, %v1266_v59  ;;  %v1352_v59 = vld [vmem:[#allocation5 + $0x1190] sm:$0xff]  ;;  %v1353_v60 = vld [vmem:[#allocation5 + $0x1198] sm:$0xff]  ;;  %vm604_vm8 = vmand %vm7546_vm3, %vm532_vm4 }
 0x11f   :  { %6346 = vmatpush3.bf16.msra.mxu0 %v6345_v8  ;;  %v177_v8 = vand.u32 255, %v105_v57  ;;  %v1335_v57 = vld [vmem:[#allocation5 + $0x1108] sm:$0xff]  ;;  %v6439_v4 = vpack.c.bf16 %v1353_v60, %v1352_v59  ;;  %v1330_v60 = vld [vmem:[#allocation5 + $0x10e0] sm:$0xff] }
 0x120   :  { %6348 = vmatprep.subr.bf16.mxu0 %v6347_v11  ;;  %v6393_v11 = vpack.c.bf16 %v1281_v63, %v1280_v62  ;;  %v6407_v62 = vpack.c.bf16 %v1321_v49, %v1320_v48  ;;  %v1304_v63 = vld [vmem:[#allocation5 + $0x1010] sm:$0xff] }
 0x121   :  { %6378 = vmatpush3.bf16.msra.mxu1 %v6377_v13  ;;  %v6409_v7 = vpack.c.bf16 %v1305_v0, %v1304_v63  ;;  %v1360_v49 = vld [vmem:[#allocation5 + $0x11d0] sm:$0xff]  ;;  %v1345_v0 = vld [vmem:[#allocation5 + $0x1158] sm:$0xff] }
 0x122   :  { %6380 = vmatprep.subr.bf16.mxu1 %v6379_v17  ;;  %v1283_v17 = vld [vmem:[#allocation5 + $0xf68] sm:$0xff]  ;;  %v1344_v63 = vld [vmem:[#allocation5 + $0x1150] sm:$0xff] }
 0x123   :  { %6350 = vmatpush3.bf16.msra.mxu0 %v6349_v20  ;;  %v6397_v31 = vpack.c.bf16 %v1283_v17, %v1282_v15  ;;  %v1338_v17 = vld [vmem:[#allocation5 + $0x1120] sm:$0xff] }
 0x124   :  { %6352 = vmatprep.subr.bf16.mxu0 %v6351_v16  ;;  %v1301_v16 = vld [vmem:[#allocation5 + $0xff8] sm:$0xff] }
 0x125   :  { %6382 = vmatpush3.bf16.msra.mxu1 %v6381_v25  ;;  %v6367_v25 = vpack.c.bf16 %v1269_v56, %v1268_v12  ;;  %v1307_v12 = vld [vmem:[#allocation5 + $0x1028] sm:$0xff] }
 0x126   :  { %6384 = vmatprep.subr.bf16.mxu1 %v6383_v29  ;;  %v249_v29 = vcvt.s32.f32 %v177_v8  ;;  %v1354_v8 = vld [vmem:[#allocation5 + $0x11a0] sm:$0xff] }
 0x127   :  { %6354 = vmatpush3.bf16.msra.mxu0 %v6353_v32  ;;  %v1358_v32 = vld [vmem:[#allocation5 + $0x11c0] sm:$0xff] }
 0x128   :  { %6356 = vmatprep.subr.bf16.mxu0 %v6355_v36  ;;  %v6399_v36 = vpack.c.bf16 %v1301_v16, %v1300_v22  ;;  %vm321_vm15 = vcmp.ne.f32.partialorder %v249_v29, 0.0  ;;  %vm393_vm0 = vcmp.ne.f32.partialorder %v249_v29, 144.0  ;;  %vm537_vm6 = vcmp.ne.f32.partialorder %v249_v29, 109.0  ;;  %v1308_v16 = vld [vmem:[#allocation5 + $0x1030] sm:$0xff] }
 0x129   :  { %6386 = vmatpush3.bf16.msra.mxu1 %v6385_v39  ;;  %vm7552_vm5 = vmand %vm321_vm15, %vm393_vm0  ;;  %v1340_v29 = vld [vmem:[#allocation5 + $0x1130] sm:$0xff]  ;;  %v6451_v42 = vpack.c.bf16 %v1359_v33, %v1358_v32  ;;  %v1382_v32 = vld [vmem:[#allocation5 + $0x1280] sm:$0xff] }
 0x12a   :  { %6388 = vmatprep.subr.bf16.mxu1 %v6387_v27  ;;  %v1351_v27 = vld [vmem:[#allocation5 + $0x1188] sm:$0xff]  ;;  %vm609_vm9 = vmand %vm7552_vm5, %vm537_vm6 }
 0x12b   :  { %6358 = vmatpush3.bf16.msra.mxu0 %v6357_v47  ;;  %v6401_v47 = vpack.c.bf16 %v1285_v38, %v1284_v37  ;;  %v1310_v37 = vld [vmem:[#allocation5 + $0x1040] sm:$0xff]  ;;  %v1311_v38 = vld [vmem:[#allocation5 + $0x1048] sm:$0xff] }
 0x12c   :  { %6360 = vmatprep.subr.bf16.mxu0 %v6359_v51  ;;  %v6435_v51 = vpack.c.bf16 %v1351_v27, %v1350_v41  ;;  %v1328_v41 = vld [vmem:[#allocation5 + $0x10d0] sm:$0xff]  ;;  %v1329_v27 = vld [vmem:[#allocation5 + $0x10d8] sm:$0xff]  ;;  %v6421_v48 = vpack.c.bf16 %v1311_v38, %v1310_v37  ;;  %v1383_v33 = vld [vmem:[#allocation5 + $0x1288] sm:$0xff] }
 0x12d   :  { %6390 = vmatpush3.bf16.msra.mxu1 %v6389_v58  ;;  %v4663_v9 = vpop.f32.mrb[0].mxu0  ;;  %v6405_v58 = vpack.c.bf16 %v1303_v46, %v1302_v45  ;;  %v1343_v45 = vld [vmem:[#allocation5 + $0x1148] sm:$0xff]  ;;  %v6423_v52 = vpack.c.bf16 %v1329_v27, %v1328_v41  ;;  %v1348_v37 = vld [vmem:[#allocation5 + $0x1170] sm:$0xff]  ;;  %v1349_v38 = vld [vmem:[#allocation5 + $0x1178] sm:$0xff] }
 0x12e   :  { %v4664_v13 = vpop.f32.mrb[1].mxu0  ;;  %6392 = vmatprep.subr.bf16.mxu1 %v6391_v61  ;;  %v1331_v61 = vld [vmem:[#allocation5 + $0x10e8] sm:$0xff]  ;;  %v1414_v41 = vld [vmem:[#allocation5 + $0x1380] sm:$0xff] }
 0x12f   :  { %v4665_v19 = vadd.f32 %v4664_v13, %v4663_v9  ;;  %v4698_v20 = vpop.f32.mrb[0].mxu1  ;;  %6362 = vmatpush3.bf16.msra.mxu0 %v6361_v2  ;;  %v6437_v2 = vpack.c.bf16 %v1335_v57, %v1334_v53  ;;  %v1355_v9 = vld [vmem:[#allocation5 + $0x11a8] sm:$0xff]  ;;  %v1324_v13 = vld [vmem:[#allocation5 + $0x10b0] sm:$0xff]  ;;  %v1313_v57 = vld [vmem:[#allocation5 + $0x1058] sm:$0xff] }
 0x130   :  { %v4699_v24 = vpop.f32.mrb[1].mxu1  ;;  %6364 = vmatprep.subr.bf16.mxu0 %v6363_v5  ;;  %v1336_v5 = vld [vmem:[#allocation5 + $0x1110] sm:$0xff]  ;;  %v6443_v15 = vpack.c.bf16 %v1355_v9, %v1354_v8  ;;  %v1415_v27 = vld [vmem:[#allocation5 + $0x1388] sm:$0xff] }
 0x131   :  { %v2016_v54 = vadd.f32 %v4665_v19, %v4558_v10  ;;  %v4700_v30 = vadd.f32 %v4699_v24, %v4698_v20  ;;  %6394 = vmatpush3.bf16.msra.mxu1 %v6393_v11  ;;  %v6411_v10 = vpack.c.bf16 %v1323_v44, %v1322_v3  ;;  %v1306_v11 = vld [vmem:[#allocation5 + $0x1020] sm:$0xff]  ;;  %v6441_v56 = vpack.c.bf16 %v1337_v6, %v1336_v5  ;;  %v1356_v20 = vld [vmem:[#allocation5 + $0x11b0] sm:$0xff] }
 0x132   :  { %6396 = vmatprep.subr.bf16.mxu1 %v6395_v14  ;;  %v1325_v14 = vld [vmem:[#allocation5 + $0x10b8] sm:$0xff]  ;;  %v6413_v19 = vpack.c.bf16 %v1307_v12, %v1306_v11  ;;  %v6445_v24 = vpack.c.bf16 %v1339_v18, %v1338_v17  ;;  %v1312_v53 = vld [vmem:[#allocation5 + $0x1050] sm:$0xff]  ;;  %v1362_v44 = vld [vmem:[#allocation5 + $0x11e0] sm:$0xff]  ;;  %v6427_v5 = vpack.c.bf16 %v1331_v61, %v1330_v60 }
 0x133   :  { %v7526_v39 = vadd.f32 %v4700_v30, %v2016_v54  ;;  %6366 = vmatpush3.bf16.msra.mxu0 %v6365_v21  ;;  %v1357_v21 = vld [vmem:[#allocation5 + $0x11b8] sm:$0xff]  ;;  %v6415_v22 = vpack.c.bf16 %v1325_v14, %v1324_v13  ;;  %v102_v30 = vunpack.c.0.s8 %v7511_v35  ;;  %v6425_v3 = vpack.c.bf16 %v1313_v57, %v1312_v53  ;;  %v1314_v6 = vld [vmem:[#allocation5 + $0x1060] sm:$0xff]  ;;  %v1332_v11 = vld [vmem:[#allocation5 + $0x10f0] sm:$0xff] }
 0x134   :  { %6368 = vmatprep.subr.bf16.mxu0 %v6367_v25  ;;  %v1326_v25 = vld [vmem:[#allocation5 + $0x10c0] sm:$0xff]  ;;  %v6447_v28 = vpack.c.bf16 %v1357_v21, %v1356_v20  ;;  %v1341_v54 = vld [vmem:[#allocation5 + $0x1138] sm:$0xff]  ;;  %v1364_v21 = vld [vmem:[#allocation5 + $0x11f0] sm:$0xff] }
 0x135   :  { %6398 = vmatpush3.bf16.msra.mxu1 %v6397_v31  ;;  %v6417_v31 = vpack.c.bf16 %v1309_v23, %v1308_v16  ;;  %v174_v46 = vand.u32 255, %v102_v30  ;;  %v1333_v12 = vld [vmem:[#allocation5 + $0x10f8] sm:$0xff]  ;;  %v1346_v14 = vld [vmem:[#allocation5 + $0x1160] sm:$0xff]  ;;  %v1399_v57 = vld [vmem:[#allocation5 + $0x1308] sm:$0xff] }
 0x136   :  { %6400 = vmatprep.subr.bf16.mxu1 %v6399_v36  ;;  %v6419_v36 = vpack.c.bf16 %v1327_v26, %v1326_v25  ;;  %v1316_v25 = vld [vmem:[#allocation5 + $0x1070] sm:$0xff]  ;;  %v1317_v26 = vld [vmem:[#allocation5 + $0x1078] sm:$0xff]  ;;  %v1398_v53 = vld [vmem:[#allocation5 + $0x1300] sm:$0xff] }
 0x137   :  { %6370 = vmatpush3.bf16.msra.mxu0 %v6369_v40  ;;  %v6449_v40 = vpack.c.bf16 %v1341_v54, %v1340_v29  ;;  %v246_v1 = vcvt.s32.f32 %v174_v46  ;;  %v1367_v46 = vld [vmem:[#allocation5 + $0x1208] sm:$0xff]  ;;  %v1417_v60 = vld [vmem:[#allocation5 + $0x1398] sm:$0xff] }
 0x138   :  { %6404 = vmatprep.subr.bf16.mxu0 %v6403_v43  ;;  %v1342_v43 = vld [vmem:[#allocation5 + $0x1140] sm:$0xff]  ;;  %v1395_v61 = vld [vmem:[#allocation5 + $0x12e8] sm:$0xff] }
 0x139   :  { %6402 = vmatpush3.bf16.msra.mxu1 %v6401_v47  ;;  %v107_v47 = vunpack.c.1.s8 %v7579_v34  ;;  %v6453_v59 = vpack.c.bf16 %v1343_v45, %v1342_v43  ;;  %vm318_vm10 = vcmp.ne.f32.partialorder %v246_v1, 0.0  ;;  %vm390_vm11 = vcmp.ne.f32.partialorder %v246_v1, 144.0  ;;  %v1366_v45 = vld [vmem:[#allocation5 + $0x1200] sm:$0xff] }
 0x13a   :  { %4588 = vmatmul.mubr.msk.f32.vlgmr.msra.gmra.mrb[14].mxu0 %vm7531_vm14, %v7149_v55  ;;  %6436 = vmatprep.subr.bf16.mxu1 %v6435_v51  ;;  %v104_v51 = vunpack.c.2.s8 %v7511_v35  ;;  %v1363_v35 = vld [vmem:[#allocation5 + $0x11e8] sm:$0xff]  ;;  %vm7589_vm12 = vmand %vm318_vm10, %vm390_vm11  ;;  %vm534_vm13 = vcmp.ne.f32.partialorder %v246_v1, 109.0  ;;  %v6467_v43 = vpack.c.bf16 %v1383_v33, %v1382_v32  ;;  %v7648_v33 = vld [vmem:[#allocation2 + $0x50] sm:$0xff] }
 0x13b   :  { %6406 = vmatpush3.bf16.msra.mxu0 %v6405_v58  ;;  %4591 = vmatprep.mubr.msk.f32.mxu0 %vm7560_vm7, %v7149_v55  ;;  %v109_v58 = vunpack.c.3.s8 %v7579_v34  ;;  %v6459_v13 = vpack.c.bf16 %v1363_v35, %v1362_v44  ;;  %vm7600_vm2 = vmand %vm7589_vm12, %vm534_vm13  ;;  %v1387_v44 = vld [vmem:[#allocation5 + $0x12a8] sm:$0xff] }
 0x13c   :  { %4590 = vmatmul.mubr.msk.f32.vlgmr.msra.gmra.mrb[14].mxu1 %vm604_vm8, %v7149_v55  ;;  %6408 = vmatprep.subr.bf16.mxu0 %v6407_v62  ;;  %v6455_v62 = vpack.c.bf16 %v1361_v50, %v1360_v49  ;;  %v1385_v49 = vld [vmem:[#allocation5 + $0x1298] sm:$0xff]  ;;  %v1423_v32 = vld [vmem:[#allocation5 + $0x13c8] sm:$0xff] }
 0x13d   :  { %6438 = vmatpush3.bf16.msra.mxu1 %v6437_v2  ;;  %4593 = vmatprep.mubr.msk.f32.mxu1 %vm609_vm9, %v7149_v55  ;;  %v179_v2 = vand.u32 255, %v107_v47  ;;  %v181_v8 = vand.u32 255, %v109_v58  ;;  %v6465_v47 = vpack.c.bf16 %v1349_v38, %v1348_v37  ;;  %v6469_v58 = vpack.c.bf16 %v1367_v46, %v1366_v45  ;;  %v1374_v37 = vld [vmem:[#allocation5 + $0x1240] sm:$0xff]  ;;  %v1375_v38 = vld [vmem:[#allocation5 + $0x1248] sm:$0xff]  ;;  %v1425_v50 = vld [vmem:[#allocation5 + $0x13d8] sm:$0xff] }
 0x13e   :  { %6440 = vmatprep.subr.bf16.mxu1 %v6439_v4  ;;  %v176_v4 = vand.u32 255, %v104_v51  ;;  %v6499_v51 = vpack.c.bf16 %v1415_v27, %v1414_v41  ;;  %v1392_v41 = vld [vmem:[#allocation5 + $0x12d0] sm:$0xff]  ;;  %v1393_v27 = vld [vmem:[#allocation5 + $0x12d8] sm:$0xff]  ;;  %v1407_v45 = vld [vmem:[#allocation5 + $0x1348] sm:$0xff] }
 0x13f   :  { %6410 = vmatpush3.bf16.msra.mxu0 %v6409_v7  ;;  %v1315_v7 = vld [vmem:[#allocation5 + $0x1068] sm:$0xff]  ;;  %v7584_v17 = vcvt.s32.f32 %v179_v2  ;;  %v6501_v2 = vpack.c.bf16 %v1399_v57, %v1398_v53  ;;  %v1376_v53 = vld [vmem:[#allocation5 + $0x1250] sm:$0xff]  ;;  %v1377_v57 = vld [vmem:[#allocation5 + $0x1258] sm:$0xff] }
 0x140   :  { %6412 = vmatprep.subr.bf16.mxu0 %v6411_v10  ;;  %v6457_v10 = vpack.c.bf16 %v1345_v0, %v1344_v63  ;;  %v6429_v20 = vpack.c.bf16 %v1315_v7, %v1314_v6  ;;  %v248_v16 = vcvt.s32.f32 %v176_v4  ;;  %v1368_v63 = vld [vmem:[#allocation5 + $0x1210] sm:$0xff]  ;;  %v1369_v0 = vld [vmem:[#allocation5 + $0x1218] sm:$0xff]  ;;  %v1418_v7 = vld [vmem:[#allocation5 + $0x13a0] sm:$0xff] }
 0x141   :  { %6442 = vmatpush3.bf16.msra.mxu1 %v6441_v56  ;;  %vm323_vm14 = vcmp.ne.f32.partialorder %v7584_v17, 0.0  ;;  %vm395_vm15 = vcmp.ne.f32.partialorder %v7584_v17, 144.0  ;;  %vm539_vm6 = vcmp.ne.f32.partialorder %v7584_v17, 109.0  ;;  %v1400_v4 = vld [vmem:[#allocation5 + $0x1310] sm:$0xff]  ;;  %v6473_v6 = vpack.c.bf16 %v1369_v0, %v1368_v63  ;;  %v1403_v17 = vld [vmem:[#allocation5 + $0x1328] sm:$0xff]  ;;  %v1409_v0 = vld [vmem:[#allocation5 + $0x1358] sm:$0xff] }
 0x142   :  { %6444 = vmatprep.subr.bf16.mxu1 %v6443_v15  ;;  %v1347_v15 = vld [vmem:[#allocation5 + $0x1168] sm:$0xff]  ;;  %vm320_vm0 = vcmp.ne.f32.partialorder %v248_v16, 0.0  ;;  %vm392_vm1 = vcmp.ne.f32.partialorder %v248_v16, 144.0  ;;  %vm7608_vm5 = vmand %vm323_vm14, %vm395_vm15  ;;  %vm536_vm8 = vcmp.ne.f32.partialorder %v248_v16, 109.0  ;;  %v1373_v16 = vld [vmem:[#allocation5 + $0x1238] sm:$0xff] }
 0x143   :  { %6414 = vmatpush3.bf16.msra.mxu0 %v6413_v19  ;;  %v6461_v30 = vpack.c.bf16 %v1347_v15, %v1346_v14  ;;  %vm7615_vm7 = vmand %vm320_vm0, %vm392_vm1  ;;  %v1402_v15 = vld [vmem:[#allocation5 + $0x1320] sm:$0xff]  ;;  %v1408_v63 = vld [vmem:[#allocation5 + $0x1350] sm:$0xff] }
 0x144   :  { %6416 = vmatprep.subr.bf16.mxu0 %v6415_v22  ;;  %v1365_v22 = vld [vmem:[#allocation5 + $0x11f8] sm:$0xff]  ;;  %vm7629_vm11 = vmand %vm7608_vm5, %vm539_vm6 }
 0x145   :  { %6446 = vmatpush3.bf16.msra.mxu1 %v6445_v24  ;;  %v6431_v24 = vpack.c.bf16 %v1333_v12, %v1332_v11  ;;  %vm608_vm12 = vmand %vm7615_vm7, %vm536_vm8  ;;  %v1371_v11 = vld [vmem:[#allocation5 + $0x1228] sm:$0xff] }
 0x146   :  { %6448 = vmatprep.subr.bf16.mxu1 %v6447_v28  ;;  %v253_v28 = vcvt.s32.f32 %v181_v8  ;;  %v1419_v8 = vld [vmem:[#allocation5 + $0x13a8] sm:$0xff] }
 0x147   :  { %6418 = vmatpush3.bf16.msra.mxu0 %v6417_v31  ;;  %v6507_v14 = vpack.c.bf16 %v1419_v8, %v1418_v7  ;;  %v1422_v31 = vld [vmem:[#allocation5 + $0x13c0] sm:$0xff] }
 0x148   :  { %6420 = vmatprep.subr.bf16.mxu0 %v6419_v36  ;;  %v6463_v36 = vpack.c.bf16 %v1365_v22, %v1364_v21  ;;  %vm325_vm3 = vcmp.ne.f32.partialorder %v253_v28, 0.0  ;;  %vm397_vm4 = vcmp.ne.f32.partialorder %v253_v28, 144.0  ;;  %vm541_vm10 = vcmp.ne.f32.partialorder %v253_v28, 109.0  ;;  %v1372_v22 = vld [vmem:[#allocation5 + $0x1230] sm:$0xff] }
 0x149   :  { %6450 = vmatpush3.bf16.msra.mxu1 %v6449_v40  ;;  %v6433_v40 = vpack.c.bf16 %v1317_v26, %v1316_v25  ;;  %vm7621_vm9 = vmand %vm325_vm3, %vm397_vm4  ;;  %v1391_v25 = vld [vmem:[#allocation5 + $0x12c8] sm:$0xff]  ;;  %v1404_v28 = vld [vmem:[#allocation5 + $0x1330] sm:$0xff] }
 0x14a   :  { %6452 = vmatprep.subr.bf16.mxu1 %v6451_v42  ;;  %vm613_vm13 = vmand %vm7621_vm9, %vm541_vm10  ;;  %v6515_v42 = vpack.c.bf16 %v1423_v32, %v1422_v31  ;;  %v1446_v31 = vld [vmem:[#allocation5 + $0x1480] sm:$0xff]  ;;  %v1447_v32 = vld [vmem:[#allocation5 + $0x1488] sm:$0xff] }
 0x14b   :  { %6422 = vmatpush3.bf16.msra.mxu0 %v6421_v48  ;;  %v1384_v48 = vld [vmem:[#allocation5 + $0x1290] sm:$0xff] }
 0x14c   :  { %6424 = vmatprep.subr.bf16.mxu0 %v6423_v52  ;;  %v6487_v52 = vpack.c.bf16 %v1393_v27, %v1392_v41  ;;  %v1478_v41 = vld [vmem:[#allocation5 + $0x1580] sm:$0xff]  ;;  %v1479_v27 = vld [vmem:[#allocation5 + $0x1588] sm:$0xff] }
 0x14d   :  { %6454 = vmatpush3.bf16.msra.mxu1 %v6453_v59  ;;  %v4733_v9 = vpop.f32.mrb[2].mxu0  ;;  %v1416_v59 = vld [vmem:[#allocation5 + $0x1390] sm:$0xff] }
 0x14e   :  { %v4734_v56 = vpop.f32.mrb[3].mxu0  ;;  %6456 = vmatprep.subr.bf16.mxu1 %v6455_v62  ;;  %v6471_v62 = vpack.c.bf16 %v1385_v49, %v1384_v48  ;;  %v6503_v35 = vpack.c.bf16 %v1417_v60, %v1416_v59  ;;  %v6485_v48 = vpack.c.bf16 %v1375_v38, %v1374_v37  ;;  %v1424_v49 = vld [vmem:[#allocation5 + $0x13d0] sm:$0xff]  ;;  %v1394_v60 = vld [vmem:[#allocation5 + $0x12e0] sm:$0xff]  ;;  %v1413_v38 = vld [vmem:[#allocation5 + $0x1378] sm:$0xff] }
 0x14f   :  { %v4735_v18 = vadd.f32 %v4734_v56, %v4733_v9  ;;  %v4768_v19 = vpop.f32.mrb[2].mxu1  ;;  %6426 = vmatpush3.bf16.msra.mxu0 %v6425_v3  ;;  %v1386_v3 = vld [vmem:[#allocation5 + $0x12a0] sm:$0xff]  ;;  %v1388_v56 = vld [vmem:[#allocation5 + $0x12b0] sm:$0xff] }
 0x150   :  { %v4769_v23 = vpop.f32.mrb[3].mxu1  ;;  %6428 = vmatprep.subr.bf16.mxu0 %v6427_v5  ;;  %v1401_v5 = vld [vmem:[#allocation5 + $0x1318] sm:$0xff]  ;;  %v6475_v9 = vpack.c.bf16 %v1387_v44, %v1386_v3  ;;  %v6489_v3 = vpack.c.bf16 %v1377_v57, %v1376_v53  ;;  %v1426_v44 = vld [vmem:[#allocation5 + $0x13e0] sm:$0xff]  ;;  %v1412_v37 = vld [vmem:[#allocation5 + $0x1370] sm:$0xff] }
 0x151   :  { %v2156_v29 = vadd.f32 %v4735_v18, %v7526_v39  ;;  %v4770_v54 = vadd.f32 %v4769_v23, %v4768_v19  ;;  %6458 = vmatpush3.bf16.msra.mxu1 %v6457_v10  ;;  %v1370_v10 = vld [vmem:[#allocation5 + $0x1220] sm:$0xff]  ;;  %v6505_v12 = vpack.c.bf16 %v1401_v5, %v1400_v4  ;;  %v1420_v19 = vld [vmem:[#allocation5 + $0x13b0] sm:$0xff]  ;;  %v6509_v23 = vpack.c.bf16 %v1403_v17, %v1402_v15  ;;  %v1463_v57 = vld [vmem:[#allocation5 + $0x1508] sm:$0xff] }
 0x152   :  { %6460 = vmatprep.subr.bf16.mxu1 %v6459_v13  ;;  %v1389_v13 = vld [vmem:[#allocation5 + $0x12b8] sm:$0xff]  ;;  %v6477_v18 = vpack.c.bf16 %v1371_v11, %v1370_v10  ;;  %v6491_v4 = vpack.c.bf16 %v1395_v61, %v1394_v60  ;;  %v1378_v5 = vld [vmem:[#allocation5 + $0x1260] sm:$0xff]  ;;  %v1396_v10 = vld [vmem:[#allocation5 + $0x12f0] sm:$0xff] }
 0x153   :  { %v7595_v39 = vadd.f32 %v4770_v54, %v2156_v29  ;;  %6430 = vmatpush3.bf16.msra.mxu0 %v6429_v20  ;;  %v1421_v20 = vld [vmem:[#allocation5 + $0x13b8] sm:$0xff]  ;;  %v6479_v21 = vpack.c.bf16 %v1389_v13, %v1388_v56  ;;  %v106_v54 = vunpack.c.0.s8 %v7579_v34  ;;  %v1410_v13 = vld [vmem:[#allocation5 + $0x1360] sm:$0xff]  ;;  %v1459_v61 = vld [vmem:[#allocation5 + $0x14e8] sm:$0xff] }
 0x154   :  { %6432 = vmatprep.subr.bf16.mxu0 %v6431_v24  ;;  %v1390_v24 = vld [vmem:[#allocation5 + $0x12c0] sm:$0xff]  ;;  %v6511_v26 = vpack.c.bf16 %v1421_v20, %v1420_v19  ;;  %v1405_v29 = vld [vmem:[#allocation5 + $0x1338] sm:$0xff]  ;;  %v1428_v20 = vld [vmem:[#allocation5 + $0x13f0] sm:$0xff] }
 0x155   :  { %6462 = vmatpush3.bf16.msra.mxu1 %v6461_v30  ;;  %v6481_v30 = vpack.c.bf16 %v1373_v16, %v1372_v22  ;;  %v178_v46 = vand.u32 255, %v106_v54  ;;  %v1397_v11 = vld [vmem:[#allocation5 + $0x12f8] sm:$0xff]  ;;  %v1462_v53 = vld [vmem:[#allocation5 + $0x1500] sm:$0xff] }
 0x156   :  { %6464 = vmatprep.subr.bf16.mxu1 %v6463_v36  ;;  %v6483_v36 = vpack.c.bf16 %v1391_v25, %v1390_v24  ;;  %v1380_v24 = vld [vmem:[#allocation5 + $0x1270] sm:$0xff]  ;;  %v1381_v25 = vld [vmem:[#allocation5 + $0x1278] sm:$0xff] }
 0x157   :  { %6434 = vmatpush3.bf16.msra.mxu0 %v6433_v40  ;;  %v6513_v40 = vpack.c.bf16 %v1405_v29, %v1404_v28  ;;  %v250_v1 = vcvt.s32.f32 %v178_v46  ;;  %v1431_v46 = vld [vmem:[#allocation5 + $0x1408] sm:$0xff]  ;;  %v1481_v60 = vld [vmem:[#allocation5 + $0x1598] sm:$0xff] }
 0x158   :  { %6468 = vmatprep.subr.bf16.mxu0 %v6467_v43  ;;  %v1406_v43 = vld [vmem:[#allocation5 + $0x1340] sm:$0xff] }
 0x159   :  { %6466 = vmatpush3.bf16.msra.mxu1 %v6465_v47  ;;  %v111_v47 = vunpack.c.1.s8 %v7648_v33  ;;  %v6517_v59 = vpack.c.bf16 %v1407_v45, %v1406_v43  ;;  %vm322_vm14 = vcmp.ne.f32.partialorder %v250_v1, 0.0  ;;  %vm394_vm15 = vcmp.ne.f32.partialorder %v250_v1, 144.0  ;;  %v1430_v45 = vld [vmem:[#allocation5 + $0x1400] sm:$0xff] }
 0x15a   :  { %4592 = vmatmul.mubr.msk.f32.vlgmr.msra.gmra.mrb[16].mxu0 %vm7600_vm2, %v7149_v55  ;;  %6500 = vmatprep.subr.bf16.mxu1 %v6499_v51  ;;  %v108_v51 = vunpack.c.2.s8 %v7579_v34  ;;  %v1427_v34 = vld [vmem:[#allocation5 + $0x13e8] sm:$0xff]  ;;  %vm7658_vm0 = vmand %vm322_vm14, %vm394_vm15  ;;  %vm538_vm1 = vcmp.ne.f32.partialorder %v250_v1, 109.0  ;;  %v6531_v43 = vpack.c.bf16 %v1447_v32, %v1446_v31 }
 0x15b   :  { %6470 = vmatpush3.bf16.msra.mxu0 %v6469_v58  ;;  %4595 = vmatprep.mubr.msk.f32.mxu0 %vm7629_vm11, %v7149_v55  ;;  %v113_v58 = vunpack.c.3.s8 %v7648_v33  ;;  %v6523_v56 = vpack.c.bf16 %v1427_v34, %v1426_v44  ;;  %vm7669_vm6 = vmand %vm7658_vm0, %vm538_vm1  ;;  %v1451_v44 = vld [vmem:[#allocation5 + $0x14a8] sm:$0xff] }
 0x15c   :  { %4594 = vmatmul.mubr.msk.f32.vlgmr.msra.gmra.mrb[16].mxu1 %vm608_vm12, %v7149_v55  ;;  %6472 = vmatprep.subr.bf16.mxu0 %v6471_v62  ;;  %v6519_v62 = vpack.c.bf16 %v1425_v50, %v1424_v49  ;;  %v1449_v49 = vld [vmem:[#allocation5 + $0x1498] sm:$0xff]  ;;  %v1487_v31 = vld [vmem:[#allocation5 + $0x15c8] sm:$0xff] }
 0x15d   :  { %6502 = vmatpush3.bf16.msra.mxu1 %v6501_v2  ;;  %4597 = vmatprep.mubr.msk.f32.mxu1 %vm613_vm13, %v7149_v55  ;;  %v183_v2 = vand.u32 255, %v111_v47  ;;  %v185_v7 = vand.u32 255, %v113_v58  ;;  %v6529_v47 = vpack.c.bf16 %v1413_v38, %v1412_v37  ;;  %v6533_v58 = vpack.c.bf16 %v1431_v46, %v1430_v45  ;;  %v7717_v32 = vld [vmem:[#allocation2 + $0x58] sm:$0xff]  ;;  %v1438_v37 = vld [vmem:[#allocation5 + $0x1440] sm:$0xff]  ;;  %v1489_v50 = vld [vmem:[#allocation5 + $0x15d8] sm:$0xff] }
 0x15e   :  { %6504 = vmatprep.subr.bf16.mxu1 %v6503_v35  ;;  %v180_v35 = vand.u32 255, %v108_v51  ;;  %v6563_v51 = vpack.c.bf16 %v1479_v27, %v1478_v41  ;;  %v1439_v38 = vld [vmem:[#allocation5 + $0x1448] sm:$0xff]  ;;  %v1456_v41 = vld [vmem:[#allocation5 + $0x14d0] sm:$0xff]  ;;  %v1457_v27 = vld [vmem:[#allocation5 + $0x14d8] sm:$0xff] }
 0x15f   :  { %6474 = vmatpush3.bf16.msra.mxu0 %v6473_v6  ;;  %v1379_v6 = vld [vmem:[#allocation5 + $0x1268] sm:$0xff]  ;;  %v7653_v15 = vcvt.s32.f32 %v183_v2  ;;  %v6565_v2 = vpack.c.bf16 %v1463_v57, %v1462_v53  ;;  %v1440_v53 = vld [vmem:[#allocation5 + $0x1450] sm:$0xff]  ;;  %v1441_v57 = vld [vmem:[#allocation5 + $0x1458] sm:$0xff] }
 0x160   :  { %6476 = vmatprep.subr.bf16.mxu0 %v6475_v9  ;;  %v6521_v9 = vpack.c.bf16 %v1409_v0, %v1408_v63  ;;  %v6493_v19 = vpack.c.bf16 %v1379_v6, %v1378_v5  ;;  %v252_v22 = vcvt.s32.f32 %v180_v35  ;;  %v1432_v63 = vld [vmem:[#allocation5 + $0x1410] sm:$0xff]  ;;  %v1433_v0 = vld [vmem:[#allocation5 + $0x1418] sm:$0xff]  ;;  %v1482_v6 = vld [vmem:[#allocation5 + $0x15a0] sm:$0xff] }
 0x161   :  { %6506 = vmatpush3.bf16.msra.mxu1 %v6505_v12  ;;  %vm327_vm2 = vcmp.ne.f32.partialorder %v7653_v15, 0.0  ;;  %vm399_vm3 = vcmp.ne.f32.partialorder %v7653_v15, 144.0  ;;  %vm543_vm10 = vcmp.ne.f32.partialorder %v7653_v15, 109.0  ;;  %v1464_v35 = vld [vmem:[#allocation5 + $0x1510] sm:$0xff]  ;;  %v6537_v5 = vpack.c.bf16 %v1433_v0, %v1432_v63  ;;  %v1467_v15 = vld [vmem:[#allocation5 + $0x1528] sm:$0xff]  ;;  %v1473_v0 = vld [vmem:[#allocation5 + $0x1558] sm:$0xff] }
 0x162   :  { %6508 = vmatprep.subr.bf16.mxu1 %v6507_v14  ;;  %v1411_v14 = vld [vmem:[#allocation5 + $0x1368] sm:$0xff]  ;;  %vm324_vm4 = vcmp.ne.f32.partialorder %v252_v22, 0.0  ;;  %vm396_vm5 = vcmp.ne.f32.partialorder %v252_v22, 144.0  ;;  %vm7677_vm9 = vmand %vm327_vm2, %vm399_vm3  ;;  %vm540_vm12 = vcmp.ne.f32.partialorder %v252_v22, 109.0  ;;  %v1437_v22 = vld [vmem:[#allocation5 + $0x1438] sm:$0xff] }
 0x163   :  { %6478 = vmatpush3.bf16.msra.mxu0 %v6477_v18  ;;  %v6525_v54 = vpack.c.bf16 %v1411_v14, %v1410_v13  ;;  %vm7684_vm11 = vmand %vm324_vm4, %vm396_vm5  ;;  %v1466_v14 = vld [vmem:[#allocation5 + $0x1520] sm:$0xff]  ;;  %v1471_v45 = vld [vmem:[#allocation5 + $0x1548] sm:$0xff] }
 0x164   :  { %6480 = vmatprep.subr.bf16.mxu0 %v6479_v21  ;;  %v1429_v21 = vld [vmem:[#allocation5 + $0x13f8] sm:$0xff]  ;;  %vm7698_vm15 = vmand %vm7677_vm9, %vm543_vm10  ;;  %v1472_v63 = vld [vmem:[#allocation5 + $0x1550] sm:$0xff] }
 0x165   :  { %6510 = vmatpush3.bf16.msra.mxu1 %v6509_v23  ;;  %v6495_v23 = vpack.c.bf16 %v1397_v11, %v1396_v10  ;;  %vm612_vm0 = vmand %vm7684_vm11, %vm540_vm12  ;;  %v1435_v10 = vld [vmem:[#allocation5 + $0x1428] sm:$0xff] }
 0x166   :  { %6512 = vmatprep.subr.bf16.mxu1 %v6511_v26  ;;  %v257_v26 = vcvt.s32.f32 %v185_v7  ;;  %v1483_v7 = vld [vmem:[#allocation5 + $0x15a8] sm:$0xff] }
 0x167   :  { %6482 = vmatpush3.bf16.msra.mxu0 %v6481_v30  ;;  %v6571_v13 = vpack.c.bf16 %v1483_v7, %v1482_v6  ;;  %v1486_v30 = vld [vmem:[#allocation5 + $0x15c0] sm:$0xff] }
 0x168   :  { %6484 = vmatprep.subr.bf16.mxu0 %v6483_v36  ;;  %v6527_v36 = vpack.c.bf16 %v1429_v21, %v1428_v20  ;;  %vm329_vm7 = vcmp.ne.f32.partialorder %v257_v26, 0.0  ;;  %vm401_vm8 = vcmp.ne.f32.partialorder %v257_v26, 144.0  ;;  %vm545_vm14 = vcmp.ne.f32.partialorder %v257_v26, 109.0  ;;  %v1436_v21 = vld [vmem:[#allocation5 + $0x1430] sm:$0xff] }
 0x169   :  { %6514 = vmatpush3.bf16.msra.mxu1 %v6513_v40  ;;  %v6497_v40 = vpack.c.bf16 %v1381_v25, %v1380_v24  ;;  %vm7690_vm13 = vmand %vm329_vm7, %vm401_vm8  ;;  %v1455_v24 = vld [vmem:[#allocation5 + $0x14c8] sm:$0xff]  ;;  %v1468_v26 = vld [vmem:[#allocation5 + $0x1530] sm:$0xff] }
 0x16a   :  { %6516 = vmatprep.subr.bf16.mxu1 %v6515_v42  ;;  %vm617_vm1 = vmand %vm7690_vm13, %vm545_vm14  ;;  %v6579_v42 = vpack.c.bf16 %v1487_v31, %v1486_v30  ;;  %v1510_v30 = vld [vmem:[#allocation5 + $0x1680] sm:$0xff]  ;;  %v1511_v31 = vld [vmem:[#allocation5 + $0x1688] sm:$0xff] }
 0x16b   :  { %6486 = vmatpush3.bf16.msra.mxu0 %v6485_v48  ;;  %v1448_v48 = vld [vmem:[#allocation5 + $0x1490] sm:$0xff] }
 0x16c   :  { %6488 = vmatprep.subr.bf16.mxu0 %v6487_v52  ;;  %v6551_v52 = vpack.c.bf16 %v1457_v27, %v1456_v41  ;;  %v1542_v41 = vld [vmem:[#allocation5 + $0x1780] sm:$0xff]  ;;  %v1543_v27 = vld [vmem:[#allocation5 + $0x1788] sm:$0xff] }
 0x16d   :  { %6518 = vmatpush3.bf16.msra.mxu1 %v6517_v59  ;;  %v4803_v8 = vpop.f32.mrb[4].mxu0  ;;  %v1480_v59 = vld [vmem:[#allocation5 + $0x1590] sm:$0xff] }
 0x16e   :  { %v4804_v12 = vpop.f32.mrb[5].mxu0  ;;  %6520 = vmatprep.subr.bf16.mxu1 %v6519_v62  ;;  %v6535_v62 = vpack.c.bf16 %v1449_v49, %v1448_v48  ;;  %v6567_v34 = vpack.c.bf16 %v1481_v60, %v1480_v59  ;;  %v6549_v48 = vpack.c.bf16 %v1439_v38, %v1438_v37  ;;  %v1488_v49 = vld [vmem:[#allocation5 + $0x15d0] sm:$0xff]  ;;  %v1458_v60 = vld [vmem:[#allocation5 + $0x14e0] sm:$0xff]  ;;  %v1477_v38 = vld [vmem:[#allocation5 + $0x1578] sm:$0xff] }
 0x16f   :  { %v4805_v17 = vadd.f32 %v4804_v12, %v4803_v8  ;;  %v4838_v18 = vpop.f32.mrb[4].mxu1  ;;  %6490 = vmatpush3.bf16.msra.mxu0 %v6489_v3  ;;  %v1450_v3 = vld [vmem:[#allocation5 + $0x14a0] sm:$0xff]  ;;  %v1452_v12 = vld [vmem:[#allocation5 + $0x14b0] sm:$0xff] }
 0x170   :  { %v4839_v16 = vpop.f32.mrb[5].mxu1  ;;  %6492 = vmatprep.subr.bf16.mxu0 %v6491_v4  ;;  %v1465_v4 = vld [vmem:[#allocation5 + $0x1518] sm:$0xff]  ;;  %v6539_v8 = vpack.c.bf16 %v1451_v44, %v1450_v3  ;;  %v6553_v3 = vpack.c.bf16 %v1441_v57, %v1440_v53  ;;  %v1490_v44 = vld [vmem:[#allocation5 + $0x15e0] sm:$0xff]  ;;  %v1476_v37 = vld [vmem:[#allocation5 + $0x1570] sm:$0xff] }
 0x171   :  { %v2296_v28 = vadd.f32 %v4805_v17, %v7595_v39  ;;  %v4840_v29 = vadd.f32 %v4839_v16, %v4838_v18  ;;  %6522 = vmatpush3.bf16.msra.mxu1 %v6521_v9  ;;  %v1434_v9 = vld [vmem:[#allocation5 + $0x1420] sm:$0xff]  ;;  %v6569_v11 = vpack.c.bf16 %v1465_v4, %v1464_v35  ;;  %v1484_v18 = vld [vmem:[#allocation5 + $0x15b0] sm:$0xff]  ;;  %v6573_v16 = vpack.c.bf16 %v1467_v15, %v1466_v14  ;;  %v1527_v57 = vld [vmem:[#allocation5 + $0x1708] sm:$0xff] }
 0x172   :  { %6524 = vmatprep.subr.bf16.mxu1 %v6523_v56  ;;  %v1453_v56 = vld [vmem:[#allocation5 + $0x14b8] sm:$0xff]  ;;  %v6541_v17 = vpack.c.bf16 %v1435_v10, %v1434_v9  ;;  %v6555_v35 = vpack.c.bf16 %v1459_v61, %v1458_v60  ;;  %v1442_v4 = vld [vmem:[#allocation5 + $0x1460] sm:$0xff]  ;;  %v1460_v9 = vld [vmem:[#allocation5 + $0x14f0] sm:$0xff] }
 0x173   :  { %v7664_v39 = vadd.f32 %v4840_v29, %v2296_v28  ;;  %6494 = vmatpush3.bf16.msra.mxu0 %v6493_v19  ;;  %v1485_v19 = vld [vmem:[#allocation5 + $0x15b8] sm:$0xff]  ;;  %v6543_v20 = vpack.c.bf16 %v1453_v56, %v1452_v12  ;;  %v110_v29 = vunpack.c.0.s8 %v7648_v33  ;;  %v1474_v56 = vld [vmem:[#allocation5 + $0x1560] sm:$0xff]  ;;  %v1523_v61 = vld [vmem:[#allocation5 + $0x16e8] sm:$0xff] }
 0x174   :  { %6496 = vmatprep.subr.bf16.mxu0 %v6495_v23  ;;  %v1454_v23 = vld [vmem:[#allocation5 + $0x14c0] sm:$0xff]  ;;  %v6575_v25 = vpack.c.bf16 %v1485_v19, %v1484_v18  ;;  %v1469_v28 = vld [vmem:[#allocation5 + $0x1538] sm:$0xff]  ;;  %v1492_v19 = vld [vmem:[#allocation5 + $0x15f0] sm:$0xff] }
 0x175   :  { %6526 = vmatpush3.bf16.msra.mxu1 %v6525_v54  ;;  %v6545_v54 = vpack.c.bf16 %v1437_v22, %v1436_v21  ;;  %v182_v46 = vand.u32 255, %v110_v29  ;;  %v1461_v10 = vld [vmem:[#allocation5 + $0x14f8] sm:$0xff]  ;;  %v1526_v53 = vld [vmem:[#allocation5 + $0x1700] sm:$0xff] }
 0x176   :  { %6528 = vmatprep.subr.bf16.mxu1 %v6527_v36  ;;  %v6547_v36 = vpack.c.bf16 %v1455_v24, %v1454_v23  ;;  %v1444_v23 = vld [vmem:[#allocation5 + $0x1470] sm:$0xff]  ;;  %v1445_v24 = vld [vmem:[#allocation5 + $0x1478] sm:$0xff] }
 0x177   :  { %6498 = vmatpush3.bf16.msra.mxu0 %v6497_v40  ;;  %v6577_v40 = vpack.c.bf16 %v1469_v28, %v1468_v26  ;;  %v254_v1 = vcvt.s32.f32 %v182_v46  ;;  %v1495_v46 = vld [vmem:[#allocation5 + $0x1608] sm:$0xff]  ;;  %v1545_v60 = vld [vmem:[#allocation5 + $0x1798] sm:$0xff] }
 0x178   :  { %6532 = vmatprep.subr.bf16.mxu0 %v6531_v43  ;;  %v1470_v43 = vld [vmem:[#allocation5 + $0x1540] sm:$0xff] }
 0x179   :  { %6530 = vmatpush3.bf16.msra.mxu1 %v6529_v47  ;;  %v115_v47 = vunpack.c.1.s8 %v7717_v32  ;;  %v6581_v59 = vpack.c.bf16 %v1471_v45, %v1470_v43  ;;  %vm326_vm2 = vcmp.ne.f32.partialorder %v254_v1, 0.0  ;;  %vm398_vm3 = vcmp.ne.f32.partialorder %v254_v1, 144.0  ;;  %v1494_v45 = vld [vmem:[#allocation5 + $0x1600] sm:$0xff] }
 0x17a   :  { %4596 = vmatmul.mubr.msk.f32.vlgmr.msra.gmra.mrb[18].mxu0 %vm7669_vm6, %v7149_v55  ;;  %6564 = vmatprep.subr.bf16.mxu1 %v6563_v51  ;;  %v112_v51 = vunpack.c.2.s8 %v7648_v33  ;;  %v1491_v33 = vld [vmem:[#allocation5 + $0x15e8] sm:$0xff]  ;;  %vm7727_vm4 = vmand %vm326_vm2, %vm398_vm3  ;;  %vm542_vm5 = vcmp.ne.f32.partialorder %v254_v1, 109.0  ;;  %v6595_v43 = vpack.c.bf16 %v1511_v31, %v1510_v30  ;;  %v7786_v31 = vld [vmem:[#allocation2 + $0x60] sm:$0xff] }
 0x17b   :  { %6534 = vmatpush3.bf16.msra.mxu0 %v6533_v58  ;;  %4599 = vmatprep.mubr.msk.f32.mxu0 %vm7698_vm15, %v7149_v55  ;;  %v117_v58 = vunpack.c.3.s8 %v7717_v32  ;;  %v6587_v12 = vpack.c.bf16 %v1491_v33, %v1490_v44  ;;  %vm7738_vm10 = vmand %vm7727_vm4, %vm542_vm5  ;;  %v1515_v44 = vld [vmem:[#allocation5 + $0x16a8] sm:$0xff] }
 0x17c   :  { %4598 = vmatmul.mubr.msk.f32.vlgmr.msra.gmra.mrb[18].mxu1 %vm612_vm0, %v7149_v55  ;;  %6536 = vmatprep.subr.bf16.mxu0 %v6535_v62  ;;  %v6583_v62 = vpack.c.bf16 %v1489_v50, %v1488_v49  ;;  %v1513_v49 = vld [vmem:[#allocation5 + $0x1698] sm:$0xff]  ;;  %v1551_v30 = vld [vmem:[#allocation5 + $0x17c8] sm:$0xff] }
 0x17d   :  { %6566 = vmatpush3.bf16.msra.mxu1 %v6565_v2  ;;  %4601 = vmatprep.mubr.msk.f32.mxu1 %vm617_vm1, %v7149_v55  ;;  %v187_v2 = vand.u32 255, %v115_v47  ;;  %v189_v6 = vand.u32 255, %v117_v58  ;;  %v6593_v47 = vpack.c.bf16 %v1477_v38, %v1476_v37  ;;  %v6597_v58 = vpack.c.bf16 %v1495_v46, %v1494_v45  ;;  %v1502_v37 = vld [vmem:[#allocation5 + $0x1640] sm:$0xff]  ;;  %v1503_v38 = vld [vmem:[#allocation5 + $0x1648] sm:$0xff]  ;;  %v1553_v50 = vld [vmem:[#allocation5 + $0x17d8] sm:$0xff] }
 0x17e   :  { %6568 = vmatprep.subr.bf16.mxu1 %v6567_v34  ;;  %v184_v34 = vand.u32 255, %v112_v51  ;;  %v6627_v51 = vpack.c.bf16 %v1543_v27, %v1542_v41  ;;  %v1520_v41 = vld [vmem:[#allocation5 + $0x16d0] sm:$0xff]  ;;  %v1521_v27 = vld [vmem:[#allocation5 + $0x16d8] sm:$0xff]  ;;  %v1535_v45 = vld [vmem:[#allocation5 + $0x1748] sm:$0xff] }
 0x17f   :  { %6538 = vmatpush3.bf16.msra.mxu0 %v6537_v5  ;;  %v1443_v5 = vld [vmem:[#allocation5 + $0x1468] sm:$0xff]  ;;  %v7722_v14 = vcvt.s32.f32 %v187_v2  ;;  %v6629_v2 = vpack.c.bf16 %v1527_v57, %v1526_v53  ;;  %v1504_v53 = vld [vmem:[#allocation5 + $0x1650] sm:$0xff]  ;;  %v1505_v57 = vld [vmem:[#allocation5 + $0x1658] sm:$0xff] }
 0x180   :  { %6540 = vmatprep.subr.bf16.mxu0 %v6539_v8  ;;  %v6585_v8 = vpack.c.bf16 %v1473_v0, %v1472_v63  ;;  %v6557_v18 = vpack.c.bf16 %v1443_v5, %v1442_v4  ;;  %v256_v21 = vcvt.s32.f32 %v184_v34  ;;  %v1496_v63 = vld [vmem:[#allocation5 + $0x1610] sm:$0xff]  ;;  %v1497_v0 = vld [vmem:[#allocation5 + $0x1618] sm:$0xff]  ;;  %v1546_v5 = vld [vmem:[#allocation5 + $0x17a0] sm:$0xff] }
 0x181   :  { %6570 = vmatpush3.bf16.msra.mxu1 %v6569_v11  ;;  %vm331_vm6 = vcmp.ne.f32.partialorder %v7722_v14, 0.0  ;;  %vm403_vm7 = vcmp.ne.f32.partialorder %v7722_v14, 144.0  ;;  %vm547_vm14 = vcmp.ne.f32.partialorder %v7722_v14, 109.0  ;;  %v1528_v34 = vld [vmem:[#allocation5 + $0x1710] sm:$0xff]  ;;  %v6601_v4 = vpack.c.bf16 %v1497_v0, %v1496_v63  ;;  %v1531_v14 = vld [vmem:[#allocation5 + $0x1728] sm:$0xff]  ;;  %v1537_v0 = vld [vmem:[#allocation5 + $0x1758] sm:$0xff] }
 0x182   :  { %6572 = vmatprep.subr.bf16.mxu1 %v6571_v13  ;;  %v1475_v13 = vld [vmem:[#allocation5 + $0x1568] sm:$0xff]  ;;  %vm328_vm8 = vcmp.ne.f32.partialorder %v256_v21, 0.0  ;;  %vm400_vm9 = vcmp.ne.f32.partialorder %v256_v21, 144.0  ;;  %vm7746_vm13 = vmand %vm331_vm6, %vm403_vm7  ;;  %vm544_vm0 = vcmp.ne.f32.partialorder %v256_v21, 109.0  ;;  %v1501_v21 = vld [vmem:[#allocation5 + $0x1638] sm:$0xff] }
 0x183   :  { %6542 = vmatpush3.bf16.msra.mxu0 %v6541_v17  ;;  %v6589_v29 = vpack.c.bf16 %v1475_v13, %v1474_v56  ;;  %vm7753_vm15 = vmand %vm328_vm8, %vm400_vm9  ;;  %v1530_v13 = vld [vmem:[#allocation5 + $0x1720] sm:$0xff]  ;;  %v1536_v63 = vld [vmem:[#allocation5 + $0x1750] sm:$0xff] }
 0x184   :  { %6544 = vmatprep.subr.bf16.mxu0 %v6543_v20  ;;  %v1493_v20 = vld [vmem:[#allocation5 + $0x15f8] sm:$0xff]  ;;  %vm7767_vm3 = vmand %vm7746_vm13, %vm547_vm14 }
 0x185   :  { %6574 = vmatpush3.bf16.msra.mxu1 %v6573_v16  ;;  %v6559_v16 = vpack.c.bf16 %v1461_v10, %v1460_v9  ;;  %vm616_vm4 = vmand %vm7753_vm15, %vm544_vm0  ;;  %v1499_v9 = vld [vmem:[#allocation5 + $0x1628] sm:$0xff] }
 0x186   :  { %6576 = vmatprep.subr.bf16.mxu1 %v6575_v25  ;;  %v261_v25 = vcvt.s32.f32 %v189_v6  ;;  %v1547_v6 = vld [vmem:[#allocation5 + $0x17a8] sm:$0xff] }
 0x187   :  { %6546 = vmatpush3.bf16.msra.mxu0 %v6545_v54  ;;  %v6635_v56 = vpack.c.bf16 %v1547_v6, %v1546_v5  ;;  %v1550_v54 = vld [vmem:[#allocation5 + $0x17c0] sm:$0xff] }
 0x188   :  { %6548 = vmatprep.subr.bf16.mxu0 %v6547_v36  ;;  %v6591_v36 = vpack.c.bf16 %v1493_v20, %v1492_v19  ;;  %vm333_vm11 = vcmp.ne.f32.partialorder %v261_v25, 0.0  ;;  %vm405_vm12 = vcmp.ne.f32.partialorder %v261_v25, 144.0  ;;  %vm549_vm2 = vcmp.ne.f32.partialorder %v261_v25, 109.0  ;;  %v1500_v20 = vld [vmem:[#allocation5 + $0x1630] sm:$0xff] }
 0x189   :  { %6578 = vmatpush3.bf16.msra.mxu1 %v6577_v40  ;;  %v6561_v40 = vpack.c.bf16 %v1445_v24, %v1444_v23  ;;  %vm7759_vm1 = vmand %vm333_vm11, %vm405_vm12  ;;  %v1519_v23 = vld [vmem:[#allocation5 + $0x16c8] sm:$0xff]  ;;  %v1532_v25 = vld [vmem:[#allocation5 + $0x1730] sm:$0xff] }
 0x18a   :  { %6580 = vmatprep.subr.bf16.mxu1 %v6579_v42  ;;  %vm621_vm5 = vmand %vm7759_vm1, %vm549_vm2  ;;  %v6643_v42 = vpack.c.bf16 %v1551_v30, %v1550_v54  ;;  %v1574_v54 = vld [vmem:[#allocation5 + $0x1880] sm:$0xff]  ;;  %v1575_v30 = vld [vmem:[#allocation5 + $0x1888] sm:$0xff] }
 0x18b   :  { %6550 = vmatpush3.bf16.msra.mxu0 %v6549_v48  ;;  %v1512_v48 = vld [vmem:[#allocation5 + $0x1690] sm:$0xff] }
 0x18c   :  { %6552 = vmatprep.subr.bf16.mxu0 %v6551_v52  ;;  %v6615_v52 = vpack.c.bf16 %v1521_v27, %v1520_v41  ;;  %v1606_v41 = vld [vmem:[#allocation5 + $0x1980] sm:$0xff]  ;;  %v1607_v27 = vld [vmem:[#allocation5 + $0x1988] sm:$0xff] }
 0x18d   :  { %6582 = vmatpush3.bf16.msra.mxu1 %v6581_v59  ;;  %v4873_v7 = vpop.f32.mrb[6].mxu0  ;;  %v1544_v59 = vld [vmem:[#allocation5 + $0x1790] sm:$0xff] }
 0x18e   :  { %v4874_v11 = vpop.f32.mrb[7].mxu0  ;;  %6584 = vmatprep.subr.bf16.mxu1 %v6583_v62  ;;  %v6599_v62 = vpack.c.bf16 %v1513_v49, %v1512_v48  ;;  %v6631_v33 = vpack.c.bf16 %v1545_v60, %v1544_v59  ;;  %v6613_v48 = vpack.c.bf16 %v1503_v38, %v1502_v37  ;;  %v1552_v49 = vld [vmem:[#allocation5 + $0x17d0] sm:$0xff]  ;;  %v1522_v60 = vld [vmem:[#allocation5 + $0x16e0] sm:$0xff]  ;;  %v1541_v38 = vld [vmem:[#allocation5 + $0x1778] sm:$0xff] }
 0x18f   :  { %v4875_v15 = vadd.f32 %v4874_v11, %v4873_v7  ;;  %v4908_v17 = vpop.f32.mrb[6].mxu1  ;;  %6554 = vmatpush3.bf16.msra.mxu0 %v6553_v3  ;;  %v1514_v3 = vld [vmem:[#allocation5 + $0x16a0] sm:$0xff]  ;;  %v1516_v11 = vld [vmem:[#allocation5 + $0x16b0] sm:$0xff] }
 0x190   :  { %v4909_v22 = vpop.f32.mrb[7].mxu1  ;;  %6556 = vmatprep.subr.bf16.mxu0 %v6555_v35  ;;  %v1529_v35 = vld [vmem:[#allocation5 + $0x1718] sm:$0xff]  ;;  %v6603_v7 = vpack.c.bf16 %v1515_v44, %v1514_v3  ;;  %v6617_v3 = vpack.c.bf16 %v1505_v57, %v1504_v53  ;;  %v1554_v44 = vld [vmem:[#allocation5 + $0x17e0] sm:$0xff]  ;;  %v1540_v37 = vld [vmem:[#allocation5 + $0x1770] sm:$0xff] }
 0x191   :  { %v2436_v26 = vadd.f32 %v4875_v15, %v7664_v39  ;;  %v4910_v28 = vadd.f32 %v4909_v22, %v4908_v17  ;;  %6586 = vmatpush3.bf16.msra.mxu1 %v6585_v8  ;;  %v1498_v8 = vld [vmem:[#allocation5 + $0x1620] sm:$0xff]  ;;  %v6633_v10 = vpack.c.bf16 %v1529_v35, %v1528_v34  ;;  %v1548_v17 = vld [vmem:[#allocation5 + $0x17b0] sm:$0xff]  ;;  %v6637_v22 = vpack.c.bf16 %v1531_v14, %v1530_v13  ;;  %v1591_v57 = vld [vmem:[#allocation5 + $0x1908] sm:$0xff] }
 0x192   :  { %6588 = vmatprep.subr.bf16.mxu1 %v6587_v12  ;;  %v1517_v12 = vld [vmem:[#allocation5 + $0x16b8] sm:$0xff]  ;;  %v6605_v15 = vpack.c.bf16 %v1499_v9, %v1498_v8  ;;  %v6619_v34 = vpack.c.bf16 %v1523_v61, %v1522_v60  ;;  %v1506_v35 = vld [vmem:[#allocation5 + $0x1660] sm:$0xff]  ;;  %v1524_v8 = vld [vmem:[#allocation5 + $0x16f0] sm:$0xff] }
 0x193   :  { %v7733_v39 = vadd.f32 %v4910_v28, %v2436_v26  ;;  %6558 = vmatpush3.bf16.msra.mxu0 %v6557_v18  ;;  %v1549_v18 = vld [vmem:[#allocation5 + $0x17b8] sm:$0xff]  ;;  %v6607_v19 = vpack.c.bf16 %v1517_v12, %v1516_v11  ;;  %v114_v28 = vunpack.c.0.s8 %v7717_v32  ;;  %v1538_v12 = vld [vmem:[#allocation5 + $0x1760] sm:$0xff]  ;;  %v1587_v61 = vld [vmem:[#allocation5 + $0x18e8] sm:$0xff] }
 0x194   :  { %6560 = vmatprep.subr.bf16.mxu0 %v6559_v16  ;;  %v1518_v16 = vld [vmem:[#allocation5 + $0x16c0] sm:$0xff]  ;;  %v6639_v24 = vpack.c.bf16 %v1549_v18, %v1548_v17  ;;  %v1533_v26 = vld [vmem:[#allocation5 + $0x1738] sm:$0xff]  ;;  %v1556_v18 = vld [vmem:[#allocation5 + $0x17f0] sm:$0xff] }
 0x195   :  { %6590 = vmatpush3.bf16.msra.mxu1 %v6589_v29  ;;  %v6609_v29 = vpack.c.bf16 %v1501_v21, %v1500_v20  ;;  %v186_v46 = vand.u32 255, %v114_v28  ;;  %v1525_v9 = vld [vmem:[#allocation5 + $0x16f8] sm:$0xff]  ;;  %v1590_v53 = vld [vmem:[#allocation5 + $0x1900] sm:$0xff] }
 0x196   :  { %6592 = vmatprep.subr.bf16.mxu1 %v6591_v36  ;;  %v6611_v36 = vpack.c.bf16 %v1519_v23, %v1518_v16  ;;  %v1508_v16 = vld [vmem:[#allocation5 + $0x1670] sm:$0xff]  ;;  %v1509_v23 = vld [vmem:[#allocation5 + $0x1678] sm:$0xff] }
 0x197   :  { %6562 = vmatpush3.bf16.msra.mxu0 %v6561_v40  ;;  %v6641_v40 = vpack.c.bf16 %v1533_v26, %v1532_v25  ;;  %v258_v1 = vcvt.s32.f32 %v186_v46  ;;  %v1559_v46 = vld [vmem:[#allocation5 + $0x1808] sm:$0xff]  ;;  %v1609_v60 = vld [vmem:[#allocation5 + $0x1998] sm:$0xff] }
 0x198   :  { %6596 = vmatprep.subr.bf16.mxu0 %v6595_v43  ;;  %v1534_v43 = vld [vmem:[#allocation5 + $0x1740] sm:$0xff] }
 0x199   :  { %6594 = vmatpush3.bf16.msra.mxu1 %v6593_v47  ;;  %v119_v47 = vunpack.c.1.s8 %v7786_v31  ;;  %v6645_v59 = vpack.c.bf16 %v1535_v45, %v1534_v43  ;;  %vm330_vm6 = vcmp.ne.f32.partialorder %v258_v1, 0.0  ;;  %vm402_vm7 = vcmp.ne.f32.partialorder %v258_v1, 144.0  ;;  %v1558_v45 = vld [vmem:[#allocation5 + $0x1800] sm:$0xff] }
 0x19a   :  { %4600 = vmatmul.mubr.msk.f32.vlgmr.msra.gmra.mrb[20].mxu0 %vm7738_vm10, %v7149_v55  ;;  %6628 = vmatprep.subr.bf16.mxu1 %v6627_v51  ;;  %v116_v51 = vunpack.c.2.s8 %v7717_v32  ;;  %v1555_v32 = vld [vmem:[#allocation5 + $0x17e8] sm:$0xff]  ;;  %vm7796_vm8 = vmand %vm330_vm6, %vm402_vm7  ;;  %vm546_vm9 = vcmp.ne.f32.partialorder %v258_v1, 109.0  ;;  %v6659_v43 = vpack.c.bf16 %v1575_v30, %v1574_v54  ;;  %v7855_v30 = vld [vmem:[#allocation2 + $0x68] sm:$0xff] }
 0x19b   :  { %6598 = vmatpush3.bf16.msra.mxu0 %v6597_v58  ;;  %4603 = vmatprep.mubr.msk.f32.mxu0 %vm7767_vm3, %v7149_v55  ;;  %v121_v58 = vunpack.c.3.s8 %v7786_v31  ;;  %v6651_v11 = vpack.c.bf16 %v1555_v32, %v1554_v44  ;;  %vm7807_vm14 = vmand %vm7796_vm8, %vm546_vm9  ;;  %v1579_v44 = vld [vmem:[#allocation5 + $0x18a8] sm:$0xff] }
 0x19c   :  { %4602 = vmatmul.mubr.msk.f32.vlgmr.msra.gmra.mrb[20].mxu1 %vm616_vm4, %v7149_v55  ;;  %6600 = vmatprep.subr.bf16.mxu0 %v6599_v62  ;;  %v6647_v62 = vpack.c.bf16 %v1553_v50, %v1552_v49  ;;  %v1577_v49 = vld [vmem:[#allocation5 + $0x1898] sm:$0xff]  ;;  %v1615_v54 = vld [vmem:[#allocation5 + $0x19c8] sm:$0xff] }
 0x19d   :  { %6630 = vmatpush3.bf16.msra.mxu1 %v6629_v2  ;;  %4605 = vmatprep.mubr.msk.f32.mxu1 %vm621_vm5, %v7149_v55  ;;  %v191_v2 = vand.u32 255, %v119_v47  ;;  %v193_v5 = vand.u32 255, %v121_v58  ;;  %v6657_v47 = vpack.c.bf16 %v1541_v38, %v1540_v37  ;;  %v6661_v58 = vpack.c.bf16 %v1559_v46, %v1558_v45  ;;  %v1566_v37 = vld [vmem:[#allocation5 + $0x1840] sm:$0xff]  ;;  %v1567_v38 = vld [vmem:[#allocation5 + $0x1848] sm:$0xff]  ;;  %v1617_v50 = vld [vmem:[#allocation5 + $0x19d8] sm:$0xff] }
 0x19e   :  { %6632 = vmatprep.subr.bf16.mxu1 %v6631_v33  ;;  %v188_v33 = vand.u32 255, %v116_v51  ;;  %v6691_v51 = vpack.c.bf16 %v1607_v27, %v1606_v41  ;;  %v1584_v41 = vld [vmem:[#allocation5 + $0x18d0] sm:$0xff]  ;;  %v1585_v27 = vld [vmem:[#allocation5 + $0x18d8] sm:$0xff]  ;;  %v1599_v45 = vld [vmem:[#allocation5 + $0x1948] sm:$0xff] }
 0x19f   :  { %6602 = vmatpush3.bf16.msra.mxu0 %v6601_v4  ;;  %v1507_v4 = vld [vmem:[#allocation5 + $0x1668] sm:$0xff]  ;;  %v7791_v13 = vcvt.s32.f32 %v191_v2  ;;  %v6693_v2 = vpack.c.bf16 %v1591_v57, %v1590_v53  ;;  %v1568_v53 = vld [vmem:[#allocation5 + $0x1850] sm:$0xff]  ;;  %v1569_v57 = vld [vmem:[#allocation5 + $0x1858] sm:$0xff] }
 0x1a0   :  { %6604 = vmatprep.subr.bf16.mxu0 %v6603_v7  ;;  %v6649_v7 = vpack.c.bf16 %v1537_v0, %v1536_v63  ;;  %v6621_v17 = vpack.c.bf16 %v1507_v4, %v1506_v35  ;;  %v260_v20 = vcvt.s32.f32 %v188_v33  ;;  %v1560_v63 = vld [vmem:[#allocation5 + $0x1810] sm:$0xff]  ;;  %v1561_v0 = vld [vmem:[#allocation5 + $0x1818] sm:$0xff]  ;;  %v1610_v4 = vld [vmem:[#allocation5 + $0x19a0] sm:$0xff] }
 0x1a1   :  { %6634 = vmatpush3.bf16.msra.mxu1 %v6633_v10  ;;  %vm335_vm10 = vcmp.ne.f32.partialorder %v7791_v13, 0.0  ;;  %vm407_vm11 = vcmp.ne.f32.partialorder %v7791_v13, 144.0  ;;  %vm551_vm2 = vcmp.ne.f32.partialorder %v7791_v13, 109.0  ;;  %v1592_v33 = vld [vmem:[#allocation5 + $0x1910] sm:$0xff]  ;;  %v6665_v35 = vpack.c.bf16 %v1561_v0, %v1560_v63  ;;  %v1595_v13 = vld [vmem:[#allocation5 + $0x1928] sm:$0xff]  ;;  %v1601_v0 = vld [vmem:[#allocation5 + $0x1958] sm:$0xff] }
 0x1a2   :  { %6636 = vmatprep.subr.bf16.mxu1 %v6635_v56  ;;  %v1539_v56 = vld [vmem:[#allocation5 + $0x1768] sm:$0xff]  ;;  %vm332_vm12 = vcmp.ne.f32.partialorder %v260_v20, 0.0  ;;  %vm404_vm13 = vcmp.ne.f32.partialorder %v260_v20, 144.0  ;;  %vm7815_vm1 = vmand %vm335_vm10, %vm407_vm11  ;;  %vm548_vm4 = vcmp.ne.f32.partialorder %v260_v20, 109.0  ;;  %v1565_v20 = vld [vmem:[#allocation5 + $0x1838] sm:$0xff] }
 0x1a3   :  { %6606 = vmatpush3.bf16.msra.mxu0 %v6605_v15  ;;  %v6653_v28 = vpack.c.bf16 %v1539_v56, %v1538_v12  ;;  %vm7822_vm3 = vmand %vm332_vm12, %vm404_vm13  ;;  %v1594_v56 = vld [vmem:[#allocation5 + $0x1920] sm:$0xff]  ;;  %v1600_v63 = vld [vmem:[#allocation5 + $0x1950] sm:$0xff] }
 0x1a4   :  { %6608 = vmatprep.subr.bf16.mxu0 %v6607_v19  ;;  %v1557_v19 = vld [vmem:[#allocation5 + $0x17f8] sm:$0xff]  ;;  %vm7836_vm7 = vmand %vm7815_vm1, %vm551_vm2 }
 0x1a5   :  { %6638 = vmatpush3.bf16.msra.mxu1 %v6637_v22  ;;  %v6623_v22 = vpack.c.bf16 %v1525_v9, %v1524_v8  ;;  %vm620_vm8 = vmand %vm7822_vm3, %vm548_vm4  ;;  %v1563_v8 = vld [vmem:[#allocation5 + $0x1828] sm:$0xff] }
 0x1a6   :  { %6640 = vmatprep.subr.bf16.mxu1 %v6639_v24  ;;  %v265_v24 = vcvt.s32.f32 %v193_v5  ;;  %v1611_v5 = vld [vmem:[#allocation5 + $0x19a8] sm:$0xff] }
 0x1a7   :  { %6610 = vmatpush3.bf16.msra.mxu0 %v6609_v29  ;;  %v6699_v12 = vpack.c.bf16 %v1611_v5, %v1610_v4  ;;  %v1614_v29 = vld [vmem:[#allocation5 + $0x19c0] sm:$0xff] }
 0x1a8   :  { %6612 = vmatprep.subr.bf16.mxu0 %v6611_v36  ;;  %v6655_v36 = vpack.c.bf16 %v1557_v19, %v1556_v18  ;;  %vm337_vm15 = vcmp.ne.f32.partialorder %v265_v24, 0.0  ;;  %vm409_vm0 = vcmp.ne.f32.partialorder %v265_v24, 144.0  ;;  %vm553_vm6 = vcmp.ne.f32.partialorder %v265_v24, 109.0  ;;  %v1564_v19 = vld [vmem:[#allocation5 + $0x1830] sm:$0xff] }
 0x1a9   :  { %6642 = vmatpush3.bf16.msra.mxu1 %v6641_v40  ;;  %v6625_v40 = vpack.c.bf16 %v1509_v23, %v1508_v16  ;;  %vm7828_vm5 = vmand %vm337_vm15, %vm409_vm0  ;;  %v1583_v16 = vld [vmem:[#allocation5 + $0x18c8] sm:$0xff]  ;;  %v1596_v24 = vld [vmem:[#allocation5 + $0x1930] sm:$0xff] }
 0x1aa   :  { %6644 = vmatprep.subr.bf16.mxu1 %v6643_v42  ;;  %vm625_vm9 = vmand %vm7828_vm5, %vm553_vm6  ;;  %v6707_v42 = vpack.c.bf16 %v1615_v54, %v1614_v29  ;;  %v1638_v29 = vld [vmem:[#allocation5 + $0x1a80] sm:$0xff]  ;;  %v1639_v54 = vld [vmem:[#allocation5 + $0x1a88] sm:$0xff] }
 0x1ab   :  { %6614 = vmatpush3.bf16.msra.mxu0 %v6613_v48  ;;  %v1576_v48 = vld [vmem:[#allocation5 + $0x1890] sm:$0xff] }
 0x1ac   :  { %6616 = vmatprep.subr.bf16.mxu0 %v6615_v52  ;;  %v6679_v52 = vpack.c.bf16 %v1585_v27, %v1584_v41  ;;  %v1670_v41 = vld [vmem:[#allocation5 + $0x1b80] sm:$0xff]  ;;  %v1671_v27 = vld [vmem:[#allocation5 + $0x1b88] sm:$0xff] }
 0x1ad   :  { %6646 = vmatpush3.bf16.msra.mxu1 %v6645_v59  ;;  %v4943_v6 = vpop.f32.mrb[8].mxu0  ;;  %v1608_v59 = vld [vmem:[#allocation5 + $0x1990] sm:$0xff] }
 0x1ae   :  { %v4944_v10 = vpop.f32.mrb[9].mxu0  ;;  %6648 = vmatprep.subr.bf16.mxu1 %v6647_v62  ;;  %v6663_v62 = vpack.c.bf16 %v1577_v49, %v1576_v48  ;;  %v6695_v32 = vpack.c.bf16 %v1609_v60, %v1608_v59  ;;  %v6677_v48 = vpack.c.bf16 %v1567_v38, %v1566_v37  ;;  %v1616_v49 = vld [vmem:[#allocation5 + $0x19d0] sm:$0xff]  ;;  %v1586_v60 = vld [vmem:[#allocation5 + $0x18e0] sm:$0xff]  ;;  %v1605_v38 = vld [vmem:[#allocation5 + $0x1978] sm:$0xff] }
 0x1af   :  { %v4945_v14 = vadd.f32 %v4944_v10, %v4943_v6  ;;  %v4978_v15 = vpop.f32.mrb[8].mxu1  ;;  %6618 = vmatpush3.bf16.msra.mxu0 %v6617_v3  ;;  %v1578_v3 = vld [vmem:[#allocation5 + $0x18a0] sm:$0xff]  ;;  %v1580_v10 = vld [vmem:[#allocation5 + $0x18b0] sm:$0xff] }
 0x1b0   :  { %v4979_v21 = vpop.f32.mrb[9].mxu1  ;;  %6620 = vmatprep.subr.bf16.mxu0 %v6619_v34  ;;  %v1593_v34 = vld [vmem:[#allocation5 + $0x1918] sm:$0xff]  ;;  %v6667_v6 = vpack.c.bf16 %v1579_v44, %v1578_v3  ;;  %v6681_v3 = vpack.c.bf16 %v1569_v57, %v1568_v53  ;;  %v1618_v44 = vld [vmem:[#allocation5 + $0x19e0] sm:$0xff]  ;;  %v1604_v37 = vld [vmem:[#allocation5 + $0x1970] sm:$0xff] }
 0x1b1   :  { %v2576_v25 = vadd.f32 %v4945_v14, %v7733_v39  ;;  %v4980_v26 = vadd.f32 %v4979_v21, %v4978_v15  ;;  %6650 = vmatpush3.bf16.msra.mxu1 %v6649_v7  ;;  %v1562_v7 = vld [vmem:[#allocation5 + $0x1820] sm:$0xff]  ;;  %v6697_v9 = vpack.c.bf16 %v1593_v34, %v1592_v33  ;;  %v1612_v15 = vld [vmem:[#allocation5 + $0x19b0] sm:$0xff]  ;;  %v6701_v21 = vpack.c.bf16 %v1595_v13, %v1594_v56  ;;  %v1655_v57 = vld [vmem:[#allocation5 + $0x1b08] sm:$0xff] }
 0x1b2   :  { %6652 = vmatprep.subr.bf16.mxu1 %v6651_v11  ;;  %v1581_v11 = vld [vmem:[#allocation5 + $0x18b8] sm:$0xff]  ;;  %v6669_v14 = vpack.c.bf16 %v1563_v8, %v1562_v7  ;;  %v6683_v33 = vpack.c.bf16 %v1587_v61, %v1586_v60  ;;  %v1570_v34 = vld [vmem:[#allocation5 + $0x1860] sm:$0xff]  ;;  %v1588_v7 = vld [vmem:[#allocation5 + $0x18f0] sm:$0xff] }
 0x1b3   :  { %v7802_v39 = vadd.f32 %v4980_v26, %v2576_v25  ;;  %6622 = vmatpush3.bf16.msra.mxu0 %v6621_v17  ;;  %v1613_v17 = vld [vmem:[#allocation5 + $0x19b8] sm:$0xff]  ;;  %v6671_v18 = vpack.c.bf16 %v1581_v11, %v1580_v10  ;;  %v118_v26 = vunpack.c.0.s8 %v7786_v31  ;;  %v1602_v11 = vld [vmem:[#allocation5 + $0x1960] sm:$0xff]  ;;  %v1651_v61 = vld [vmem:[#allocation5 + $0x1ae8] sm:$0xff] }
 0x1b4   :  { %6624 = vmatprep.subr.bf16.mxu0 %v6623_v22  ;;  %v1582_v22 = vld [vmem:[#allocation5 + $0x18c0] sm:$0xff]  ;;  %v6703_v23 = vpack.c.bf16 %v1613_v17, %v1612_v15  ;;  %v1597_v25 = vld [vmem:[#allocation5 + $0x1938] sm:$0xff]  ;;  %v1620_v17 = vld [vmem:[#allocation5 + $0x19f0] sm:$0xff] }
 0x1b5   :  { %6654 = vmatpush3.bf16.msra.mxu1 %v6653_v28  ;;  %v6673_v28 = vpack.c.bf16 %v1565_v20, %v1564_v19  ;;  %v190_v46 = vand.u32 255, %v118_v26  ;;  %v1589_v8 = vld [vmem:[#allocation5 + $0x18f8] sm:$0xff]  ;;  %v1654_v53 = vld [vmem:[#allocation5 + $0x1b00] sm:$0xff] }
 0x1b6   :  { %6656 = vmatprep.subr.bf16.mxu1 %v6655_v36  ;;  %v6675_v36 = vpack.c.bf16 %v1583_v16, %v1582_v22  ;;  %v1572_v22 = vld [vmem:[#allocation5 + $0x1870] sm:$0xff]  ;;  %v1573_v16 = vld [vmem:[#allocation5 + $0x1878] sm:$0xff] }
 0x1b7   :  { %6626 = vmatpush3.bf16.msra.mxu0 %v6625_v40  ;;  %v6705_v40 = vpack.c.bf16 %v1597_v25, %v1596_v24  ;;  %v262_v1 = vcvt.s32.f32 %v190_v46  ;;  %v1623_v46 = vld [vmem:[#allocation5 + $0x1a08] sm:$0xff]  ;;  %v1673_v60 = vld [vmem:[#allocation5 + $0x1b98] sm:$0xff] }
 0x1b8   :  { %6660 = vmatprep.subr.bf16.mxu0 %v6659_v43  ;;  %v1598_v43 = vld [vmem:[#allocation5 + $0x1940] sm:$0xff] }
 0x1b9   :  { %6658 = vmatpush3.bf16.msra.mxu1 %v6657_v47  ;;  %v123_v47 = vunpack.c.1.s8 %v7855_v30  ;;  %v6709_v59 = vpack.c.bf16 %v1599_v45, %v1598_v43  ;;  %vm334_vm10 = vcmp.ne.f32.partialorder %v262_v1, 0.0  ;;  %vm406_vm11 = vcmp.ne.f32.partialorder %v262_v1, 144.0  ;;  %v1622_v45 = vld [vmem:[#allocation5 + $0x1a00] sm:$0xff] }
 0x1ba   :  { %4604 = vmatmul.mubr.msk.f32.vlgmr.msra.gmra.mrb[22].mxu0 %vm7807_vm14, %v7149_v55  ;;  %6692 = vmatprep.subr.bf16.mxu1 %v6691_v51  ;;  %v120_v51 = vunpack.c.2.s8 %v7786_v31  ;;  %v1619_v31 = vld [vmem:[#allocation5 + $0x19e8] sm:$0xff]  ;;  %vm7865_vm12 = vmand %vm334_vm10, %vm406_vm11  ;;  %vm550_vm13 = vcmp.ne.f32.partialorder %v262_v1, 109.0  ;;  %v6723_v43 = vpack.c.bf16 %v1639_v54, %v1638_v29  ;;  %v7924_v54 = vld [vmem:[#allocation2 + $0x70] sm:$0xff] }
 0x1bb   :  { %6662 = vmatpush3.bf16.msra.mxu0 %v6661_v58  ;;  %4607 = vmatprep.mubr.msk.f32.mxu0 %vm7836_vm7, %v7149_v55  ;;  %v125_v58 = vunpack.c.3.s8 %v7855_v30  ;;  %v6715_v10 = vpack.c.bf16 %v1619_v31, %v1618_v44  ;;  %vm7876_vm2 = vmand %vm7865_vm12, %vm550_vm13  ;;  %v1643_v44 = vld [vmem:[#allocation5 + $0x1aa8] sm:$0xff] }
 0x1bc   :  { %4606 = vmatmul.mubr.msk.f32.vlgmr.msra.gmra.mrb[22].mxu1 %vm620_vm8, %v7149_v55  ;;  %6664 = vmatprep.subr.bf16.mxu0 %v6663_v62  ;;  %v6711_v62 = vpack.c.bf16 %v1617_v50, %v1616_v49  ;;  %v1641_v49 = vld [vmem:[#allocation5 + $0x1a98] sm:$0xff]  ;;  %v1679_v29 = vld [vmem:[#allocation5 + $0x1bc8] sm:$0xff] }
 0x1bd   :  { %6694 = vmatpush3.bf16.msra.mxu1 %v6693_v2  ;;  %4609 = vmatprep.mubr.msk.f32.mxu1 %vm625_vm9, %v7149_v55  ;;  %v195_v2 = vand.u32 255, %v123_v47  ;;  %v197_v4 = vand.u32 255, %v125_v58  ;;  %v6721_v47 = vpack.c.bf16 %v1605_v38, %v1604_v37  ;;  %v6725_v58 = vpack.c.bf16 %v1623_v46, %v1622_v45  ;;  %v1630_v37 = vld [vmem:[#allocation5 + $0x1a40] sm:$0xff]  ;;  %v1631_v38 = vld [vmem:[#allocation5 + $0x1a48] sm:$0xff]  ;;  %v1681_v50 = vld [vmem:[#allocation5 + $0x1bd8] sm:$0xff] }
 0x1be   :  { %6696 = vmatprep.subr.bf16.mxu1 %v6695_v32  ;;  %v192_v32 = vand.u32 255, %v120_v51  ;;  %v6755_v51 = vpack.c.bf16 %v1671_v27, %v1670_v41  ;;  %v1648_v41 = vld [vmem:[#allocation5 + $0x1ad0] sm:$0xff]  ;;  %v1649_v27 = vld [vmem:[#allocation5 + $0x1ad8] sm:$0xff]  ;;  %v1663_v45 = vld [vmem:[#allocation5 + $0x1b48] sm:$0xff] }
 0x1bf   :  { %6666 = vmatpush3.bf16.msra.mxu0 %v6665_v35  ;;  %v1571_v35 = vld [vmem:[#allocation5 + $0x1868] sm:$0xff]  ;;  %v7860_v56 = vcvt.s32.f32 %v195_v2  ;;  %v6757_v2 = vpack.c.bf16 %v1655_v57, %v1654_v53  ;;  %v1632_v53 = vld [vmem:[#allocation5 + $0x1a50] sm:$0xff]  ;;  %v1633_v57 = vld [vmem:[#allocation5 + $0x1a58] sm:$0xff] }
 0x1c0   :  { %6668 = vmatprep.subr.bf16.mxu0 %v6667_v6  ;;  %v6713_v6 = vpack.c.bf16 %v1601_v0, %v1600_v63  ;;  %v6685_v15 = vpack.c.bf16 %v1571_v35, %v1570_v34  ;;  %v264_v19 = vcvt.s32.f32 %v192_v32  ;;  %v1624_v63 = vld [vmem:[#allocation5 + $0x1a10] sm:$0xff]  ;;  %v1625_v0 = vld [vmem:[#allocation5 + $0x1a18] sm:$0xff]  ;;  %v1674_v35 = vld [vmem:[#allocation5 + $0x1ba0] sm:$0xff] }
 0x1c1   :  { %6698 = vmatpush3.bf16.msra.mxu1 %v6697_v9  ;;  %vm339_vm14 = vcmp.ne.f32.partialorder %v7860_v56, 0.0  ;;  %vm411_vm15 = vcmp.ne.f32.partialorder %v7860_v56, 144.0  ;;  %vm555_vm6 = vcmp.ne.f32.partialorder %v7860_v56, 109.0  ;;  %v1656_v32 = vld [vmem:[#allocation5 + $0x1b10] sm:$0xff]  ;;  %v6729_v34 = vpack.c.bf16 %v1625_v0, %v1624_v63  ;;  %v1659_v56 = vld [vmem:[#allocation5 + $0x1b28] sm:$0xff]  ;;  %v1665_v0 = vld [vmem:[#allocation5 + $0x1b58] sm:$0xff] }
 0x1c2   :  { %6700 = vmatprep.subr.bf16.mxu1 %v6699_v12  ;;  %v1603_v12 = vld [vmem:[#allocation5 + $0x1968] sm:$0xff]  ;;  %vm336_vm0 = vcmp.ne.f32.partialorder %v264_v19, 0.0  ;;  %vm408_vm1 = vcmp.ne.f32.partialorder %v264_v19, 144.0  ;;  %vm7884_vm5 = vmand %vm339_vm14, %vm411_vm15  ;;  %vm552_vm8 = vcmp.ne.f32.partialorder %v264_v19, 109.0  ;;  %v1629_v19 = vld [vmem:[#allocation5 + $0x1a38] sm:$0xff] }
 0x1c3   :  { %6670 = vmatpush3.bf16.msra.mxu0 %v6669_v14  ;;  %v6717_v26 = vpack.c.bf16 %v1603_v12, %v1602_v11  ;;  %vm7891_vm7 = vmand %vm336_vm0, %vm408_vm1  ;;  %v1658_v12 = vld [vmem:[#allocation5 + $0x1b20] sm:$0xff]  ;;  %v1664_v63 = vld [vmem:[#allocation5 + $0x1b50] sm:$0xff] }
 0x1c4   :  { %6672 = vmatprep.subr.bf16.mxu0 %v6671_v18  ;;  %v1621_v18 = vld [vmem:[#allocation5 + $0x19f8] sm:$0xff]  ;;  %vm7905_vm11 = vmand %vm7884_vm5, %vm555_vm6 }
 0x1c5   :  { %6702 = vmatpush3.bf16.msra.mxu1 %v6701_v21  ;;  %v6687_v21 = vpack.c.bf16 %v1589_v8, %v1588_v7  ;;  %vm624_vm12 = vmand %vm7891_vm7, %vm552_vm8  ;;  %v1627_v7 = vld [vmem:[#allocation5 + $0x1a28] sm:$0xff] }
 0x1c6   :  { %6704 = vmatprep.subr.bf16.mxu1 %v6703_v23  ;;  %v269_v23 = vcvt.s32.f32 %v197_v4  ;;  %v1675_v4 = vld [vmem:[#allocation5 + $0x1ba8] sm:$0xff] }
 0x1c7   :  { %6674 = vmatpush3.bf16.msra.mxu0 %v6673_v28  ;;  %v6763_v11 = vpack.c.bf16 %v1675_v4, %v1674_v35  ;;  %v1678_v28 = vld [vmem:[#allocation5 + $0x1bc0] sm:$0xff] }
 0x1c8   :  { %6676 = vmatprep.subr.bf16.mxu0 %v6675_v36  ;;  %v6719_v36 = vpack.c.bf16 %v1621_v18, %v1620_v17  ;;  %vm341_vm3 = vcmp.ne.f32.partialorder %v269_v23, 0.0  ;;  %vm413_vm4 = vcmp.ne.f32.partialorder %v269_v23, 144.0  ;;  %vm557_vm10 = vcmp.ne.f32.partialorder %v269_v23, 109.0  ;;  %v1628_v18 = vld [vmem:[#allocation5 + $0x1a30] sm:$0xff] }
 0x1c9   :  { %6706 = vmatpush3.bf16.msra.mxu1 %v6705_v40  ;;  %v6689_v40 = vpack.c.bf16 %v1573_v16, %v1572_v22  ;;  %vm7897_vm9 = vmand %vm341_vm3, %vm413_vm4  ;;  %v1647_v22 = vld [vmem:[#allocation5 + $0x1ac8] sm:$0xff]  ;;  %v1660_v23 = vld [vmem:[#allocation5 + $0x1b30] sm:$0xff] }
 0x1ca   :  { %6708 = vmatprep.subr.bf16.mxu1 %v6707_v42  ;;  %vm629_vm13 = vmand %vm7897_vm9, %vm557_vm10  ;;  %v6771_v42 = vpack.c.bf16 %v1679_v29, %v1678_v28  ;;  %v1702_v28 = vld [vmem:[#allocation5 + $0x1c80] sm:$0xff]  ;;  %v1703_v29 = vld [vmem:[#allocation5 + $0x1c88] sm:$0xff] }
 0x1cb   :  { %6678 = vmatpush3.bf16.msra.mxu0 %v6677_v48  ;;  %v1640_v48 = vld [vmem:[#allocation5 + $0x1a90] sm:$0xff] }
 0x1cc   :  { %6680 = vmatprep.subr.bf16.mxu0 %v6679_v52  ;;  %v6743_v52 = vpack.c.bf16 %v1649_v27, %v1648_v41  ;;  %v1734_v41 = vld [vmem:[#allocation5 + $0x1d80] sm:$0xff]  ;;  %v1735_v27 = vld [vmem:[#allocation5 + $0x1d88] sm:$0xff] }
 0x1cd   :  { %6710 = vmatpush3.bf16.msra.mxu1 %v6709_v59  ;;  %v5013_v5 = vpop.f32.mrb[10].mxu0  ;;  %v1672_v59 = vld [vmem:[#allocation5 + $0x1b90] sm:$0xff] }
 0x1ce   :  { %v5014_v9 = vpop.f32.mrb[11].mxu0  ;;  %6712 = vmatprep.subr.bf16.mxu1 %v6711_v62  ;;  %v6727_v62 = vpack.c.bf16 %v1641_v49, %v1640_v48  ;;  %v6759_v31 = vpack.c.bf16 %v1673_v60, %v1672_v59  ;;  %v6741_v48 = vpack.c.bf16 %v1631_v38, %v1630_v37  ;;  %v1680_v49 = vld [vmem:[#allocation5 + $0x1bd0] sm:$0xff]  ;;  %v1650_v60 = vld [vmem:[#allocation5 + $0x1ae0] sm:$0xff]  ;;  %v1669_v38 = vld [vmem:[#allocation5 + $0x1b78] sm:$0xff] }
 0x1cf   :  { %v5015_v13 = vadd.f32 %v5014_v9, %v5013_v5  ;;  %v5048_v14 = vpop.f32.mrb[10].mxu1  ;;  %6682 = vmatpush3.bf16.msra.mxu0 %v6681_v3  ;;  %v1642_v3 = vld [vmem:[#allocation5 + $0x1aa0] sm:$0xff]  ;;  %v1644_v9 = vld [vmem:[#allocation5 + $0x1ab0] sm:$0xff] }
 0x1d0   :  { %v5049_v20 = vpop.f32.mrb[11].mxu1  ;;  %6684 = vmatprep.subr.bf16.mxu0 %v6683_v33  ;;  %v1657_v33 = vld [vmem:[#allocation5 + $0x1b18] sm:$0xff]  ;;  %v6731_v5 = vpack.c.bf16 %v1643_v44, %v1642_v3  ;;  %v6745_v3 = vpack.c.bf16 %v1633_v57, %v1632_v53  ;;  %v1682_v44 = vld [vmem:[#allocation5 + $0x1be0] sm:$0xff]  ;;  %v1668_v37 = vld [vmem:[#allocation5 + $0x1b70] sm:$0xff] }
 0x1d1   :  { %v2716_v24 = vadd.f32 %v5015_v13, %v7802_v39  ;;  %v5050_v25 = vadd.f32 %v5049_v20, %v5048_v14  ;;  %6714 = vmatpush3.bf16.msra.mxu1 %v6713_v6  ;;  %v1626_v6 = vld [vmem:[#allocation5 + $0x1a20] sm:$0xff]  ;;  %v6761_v8 = vpack.c.bf16 %v1657_v33, %v1656_v32  ;;  %v1676_v14 = vld [vmem:[#allocation5 + $0x1bb0] sm:$0xff]  ;;  %v6765_v20 = vpack.c.bf16 %v1659_v56, %v1658_v12  ;;  %v1719_v57 = vld [vmem:[#allocation5 + $0x1d08] sm:$0xff] }
 0x1d2   :  { %6716 = vmatprep.subr.bf16.mxu1 %v6715_v10  ;;  %v1645_v10 = vld [vmem:[#allocation5 + $0x1ab8] sm:$0xff]  ;;  %v6733_v13 = vpack.c.bf16 %v1627_v7, %v1626_v6  ;;  %v6747_v32 = vpack.c.bf16 %v1651_v61, %v1650_v60  ;;  %v1634_v33 = vld [vmem:[#allocation5 + $0x1a60] sm:$0xff]  ;;  %v1652_v6 = vld [vmem:[#allocation5 + $0x1af0] sm:$0xff] }
 0x1d3   :  { %v7871_v39 = vadd.f32 %v5050_v25, %v2716_v24  ;;  %6686 = vmatpush3.bf16.msra.mxu0 %v6685_v15  ;;  %v1677_v15 = vld [vmem:[#allocation5 + $0x1bb8] sm:$0xff]  ;;  %v6735_v17 = vpack.c.bf16 %v1645_v10, %v1644_v9  ;;  %v122_v25 = vunpack.c.0.s8 %v7855_v30  ;;  %v1666_v10 = vld [vmem:[#allocation5 + $0x1b60] sm:$0xff]  ;;  %v1715_v61 = vld [vmem:[#allocation5 + $0x1ce8] sm:$0xff] }
 0x1d4   :  { %6688 = vmatprep.subr.bf16.mxu0 %v6687_v21  ;;  %v1646_v21 = vld [vmem:[#allocation5 + $0x1ac0] sm:$0xff]  ;;  %v6767_v16 = vpack.c.bf16 %v1677_v15, %v1676_v14  ;;  %v1661_v24 = vld [vmem:[#allocation5 + $0x1b38] sm:$0xff]  ;;  %v1684_v15 = vld [vmem:[#allocation5 + $0x1bf0] sm:$0xff] }
 0x1d5   :  { %6718 = vmatpush3.bf16.msra.mxu1 %v6717_v26  ;;  %v6737_v26 = vpack.c.bf16 %v1629_v19, %v1628_v18  ;;  %v194_v46 = vand.u32 255, %v122_v25  ;;  %v1653_v7 = vld [vmem:[#allocation5 + $0x1af8] sm:$0xff]  ;;  %v1718_v53 = vld [vmem:[#allocation5 + $0x1d00] sm:$0xff] }
 0x1d6   :  { %6720 = vmatprep.subr.bf16.mxu1 %v6719_v36  ;;  %v6739_v36 = vpack.c.bf16 %v1647_v22, %v1646_v21  ;;  %v1636_v21 = vld [vmem:[#allocation5 + $0x1a70] sm:$0xff]  ;;  %v1637_v22 = vld [vmem:[#allocation5 + $0x1a78] sm:$0xff] }
 0x1d7   :  { %6690 = vmatpush3.bf16.msra.mxu0 %v6689_v40  ;;  %v6769_v40 = vpack.c.bf16 %v1661_v24, %v1660_v23  ;;  %v266_v1 = vcvt.s32.f32 %v194_v46  ;;  %v1687_v46 = vld [vmem:[#allocation5 + $0x1c08] sm:$0xff]  ;;  %v1737_v60 = vld [vmem:[#allocation5 + $0x1d98] sm:$0xff] }
 0x1d8   :  { %6724 = vmatprep.subr.bf16.mxu0 %v6723_v43  ;;  %v1662_v43 = vld [vmem:[#allocation5 + $0x1b40] sm:$0xff] }
 0x1d9   :  { %6722 = vmatpush3.bf16.msra.mxu1 %v6721_v47  ;;  %v127_v47 = vunpack.c.1.s8 %v7924_v54  ;;  %v6773_v59 = vpack.c.bf16 %v1663_v45, %v1662_v43  ;;  %vm338_vm14 = vcmp.ne.f32.partialorder %v266_v1, 0.0  ;;  %vm410_vm15 = vcmp.ne.f32.partialorder %v266_v1, 144.0  ;;  %v1686_v45 = vld [vmem:[#allocation5 + $0x1c00] sm:$0xff] }
 0x1da   :  { %4608 = vmatmul.mubr.msk.f32.vlgmr.msra.gmra.mrb[24].mxu0 %vm7876_vm2, %v7149_v55  ;;  %6756 = vmatprep.subr.bf16.mxu1 %v6755_v51  ;;  %v124_v51 = vunpack.c.2.s8 %v7855_v30  ;;  %v1683_v30 = vld [vmem:[#allocation5 + $0x1be8] sm:$0xff]  ;;  %vm7934_vm0 = vmand %vm338_vm14, %vm410_vm15  ;;  %vm554_vm1 = vcmp.ne.f32.partialorder %v266_v1, 109.0  ;;  %v6787_v43 = vpack.c.bf16 %v1703_v29, %v1702_v28 }
 0x1db   :  { %6726 = vmatpush3.bf16.msra.mxu0 %v6725_v58  ;;  %4611 = vmatprep.mubr.msk.f32.mxu0 %vm7905_vm11, %v7149_v55  ;;  %v129_v58 = vunpack.c.3.s8 %v7924_v54  ;;  %v6779_v9 = vpack.c.bf16 %v1683_v30, %v1682_v44  ;;  %vm7945_vm6 = vmand %vm7934_vm0, %vm554_vm1  ;;  %v1707_v44 = vld [vmem:[#allocation5 + $0x1ca8] sm:$0xff] }
 0x1dc   :  { %4610 = vmatmul.mubr.msk.f32.vlgmr.msra.gmra.mrb[24].mxu1 %vm624_vm12, %v7149_v55  ;;  %6728 = vmatprep.subr.bf16.mxu0 %v6727_v62  ;;  %v6775_v62 = vpack.c.bf16 %v1681_v50, %v1680_v49  ;;  %v1705_v49 = vld [vmem:[#allocation5 + $0x1c98] sm:$0xff]  ;;  %v1743_v28 = vld [vmem:[#allocation5 + $0x1dc8] sm:$0xff] }
 0x1dd   :  { %6758 = vmatpush3.bf16.msra.mxu1 %v6757_v2  ;;  %4613 = vmatprep.mubr.msk.f32.mxu1 %vm629_vm13, %v7149_v55  ;;  %v199_v2 = vand.u32 255, %v127_v47  ;;  %v201_v35 = vand.u32 255, %v129_v58  ;;  %v6785_v47 = vpack.c.bf16 %v1669_v38, %v1668_v37  ;;  %v6789_v58 = vpack.c.bf16 %v1687_v46, %v1686_v45  ;;  %v7993_v29 = vld [vmem:[#allocation2 + $0x78] sm:$0xff]  ;;  %v1694_v37 = vld [vmem:[#allocation5 + $0x1c40] sm:$0xff]  ;;  %v1745_v50 = vld [vmem:[#allocation5 + $0x1dd8] sm:$0xff] }
 0x1de   :  { %6760 = vmatprep.subr.bf16.mxu1 %v6759_v31  ;;  %v196_v31 = vand.u32 255, %v124_v51  ;;  %v6819_v51 = vpack.c.bf16 %v1735_v27, %v1734_v41  ;;  %v1695_v38 = vld [vmem:[#allocation5 + $0x1c48] sm:$0xff]  ;;  %v1712_v41 = vld [vmem:[#allocation5 + $0x1cd0] sm:$0xff]  ;;  %v1713_v27 = vld [vmem:[#allocation5 + $0x1cd8] sm:$0xff] }
 0x1df   :  { %6730 = vmatpush3.bf16.msra.mxu0 %v6729_v34  ;;  %v1635_v34 = vld [vmem:[#allocation5 + $0x1a68] sm:$0xff]  ;;  %v7929_v12 = vcvt.s32.f32 %v199_v2  ;;  %v6821_v2 = vpack.c.bf16 %v1719_v57, %v1718_v53  ;;  %v1696_v53 = vld [vmem:[#allocation5 + $0x1c50] sm:$0xff]  ;;  %v1697_v57 = vld [vmem:[#allocation5 + $0x1c58] sm:$0xff] }
 0x1e0   :  { %6732 = vmatprep.subr.bf16.mxu0 %v6731_v5  ;;  %v6777_v5 = vpack.c.bf16 %v1665_v0, %v1664_v63  ;;  %v6749_v14 = vpack.c.bf16 %v1635_v34, %v1634_v33  ;;  %v268_v18 = vcvt.s32.f32 %v196_v31  ;;  %v1688_v63 = vld [vmem:[#allocation5 + $0x1c10] sm:$0xff]  ;;  %v1689_v0 = vld [vmem:[#allocation5 + $0x1c18] sm:$0xff]  ;;  %v1738_v34 = vld [vmem:[#allocation5 + $0x1da0] sm:$0xff] }
 0x1e1   :  { %6762 = vmatpush3.bf16.msra.mxu1 %v6761_v8  ;;  %vm343_vm2 = vcmp.ne.f32.partialorder %v7929_v12, 0.0  ;;  %vm415_vm3 = vcmp.ne.f32.partialorder %v7929_v12, 144.0  ;;  %vm559_vm10 = vcmp.ne.f32.partialorder %v7929_v12, 109.0  ;;  %v1720_v31 = vld [vmem:[#allocation5 + $0x1d10] sm:$0xff]  ;;  %v6793_v33 = vpack.c.bf16 %v1689_v0, %v1688_v63  ;;  %v1723_v12 = vld [vmem:[#allocation5 + $0x1d28] sm:$0xff]  ;;  %v1729_v0 = vld [vmem:[#allocation5 + $0x1d58] sm:$0xff] }
 0x1e2   :  { %6764 = vmatprep.subr.bf16.mxu1 %v6763_v11  ;;  %v1667_v11 = vld [vmem:[#allocation5 + $0x1b68] sm:$0xff]  ;;  %vm340_vm4 = vcmp.ne.f32.partialorder %v268_v18, 0.0  ;;  %vm412_vm5 = vcmp.ne.f32.partialorder %v268_v18, 144.0  ;;  %vm7953_vm9 = vmand %vm343_vm2, %vm415_vm3  ;;  %vm556_vm12 = vcmp.ne.f32.partialorder %v268_v18, 109.0  ;;  %v1693_v18 = vld [vmem:[#allocation5 + $0x1c38] sm:$0xff] }
 0x1e3   :  { %6734 = vmatpush3.bf16.msra.mxu0 %v6733_v13  ;;  %v6781_v25 = vpack.c.bf16 %v1667_v11, %v1666_v10  ;;  %vm7960_vm11 = vmand %vm340_vm4, %vm412_vm5  ;;  %v1722_v11 = vld [vmem:[#allocation5 + $0x1d20] sm:$0xff]  ;;  %v1727_v45 = vld [vmem:[#allocation5 + $0x1d48] sm:$0xff] }
 0x1e4   :  { %6736 = vmatprep.subr.bf16.mxu0 %v6735_v17  ;;  %v1685_v17 = vld [vmem:[#allocation5 + $0x1bf8] sm:$0xff]  ;;  %vm7974_vm15 = vmand %vm7953_vm9, %vm559_vm10  ;;  %v1728_v63 = vld [vmem:[#allocation5 + $0x1d50] sm:$0xff] }
 0x1e5   :  { %6766 = vmatpush3.bf16.msra.mxu1 %v6765_v20  ;;  %v6751_v20 = vpack.c.bf16 %v1653_v7, %v1652_v6  ;;  %vm628_vm0 = vmand %vm7960_vm11, %vm556_vm12  ;;  %v1691_v6 = vld [vmem:[#allocation5 + $0x1c28] sm:$0xff] }
 0x1e6   :  { %6768 = vmatprep.subr.bf16.mxu1 %v6767_v16  ;;  %v273_v16 = vcvt.s32.f32 %v201_v35  ;;  %v1739_v35 = vld [vmem:[#allocation5 + $0x1da8] sm:$0xff] }
 0x1e7   :  { %6738 = vmatpush3.bf16.msra.mxu0 %v6737_v26  ;;  %v6827_v10 = vpack.c.bf16 %v1739_v35, %v1738_v34  ;;  %v1742_v26 = vld [vmem:[#allocation5 + $0x1dc0] sm:$0xff] }
 0x1e8   :  { %6740 = vmatprep.subr.bf16.mxu0 %v6739_v36  ;;  %v6783_v36 = vpack.c.bf16 %v1685_v17, %v1684_v15  ;;  %vm345_vm7 = vcmp.ne.f32.partialorder %v273_v16, 0.0  ;;  %vm417_vm8 = vcmp.ne.f32.partialorder %v273_v16, 144.0  ;;  %vm561_vm14 = vcmp.ne.f32.partialorder %v273_v16, 109.0  ;;  %v1692_v17 = vld [vmem:[#allocation5 + $0x1c30] sm:$0xff] }
 0x1e9   :  { %6770 = vmatpush3.bf16.msra.mxu1 %v6769_v40  ;;  %v6753_v40 = vpack.c.bf16 %v1637_v22, %v1636_v21  ;;  %vm7966_vm13 = vmand %vm345_vm7, %vm417_vm8  ;;  %v1711_v21 = vld [vmem:[#allocation5 + $0x1cc8] sm:$0xff]  ;;  %v1724_v16 = vld [vmem:[#allocation5 + $0x1d30] sm:$0xff] }
 0x1ea   :  { %6772 = vmatprep.subr.bf16.mxu1 %v6771_v42  ;;  %vm633_vm1 = vmand %vm7966_vm13, %vm561_vm14  ;;  %v6835_v42 = vpack.c.bf16 %v1743_v28, %v1742_v26  ;;  %v1766_v26 = vld [vmem:[#allocation5 + $0x1e80] sm:$0xff]  ;;  %v1767_v28 = vld [vmem:[#allocation5 + $0x1e88] sm:$0xff] }
 0x1eb   :  { %6742 = vmatpush3.bf16.msra.mxu0 %v6741_v48  ;;  %v1704_v48 = vld [vmem:[#allocation5 + $0x1c90] sm:$0xff] }
 0x1ec   :  { %6744 = vmatprep.subr.bf16.mxu0 %v6743_v52  ;;  %v6807_v52 = vpack.c.bf16 %v1713_v27, %v1712_v41  ;;  %v1798_v41 = vld [vmem:[#allocation5 + $0x1f80] sm:$0xff]  ;;  %v1799_v27 = vld [vmem:[#allocation5 + $0x1f88] sm:$0xff] }
 0x1ed   :  { %6774 = vmatpush3.bf16.msra.mxu1 %v6773_v59  ;;  %v5083_v4 = vpop.f32.mrb[12].mxu0  ;;  %v1736_v59 = vld [vmem:[#allocation5 + $0x1d90] sm:$0xff] }
 0x1ee   :  { %v5084_v8 = vpop.f32.mrb[13].mxu0  ;;  %6776 = vmatprep.subr.bf16.mxu1 %v6775_v62  ;;  %v6791_v62 = vpack.c.bf16 %v1705_v49, %v1704_v48  ;;  %v6823_v30 = vpack.c.bf16 %v1737_v60, %v1736_v59  ;;  %v6805_v48 = vpack.c.bf16 %v1695_v38, %v1694_v37  ;;  %v1744_v49 = vld [vmem:[#allocation5 + $0x1dd0] sm:$0xff]  ;;  %v1714_v60 = vld [vmem:[#allocation5 + $0x1ce0] sm:$0xff]  ;;  %v1733_v38 = vld [vmem:[#allocation5 + $0x1d78] sm:$0xff] }
 0x1ef   :  { %v5085_v56 = vadd.f32 %v5084_v8, %v5083_v4  ;;  %v5118_v13 = vpop.f32.mrb[12].mxu1  ;;  %6746 = vmatpush3.bf16.msra.mxu0 %v6745_v3  ;;  %v1706_v3 = vld [vmem:[#allocation5 + $0x1ca0] sm:$0xff]  ;;  %v1708_v8 = vld [vmem:[#allocation5 + $0x1cb0] sm:$0xff] }
 0x1f0   :  { %v5119_v19 = vpop.f32.mrb[13].mxu1  ;;  %6748 = vmatprep.subr.bf16.mxu0 %v6747_v32  ;;  %v1721_v32 = vld [vmem:[#allocation5 + $0x1d18] sm:$0xff]  ;;  %v6795_v4 = vpack.c.bf16 %v1707_v44, %v1706_v3  ;;  %v6809_v3 = vpack.c.bf16 %v1697_v57, %v1696_v53  ;;  %v1746_v44 = vld [vmem:[#allocation5 + $0x1de0] sm:$0xff]  ;;  %v1732_v37 = vld [vmem:[#allocation5 + $0x1d70] sm:$0xff] }
 0x1f1   :  { %v2856_v23 = vadd.f32 %v5085_v56, %v7871_v39  ;;  %v5120_v24 = vadd.f32 %v5119_v19, %v5118_v13  ;;  %6778 = vmatpush3.bf16.msra.mxu1 %v6777_v5  ;;  %v1690_v5 = vld [vmem:[#allocation5 + $0x1c20] sm:$0xff]  ;;  %v6825_v7 = vpack.c.bf16 %v1721_v32, %v1720_v31  ;;  %v1740_v13 = vld [vmem:[#allocation5 + $0x1db0] sm:$0xff]  ;;  %v6829_v19 = vpack.c.bf16 %v1723_v12, %v1722_v11  ;;  %v1783_v57 = vld [vmem:[#allocation5 + $0x1f08] sm:$0xff] }
 0x1f2   :  { %6780 = vmatprep.subr.bf16.mxu1 %v6779_v9  ;;  %v1709_v9 = vld [vmem:[#allocation5 + $0x1cb8] sm:$0xff]  ;;  %v6797_v56 = vpack.c.bf16 %v1691_v6, %v1690_v5  ;;  %v6811_v31 = vpack.c.bf16 %v1715_v61, %v1714_v60  ;;  %v1698_v32 = vld [vmem:[#allocation5 + $0x1c60] sm:$0xff]  ;;  %v1716_v5 = vld [vmem:[#allocation5 + $0x1cf0] sm:$0xff] }
 0x1f3   :  { %v7940_v39 = vadd.f32 %v5120_v24, %v2856_v23  ;;  %6750 = vmatpush3.bf16.msra.mxu0 %v6749_v14  ;;  %v1741_v14 = vld [vmem:[#allocation5 + $0x1db8] sm:$0xff]  ;;  %v6799_v15 = vpack.c.bf16 %v1709_v9, %v1708_v8  ;;  %v126_v24 = vunpack.c.0.s8 %v7924_v54  ;;  %v1730_v9 = vld [vmem:[#allocation5 + $0x1d60] sm:$0xff]  ;;  %v1779_v61 = vld [vmem:[#allocation5 + $0x1ee8] sm:$0xff] }
 0x1f4   :  { %6752 = vmatprep.subr.bf16.mxu0 %v6751_v20  ;;  %v1710_v20 = vld [vmem:[#allocation5 + $0x1cc0] sm:$0xff]  ;;  %v6831_v22 = vpack.c.bf16 %v1741_v14, %v1740_v13  ;;  %v1725_v23 = vld [vmem:[#allocation5 + $0x1d38] sm:$0xff]  ;;  %v1748_v14 = vld [vmem:[#allocation5 + $0x1df0] sm:$0xff] }
 0x1f5   :  { %6782 = vmatpush3.bf16.msra.mxu1 %v6781_v25  ;;  %v6801_v25 = vpack.c.bf16 %v1693_v18, %v1692_v17  ;;  %v198_v46 = vand.u32 255, %v126_v24  ;;  %v1717_v6 = vld [vmem:[#allocation5 + $0x1cf8] sm:$0xff]  ;;  %v1782_v53 = vld [vmem:[#allocation5 + $0x1f00] sm:$0xff] }
 0x1f6   :  { %6784 = vmatprep.subr.bf16.mxu1 %v6783_v36  ;;  %v6803_v36 = vpack.c.bf16 %v1711_v21, %v1710_v20  ;;  %v1700_v20 = vld [vmem:[#allocation5 + $0x1c70] sm:$0xff]  ;;  %v1701_v21 = vld [vmem:[#allocation5 + $0x1c78] sm:$0xff] }
 0x1f7   :  { %6754 = vmatpush3.bf16.msra.mxu0 %v6753_v40  ;;  %v6833_v40 = vpack.c.bf16 %v1725_v23, %v1724_v16  ;;  %v270_v1 = vcvt.s32.f32 %v198_v46  ;;  %v1751_v46 = vld [vmem:[#allocation5 + $0x1e08] sm:$0xff]  ;;  %v1801_v60 = vld [vmem:[#allocation5 + $0x1f98] sm:$0xff] }
 0x1f8   :  { %6788 = vmatprep.subr.bf16.mxu0 %v6787_v43  ;;  %v1726_v43 = vld [vmem:[#allocation5 + $0x1d40] sm:$0xff] }
 0x1f9   :  { %6786 = vmatpush3.bf16.msra.mxu1 %v6785_v47  ;;  %v131_v47 = vunpack.c.1.s8 %v7993_v29  ;;  %v6837_v59 = vpack.c.bf16 %v1727_v45, %v1726_v43  ;;  %vm342_vm2 = vcmp.ne.f32.partialorder %v270_v1, 0.0  ;;  %vm414_vm3 = vcmp.ne.f32.partialorder %v270_v1, 144.0  ;;  %v1750_v45 = vld [vmem:[#allocation5 + $0x1e00] sm:$0xff] }
 0x1fa   :  { %4612 = vmatmul.mubr.msk.f32.vlgmr.msra.gmra.mrb[26].mxu0 %vm7945_vm6, %v7149_v55  ;;  %6820 = vmatprep.subr.bf16.mxu1 %v6819_v51  ;;  %v128_v51 = vunpack.c.2.s8 %v7924_v54  ;;  %v1747_v54 = vld [vmem:[#allocation5 + $0x1de8] sm:$0xff]  ;;  %vm8003_vm4 = vmand %vm342_vm2, %vm414_vm3  ;;  %vm558_vm5 = vcmp.ne.f32.partialorder %v270_v1, 109.0  ;;  %v6851_v43 = vpack.c.bf16 %v1767_v28, %v1766_v26  ;;  %v8062_v28 = vld [vmem:[#allocation2 + $0x80] sm:$0xff] }
 0x1fb   :  { %6790 = vmatpush3.bf16.msra.mxu0 %v6789_v58  ;;  %4615 = vmatprep.mubr.msk.f32.mxu0 %vm7974_vm15, %v7149_v55  ;;  %v133_v58 = vunpack.c.3.s8 %v7993_v29  ;;  %v6843_v8 = vpack.c.bf16 %v1747_v54, %v1746_v44  ;;  %vm8014_vm10 = vmand %vm8003_vm4, %vm558_vm5  ;;  %v1771_v44 = vld [vmem:[#allocation5 + $0x1ea8] sm:$0xff] }
 0x1fc   :  { %4614 = vmatmul.mubr.msk.f32.vlgmr.msra.gmra.mrb[26].mxu1 %vm628_vm0, %v7149_v55  ;;  %6792 = vmatprep.subr.bf16.mxu0 %v6791_v62  ;;  %v6839_v62 = vpack.c.bf16 %v1745_v50, %v1744_v49  ;;  %v1769_v49 = vld [vmem:[#allocation5 + $0x1e98] sm:$0xff]  ;;  %v1807_v26 = vld [vmem:[#allocation5 + $0x1fc8] sm:$0xff] }
 0x1fd   :  { %6822 = vmatpush3.bf16.msra.mxu1 %v6821_v2  ;;  %4617 = vmatprep.mubr.msk.f32.mxu1 %vm633_vm1, %v7149_v55  ;;  %v203_v2 = vand.u32 255, %v131_v47  ;;  %v205_v34 = vand.u32 255, %v133_v58  ;;  %v6849_v47 = vpack.c.bf16 %v1733_v38, %v1732_v37  ;;  %v6853_v58 = vpack.c.bf16 %v1751_v46, %v1750_v45  ;;  %v1758_v37 = vld [vmem:[#allocation5 + $0x1e40] sm:$0xff]  ;;  %v1759_v38 = vld [vmem:[#allocation5 + $0x1e48] sm:$0xff]  ;;  %v1809_v50 = vld [vmem:[#allocation5 + $0x1fd8] sm:$0xff] }
 0x1fe   :  { %6824 = vmatprep.subr.bf16.mxu1 %v6823_v30  ;;  %v200_v30 = vand.u32 255, %v128_v51  ;;  %v6883_v51 = vpack.c.bf16 %v1799_v27, %v1798_v41  ;;  %v1776_v41 = vld [vmem:[#allocation5 + $0x1ed0] sm:$0xff]  ;;  %v1777_v27 = vld [vmem:[#allocation5 + $0x1ed8] sm:$0xff]  ;;  %v1791_v45 = vld [vmem:[#allocation5 + $0x1f48] sm:$0xff] }
 0x1ff   :  { %6794 = vmatpush3.bf16.msra.mxu0 %v6793_v33  ;;  %v1699_v33 = vld [vmem:[#allocation5 + $0x1c68] sm:$0xff]  ;;  %v7998_v11 = vcvt.s32.f32 %v203_v2  ;;  %v6885_v2 = vpack.c.bf16 %v1783_v57, %v1782_v53  ;;  %v1760_v53 = vld [vmem:[#allocation5 + $0x1e50] sm:$0xff]  ;;  %v1761_v57 = vld [vmem:[#allocation5 + $0x1e58] sm:$0xff] }
 0x200   :  { %6796 = vmatprep.subr.bf16.mxu0 %v6795_v4  ;;  %v6841_v4 = vpack.c.bf16 %v1729_v0, %v1728_v63  ;;  %v6813_v13 = vpack.c.bf16 %v1699_v33, %v1698_v32  ;;  %v272_v17 = vcvt.s32.f32 %v200_v30  ;;  %v1752_v63 = vld [vmem:[#allocation5 + $0x1e10] sm:$0xff]  ;;  %v1753_v0 = vld [vmem:[#allocation5 + $0x1e18] sm:$0xff]  ;;  %v1802_v33 = vld [vmem:[#allocation5 + $0x1fa0] sm:$0xff] }
 0x201   :  { %6826 = vmatpush3.bf16.msra.mxu1 %v6825_v7  ;;  %vm347_vm6 = vcmp.ne.f32.partialorder %v7998_v11, 0.0  ;;  %vm419_vm7 = vcmp.ne.f32.partialorder %v7998_v11, 144.0  ;;  %vm563_vm14 = vcmp.ne.f32.partialorder %v7998_v11, 109.0  ;;  %v1784_v30 = vld [vmem:[#allocation5 + $0x1f10] sm:$0xff]  ;;  %v6857_v32 = vpack.c.bf16 %v1753_v0, %v1752_v63  ;;  %v1787_v11 = vld [vmem:[#allocation5 + $0x1f28] sm:$0xff]  ;;  %v1793_v0 = vld [vmem:[#allocation5 + $0x1f58] sm:$0xff] }
 0x202   :  { %6828 = vmatprep.subr.bf16.mxu1 %v6827_v10  ;;  %v1731_v10 = vld [vmem:[#allocation5 + $0x1d68] sm:$0xff]  ;;  %vm344_vm8 = vcmp.ne.f32.partialorder %v272_v17, 0.0  ;;  %vm416_vm9 = vcmp.ne.f32.partialorder %v272_v17, 144.0  ;;  %vm8022_vm13 = vmand %vm347_vm6, %vm419_vm7  ;;  %vm560_vm0 = vcmp.ne.f32.partialorder %v272_v17, 109.0  ;;  %v1757_v17 = vld [vmem:[#allocation5 + $0x1e38] sm:$0xff] }
 0x203   :  { %6798 = vmatpush3.bf16.msra.mxu0 %v6797_v56  ;;  %v6845_v24 = vpack.c.bf16 %v1731_v10, %v1730_v9  ;;  %vm8029_vm15 = vmand %vm344_vm8, %vm416_vm9  ;;  %v1786_v10 = vld [vmem:[#allocation5 + $0x1f20] sm:$0xff]  ;;  %v1792_v63 = vld [vmem:[#allocation5 + $0x1f50] sm:$0xff] }
 0x204   :  { %6800 = vmatprep.subr.bf16.mxu0 %v6799_v15  ;;  %v1749_v15 = vld [vmem:[#allocation5 + $0x1df8] sm:$0xff]  ;;  %vm8043_vm3 = vmand %vm8022_vm13, %vm563_vm14 }
 0x205   :  { %6830 = vmatpush3.bf16.msra.mxu1 %v6829_v19  ;;  %v6815_v19 = vpack.c.bf16 %v1717_v6, %v1716_v5  ;;  %vm632_vm4 = vmand %vm8029_vm15, %vm560_vm0  ;;  %v1755_v5 = vld [vmem:[#allocation5 + $0x1e28] sm:$0xff] }
 0x206   :  { %6832 = vmatprep.subr.bf16.mxu1 %v6831_v22  ;;  %v277_v22 = vcvt.s32.f32 %v205_v34  ;;  %v1803_v34 = vld [vmem:[#allocation5 + $0x1fa8] sm:$0xff] }
 0x207   :  { %6802 = vmatpush3.bf16.msra.mxu0 %v6801_v25  ;;  %v6891_v9 = vpack.c.bf16 %v1803_v34, %v1802_v33  ;;  %v1806_v25 = vld [vmem:[#allocation5 + $0x1fc0] sm:$0xff] }
 0x208   :  { %6804 = vmatprep.subr.bf16.mxu0 %v6803_v36  ;;  %v6847_v36 = vpack.c.bf16 %v1749_v15, %v1748_v14  ;;  %vm349_vm11 = vcmp.ne.f32.partialorder %v277_v22, 0.0  ;;  %vm421_vm12 = vcmp.ne.f32.partialorder %v277_v22, 144.0  ;;  %vm565_vm2 = vcmp.ne.f32.partialorder %v277_v22, 109.0  ;;  %v1756_v15 = vld [vmem:[#allocation5 + $0x1e30] sm:$0xff] }
 0x209   :  { %6834 = vmatpush3.bf16.msra.mxu1 %v6833_v40  ;;  %v6817_v40 = vpack.c.bf16 %v1701_v21, %v1700_v20  ;;  %vm8035_vm1 = vmand %vm349_vm11, %vm421_vm12  ;;  %v1775_v20 = vld [vmem:[#allocation5 + $0x1ec8] sm:$0xff]  ;;  %v1788_v22 = vld [vmem:[#allocation5 + $0x1f30] sm:$0xff] }
 0x20a   :  { %6836 = vmatprep.subr.bf16.mxu1 %v6835_v42  ;;  %vm637_vm5 = vmand %vm8035_vm1, %vm565_vm2  ;;  %v6899_v42 = vpack.c.bf16 %v1807_v26, %v1806_v25  ;;  %v1830_v25 = vld [vmem:[#allocation5 + $0x2080] sm:$0xff]  ;;  %v1831_v26 = vld [vmem:[#allocation5 + $0x2088] sm:$0xff] }
 0x20b   :  { %6806 = vmatpush3.bf16.msra.mxu0 %v6805_v48  ;;  %v1768_v48 = vld [vmem:[#allocation5 + $0x1e90] sm:$0xff] }
 0x20c   :  { %6808 = vmatprep.subr.bf16.mxu0 %v6807_v52  ;;  %v6871_v52 = vpack.c.bf16 %v1777_v27, %v1776_v41  ;;  %v1862_v41 = vld [vmem:[#allocation5 + $0x2180] sm:$0xff]  ;;  %v1863_v27 = vld [vmem:[#allocation5 + $0x2188] sm:$0xff] }
 0x20d   :  { %6838 = vmatpush3.bf16.msra.mxu1 %v6837_v59  ;;  %v5153_v35 = vpop.f32.mrb[14].mxu0  ;;  %v1800_v59 = vld [vmem:[#allocation5 + $0x1f90] sm:$0xff] }
 0x20e   :  { %v5154_v7 = vpop.f32.mrb[15].mxu0  ;;  %6840 = vmatprep.subr.bf16.mxu1 %v6839_v62  ;;  %v6855_v62 = vpack.c.bf16 %v1769_v49, %v1768_v48  ;;  %v6887_v54 = vpack.c.bf16 %v1801_v60, %v1800_v59  ;;  %v6869_v48 = vpack.c.bf16 %v1759_v38, %v1758_v37  ;;  %v1808_v49 = vld [vmem:[#allocation5 + $0x1fd0] sm:$0xff]  ;;  %v1778_v60 = vld [vmem:[#allocation5 + $0x1ee0] sm:$0xff]  ;;  %v1797_v38 = vld [vmem:[#allocation5 + $0x1f78] sm:$0xff] }
 0x20f   :  { %v5155_v12 = vadd.f32 %v5154_v7, %v5153_v35  ;;  %v5188_v56 = vpop.f32.mrb[14].mxu1  ;;  %6810 = vmatpush3.bf16.msra.mxu0 %v6809_v3  ;;  %v1770_v3 = vld [vmem:[#allocation5 + $0x1ea0] sm:$0xff]  ;;  %v1772_v7 = vld [vmem:[#allocation5 + $0x1eb0] sm:$0xff] }
 0x210   :  { %v5189_v18 = vpop.f32.mrb[15].mxu1  ;;  %6812 = vmatprep.subr.bf16.mxu0 %v6811_v31  ;;  %v1785_v31 = vld [vmem:[#allocation5 + $0x1f18] sm:$0xff]  ;;  %v6859_v35 = vpack.c.bf16 %v1771_v44, %v1770_v3  ;;  %v6873_v3 = vpack.c.bf16 %v1761_v57, %v1760_v53  ;;  %v1810_v44 = vld [vmem:[#allocation5 + $0x1fe0] sm:$0xff]  ;;  %v1796_v37 = vld [vmem:[#allocation5 + $0x1f70] sm:$0xff] }
 0x211   :  { %v2996_v16 = vadd.f32 %v5155_v12, %v7940_v39  ;;  %v5190_v23 = vadd.f32 %v5189_v18, %v5188_v56  ;;  %6842 = vmatpush3.bf16.msra.mxu1 %v6841_v4  ;;  %v1754_v4 = vld [vmem:[#allocation5 + $0x1e20] sm:$0xff]  ;;  %v6889_v6 = vpack.c.bf16 %v1785_v31, %v1784_v30  ;;  %v1804_v56 = vld [vmem:[#allocation5 + $0x1fb0] sm:$0xff]  ;;  %v6893_v18 = vpack.c.bf16 %v1787_v11, %v1786_v10  ;;  %v1847_v57 = vld [vmem:[#allocation5 + $0x2108] sm:$0xff] }
 0x212   :  { %6844 = vmatprep.subr.bf16.mxu1 %v6843_v8  ;;  %v1773_v8 = vld [vmem:[#allocation5 + $0x1eb8] sm:$0xff]  ;;  %v6861_v12 = vpack.c.bf16 %v1755_v5, %v1754_v4  ;;  %v6875_v30 = vpack.c.bf16 %v1779_v61, %v1778_v60  ;;  %v1762_v31 = vld [vmem:[#allocation5 + $0x1e60] sm:$0xff]  ;;  %v1780_v4 = vld [vmem:[#allocation5 + $0x1ef0] sm:$0xff] }
 0x213   :  { %v8009_v39 = vadd.f32 %v5190_v23, %v2996_v16  ;;  %6814 = vmatpush3.bf16.msra.mxu0 %v6813_v13  ;;  %v1805_v13 = vld [vmem:[#allocation5 + $0x1fb8] sm:$0xff]  ;;  %v6863_v14 = vpack.c.bf16 %v1773_v8, %v1772_v7  ;;  %v130_v23 = vunpack.c.0.s8 %v7993_v29  ;;  %v1794_v8 = vld [vmem:[#allocation5 + $0x1f60] sm:$0xff]  ;;  %v1843_v61 = vld [vmem:[#allocation5 + $0x20e8] sm:$0xff] }
 0x214   :  { %6816 = vmatprep.subr.bf16.mxu0 %v6815_v19  ;;  %v1774_v19 = vld [vmem:[#allocation5 + $0x1ec0] sm:$0xff]  ;;  %v6895_v21 = vpack.c.bf16 %v1805_v13, %v1804_v56  ;;  %v1789_v16 = vld [vmem:[#allocation5 + $0x1f38] sm:$0xff]  ;;  %v1812_v13 = vld [vmem:[#allocation5 + $0x1ff0] sm:$0xff] }
 0x215   :  { %6846 = vmatpush3.bf16.msra.mxu1 %v6845_v24  ;;  %v6865_v24 = vpack.c.bf16 %v1757_v17, %v1756_v15  ;;  %v202_v46 = vand.u32 255, %v130_v23  ;;  %v1781_v5 = vld [vmem:[#allocation5 + $0x1ef8] sm:$0xff]  ;;  %v1846_v53 = vld [vmem:[#allocation5 + $0x2100] sm:$0xff] }
 0x216   :  { %6848 = vmatprep.subr.bf16.mxu1 %v6847_v36  ;;  %v6867_v36 = vpack.c.bf16 %v1775_v20, %v1774_v19  ;;  %v1764_v19 = vld [vmem:[#allocation5 + $0x1e70] sm:$0xff]  ;;  %v1765_v20 = vld [vmem:[#allocation5 + $0x1e78] sm:$0xff] }
 0x217   :  { %6818 = vmatpush3.bf16.msra.mxu0 %v6817_v40  ;;  %v6897_v40 = vpack.c.bf16 %v1789_v16, %v1788_v22  ;;  %v274_v1 = vcvt.s32.f32 %v202_v46  ;;  %v1815_v46 = vld [vmem:[#allocation5 + $0x2008] sm:$0xff]  ;;  %v1865_v60 = vld [vmem:[#allocation5 + $0x2198] sm:$0xff] }
 0x218   :  { %6852 = vmatprep.subr.bf16.mxu0 %v6851_v43  ;;  %v1790_v43 = vld [vmem:[#allocation5 + $0x1f40] sm:$0xff] }
 0x219   :  { %6850 = vmatpush3.bf16.msra.mxu1 %v6849_v47  ;;  %v135_v47 = vunpack.c.1.s8 %v8062_v28  ;;  %v6901_v59 = vpack.c.bf16 %v1791_v45, %v1790_v43  ;;  %vm346_vm6 = vcmp.ne.f32.partialorder %v274_v1, 0.0  ;;  %vm418_vm7 = vcmp.ne.f32.partialorder %v274_v1, 144.0  ;;  %v1814_v45 = vld [vmem:[#allocation5 + $0x2000] sm:$0xff] }
 0x21a   :  { %4616 = vmatmul.mubr.msk.f32.vlgmr.msra.gmra.mrb[28].mxu0 %vm8014_vm10, %v7149_v55  ;;  %6884 = vmatprep.subr.bf16.mxu1 %v6883_v51  ;;  %v132_v51 = vunpack.c.2.s8 %v7993_v29  ;;  %v1811_v29 = vld [vmem:[#allocation5 + $0x1fe8] sm:$0xff]  ;;  %vm8072_vm8 = vmand %vm346_vm6, %vm418_vm7  ;;  %vm562_vm9 = vcmp.ne.f32.partialorder %v274_v1, 109.0  ;;  %v6915_v43 = vpack.c.bf16 %v1831_v26, %v1830_v25  ;;  %v8131_v26 = vld [vmem:[#allocation2 + $0x88] sm:$0xff] }
 0x21b   :  { %6854 = vmatpush3.bf16.msra.mxu0 %v6853_v58  ;;  %4619 = vmatprep.mubr.msk.f32.mxu0 %vm8043_vm3, %v7149_v55  ;;  %v137_v58 = vunpack.c.3.s8 %v8062_v28  ;;  %v6907_v7 = vpack.c.bf16 %v1811_v29, %v1810_v44  ;;  %vm8083_vm14 = vmand %vm8072_vm8, %vm562_vm9  ;;  %v1835_v44 = vld [vmem:[#allocation5 + $0x20a8] sm:$0xff] }
 0x21c   :  { %4618 = vmatmul.mubr.msk.f32.vlgmr.msra.gmra.mrb[28].mxu1 %vm632_vm4, %v7149_v55  ;;  %6856 = vmatprep.subr.bf16.mxu0 %v6855_v62  ;;  %v6903_v62 = vpack.c.bf16 %v1809_v50, %v1808_v49  ;;  %v1833_v49 = vld [vmem:[#allocation5 + $0x2098] sm:$0xff]  ;;  %v1871_v25 = vld [vmem:[#allocation5 + $0x21c8] sm:$0xff] }
 0x21d   :  { %6886 = vmatpush3.bf16.msra.mxu1 %v6885_v2  ;;  %4621 = vmatprep.mubr.msk.f32.mxu1 %vm637_vm5, %v7149_v55  ;;  %v207_v2 = vand.u32 255, %v135_v47  ;;  %v209_v33 = vand.u32 255, %v137_v58  ;;  %v6913_v47 = vpack.c.bf16 %v1797_v38, %v1796_v37  ;;  %v6917_v58 = vpack.c.bf16 %v1815_v46, %v1814_v45  ;;  %v1822_v37 = vld [vmem:[#allocation5 + $0x2040] sm:$0xff]  ;;  %v1823_v38 = vld [vmem:[#allocation5 + $0x2048] sm:$0xff]  ;;  %v1873_v50 = vld [vmem:[#allocation5 + $0x21d8] sm:$0xff] }
 0x21e   :  { %6888 = vmatprep.subr.bf16.mxu1 %v6887_v54  ;;  %v204_v54 = vand.u32 255, %v132_v51  ;;  %v6947_v51 = vpack.c.bf16 %v1863_v27, %v1862_v41  ;;  %v1840_v41 = vld [vmem:[#allocation5 + $0x20d0] sm:$0xff]  ;;  %v1841_v27 = vld [vmem:[#allocation5 + $0x20d8] sm:$0xff]  ;;  %v1855_v45 = vld [vmem:[#allocation5 + $0x2148] sm:$0xff] }
 0x21f   :  { %6858 = vmatpush3.bf16.msra.mxu0 %v6857_v32  ;;  %v1763_v32 = vld [vmem:[#allocation5 + $0x1e68] sm:$0xff]  ;;  %v8067_v10 = vcvt.s32.f32 %v207_v2  ;;  %v6949_v2 = vpack.c.bf16 %v1847_v57, %v1846_v53  ;;  %v1824_v53 = vld [vmem:[#allocation5 + $0x2050] sm:$0xff]  ;;  %v1825_v57 = vld [vmem:[#allocation5 + $0x2058] sm:$0xff] }
 0x220   :  { %6860 = vmatprep.subr.bf16.mxu0 %v6859_v35  ;;  %v6905_v35 = vpack.c.bf16 %v1793_v0, %v1792_v63  ;;  %v6877_v56 = vpack.c.bf16 %v1763_v32, %v1762_v31  ;;  %v276_v15 = vcvt.s32.f32 %v204_v54  ;;  %v1816_v63 = vld [vmem:[#allocation5 + $0x2010] sm:$0xff]  ;;  %v1817_v0 = vld [vmem:[#allocation5 + $0x2018] sm:$0xff]  ;;  %v1866_v32 = vld [vmem:[#allocation5 + $0x21a0] sm:$0xff] }
 0x221   :  { %6890 = vmatpush3.bf16.msra.mxu1 %v6889_v6  ;;  %vm351_vm10 = vcmp.ne.f32.partialorder %v8067_v10, 0.0  ;;  %vm423_vm11 = vcmp.ne.f32.partialorder %v8067_v10, 144.0  ;;  %vm567_vm2 = vcmp.ne.f32.partialorder %v8067_v10, 109.0  ;;  %v1848_v54 = vld [vmem:[#allocation5 + $0x2110] sm:$0xff]  ;;  %v6921_v31 = vpack.c.bf16 %v1817_v0, %v1816_v63  ;;  %v1851_v10 = vld [vmem:[#allocation5 + $0x2128] sm:$0xff]  ;;  %v1857_v0 = vld [vmem:[#allocation5 + $0x2158] sm:$0xff] }
 0x222   :  { %6892 = vmatprep.subr.bf16.mxu1 %v6891_v9  ;;  %v1795_v9 = vld [vmem:[#allocation5 + $0x1f68] sm:$0xff]  ;;  %vm348_vm12 = vcmp.ne.f32.partialorder %v276_v15, 0.0  ;;  %vm420_vm13 = vcmp.ne.f32.partialorder %v276_v15, 144.0  ;;  %vm8091_vm1 = vmand %vm351_vm10, %vm423_vm11  ;;  %vm564_vm4 = vcmp.ne.f32.partialorder %v276_v15, 109.0  ;;  %v1821_v15 = vld [vmem:[#allocation5 + $0x2038] sm:$0xff] }
 0x223   :  { %6862 = vmatpush3.bf16.msra.mxu0 %v6861_v12  ;;  %v6909_v23 = vpack.c.bf16 %v1795_v9, %v1794_v8  ;;  %vm8098_vm3 = vmand %vm348_vm12, %vm420_vm13  ;;  %v1850_v9 = vld [vmem:[#allocation5 + $0x2120] sm:$0xff]  ;;  %v1856_v63 = vld [vmem:[#allocation5 + $0x2150] sm:$0xff] }
 0x224   :  { %6864 = vmatprep.subr.bf16.mxu0 %v6863_v14  ;;  %v1813_v14 = vld [vmem:[#allocation5 + $0x1ff8] sm:$0xff]  ;;  %vm8112_vm7 = vmand %vm8091_vm1, %vm567_vm2 }
 0x225   :  { %6894 = vmatpush3.bf16.msra.mxu1 %v6893_v18  ;;  %v6879_v18 = vpack.c.bf16 %v1781_v5, %v1780_v4  ;;  %vm636_vm8 = vmand %vm8098_vm3, %vm564_vm4  ;;  %v1819_v4 = vld [vmem:[#allocation5 + $0x2028] sm:$0xff] }
 0x226   :  { %6896 = vmatprep.subr.bf16.mxu1 %v6895_v21  ;;  %v281_v21 = vcvt.s32.f32 %v209_v33  ;;  %v1867_v33 = vld [vmem:[#allocation5 + $0x21a8] sm:$0xff] }
 0x227   :  { %6866 = vmatpush3.bf16.msra.mxu0 %v6865_v24  ;;  %v6955_v8 = vpack.c.bf16 %v1867_v33, %v1866_v32  ;;  %v1870_v24 = vld [vmem:[#allocation5 + $0x21c0] sm:$0xff] }
 0x228   :  { %6868 = vmatprep.subr.bf16.mxu0 %v6867_v36  ;;  %v6911_v36 = vpack.c.bf16 %v1813_v14, %v1812_v13  ;;  %vm353_vm15 = vcmp.ne.f32.partialorder %v281_v21, 0.0  ;;  %vm425_vm0 = vcmp.ne.f32.partialorder %v281_v21, 144.0  ;;  %vm569_vm6 = vcmp.ne.f32.partialorder %v281_v21, 109.0  ;;  %v1820_v14 = vld [vmem:[#allocation5 + $0x2030] sm:$0xff] }
 0x229   :  { %6898 = vmatpush3.bf16.msra.mxu1 %v6897_v40  ;;  %v6881_v40 = vpack.c.bf16 %v1765_v20, %v1764_v19  ;;  %vm8104_vm5 = vmand %vm353_vm15, %vm425_vm0  ;;  %v1839_v19 = vld [vmem:[#allocation5 + $0x20c8] sm:$0xff]  ;;  %v1852_v21 = vld [vmem:[#allocation5 + $0x2130] sm:$0xff] }
 0x22a   :  { %6900 = vmatprep.subr.bf16.mxu1 %v6899_v42  ;;  %vm641_vm9 = vmand %vm8104_vm5, %vm569_vm6  ;;  %v6963_v42 = vpack.c.bf16 %v1871_v25, %v1870_v24  ;;  %v1894_v24 = vld [vmem:[#allocation5 + $0x2280] sm:$0xff]  ;;  %v1895_v25 = vld [vmem:[#allocation5 + $0x2288] sm:$0xff] }
 0x22b   :  { %6870 = vmatpush3.bf16.msra.mxu0 %v6869_v48  ;;  %v1832_v48 = vld [vmem:[#allocation5 + $0x2090] sm:$0xff] }
 0x22c   :  { %6872 = vmatprep.subr.bf16.mxu0 %v6871_v52  ;;  %v6935_v52 = vpack.c.bf16 %v1841_v27, %v1840_v41  ;;  %v1926_v41 = vld [vmem:[#allocation5 + $0x2380] sm:$0xff]  ;;  %v1927_v27 = vld [vmem:[#allocation5 + $0x2388] sm:$0xff] }
 0x22d   :  { %6902 = vmatpush3.bf16.msra.mxu1 %v6901_v59  ;;  %v5223_v34 = vpop.f32.mrb[16].mxu0  ;;  %v1864_v59 = vld [vmem:[#allocation5 + $0x2190] sm:$0xff] }
 0x22e   :  { %v5224_v6 = vpop.f32.mrb[17].mxu0  ;;  %6904 = vmatprep.subr.bf16.mxu1 %v6903_v62  ;;  %v6919_v62 = vpack.c.bf16 %v1833_v49, %v1832_v48  ;;  %v6951_v29 = vpack.c.bf16 %v1865_v60, %v1864_v59  ;;  %v6933_v48 = vpack.c.bf16 %v1823_v38, %v1822_v37  ;;  %v1872_v49 = vld [vmem:[#allocation5 + $0x21d0] sm:$0xff]  ;;  %v1842_v60 = vld [vmem:[#allocation5 + $0x20e0] sm:$0xff]  ;;  %v1861_v38 = vld [vmem:[#allocation5 + $0x2178] sm:$0xff] }
 0x22f   :  { %v5225_v11 = vadd.f32 %v5224_v6, %v5223_v34  ;;  %v5258_v12 = vpop.f32.mrb[16].mxu1  ;;  %6874 = vmatpush3.bf16.msra.mxu0 %v6873_v3  ;;  %v1834_v3 = vld [vmem:[#allocation5 + $0x20a0] sm:$0xff]  ;;  %v1836_v6 = vld [vmem:[#allocation5 + $0x20b0] sm:$0xff] }
 0x230   :  { %v5259_v17 = vpop.f32.mrb[17].mxu1  ;;  %6876 = vmatprep.subr.bf16.mxu0 %v6875_v30  ;;  %v1849_v30 = vld [vmem:[#allocation5 + $0x2118] sm:$0xff]  ;;  %v6923_v34 = vpack.c.bf16 %v1835_v44, %v1834_v3  ;;  %v6937_v3 = vpack.c.bf16 %v1825_v57, %v1824_v53  ;;  %v1874_v44 = vld [vmem:[#allocation5 + $0x21e0] sm:$0xff]  ;;  %v1860_v37 = vld [vmem:[#allocation5 + $0x2170] sm:$0xff] }
 0x231   :  { %v3136_v22 = vadd.f32 %v5225_v11, %v8009_v39  ;;  %v5260_v16 = vadd.f32 %v5259_v17, %v5258_v12  ;;  %6906 = vmatpush3.bf16.msra.mxu1 %v6905_v35  ;;  %v1818_v35 = vld [vmem:[#allocation5 + $0x2020] sm:$0xff]  ;;  %v6953_v5 = vpack.c.bf16 %v1849_v30, %v1848_v54  ;;  %v1868_v12 = vld [vmem:[#allocation5 + $0x21b0] sm:$0xff]  ;;  %v6957_v17 = vpack.c.bf16 %v1851_v10, %v1850_v9  ;;  %v1911_v57 = vld [vmem:[#allocation5 + $0x2308] sm:$0xff] }
 0x232   :  { %6908 = vmatprep.subr.bf16.mxu1 %v6907_v7  ;;  %v1837_v7 = vld [vmem:[#allocation5 + $0x20b8] sm:$0xff]  ;;  %v6925_v11 = vpack.c.bf16 %v1819_v4, %v1818_v35  ;;  %v6939_v54 = vpack.c.bf16 %v1843_v61, %v1842_v60  ;;  %v1826_v30 = vld [vmem:[#allocation5 + $0x2060] sm:$0xff]  ;;  %v1844_v35 = vld [vmem:[#allocation5 + $0x20f0] sm:$0xff] }
 0x233   :  { %v8078_v39 = vadd.f32 %v5260_v16, %v3136_v22  ;;  %6878 = vmatpush3.bf16.msra.mxu0 %v6877_v56  ;;  %v1869_v56 = vld [vmem:[#allocation5 + $0x21b8] sm:$0xff]  ;;  %v6927_v13 = vpack.c.bf16 %v1837_v7, %v1836_v6  ;;  %v134_v16 = vunpack.c.0.s8 %v8062_v28  ;;  %v1858_v7 = vld [vmem:[#allocation5 + $0x2160] sm:$0xff] }
 0x234   :  { %6880 = vmatprep.subr.bf16.mxu0 %v6879_v18  ;;  %v1838_v18 = vld [vmem:[#allocation5 + $0x20c0] sm:$0xff]  ;;  %v6959_v20 = vpack.c.bf16 %v1869_v56, %v1868_v12  ;;  %v1853_v22 = vld [vmem:[#allocation5 + $0x2138] sm:$0xff]  ;;  %v1876_v56 = vld [vmem:[#allocation5 + $0x21f0] sm:$0xff] }
 0x235   :  { %6910 = vmatpush3.bf16.msra.mxu1 %v6909_v23  ;;  %v6929_v23 = vpack.c.bf16 %v1821_v15, %v1820_v14  ;;  %v206_v46 = vand.u32 255, %v134_v16  ;;  %v1845_v4 = vld [vmem:[#allocation5 + $0x20f8] sm:$0xff]  ;;  %v1910_v53 = vld [vmem:[#allocation5 + $0x2300] sm:$0xff] }
 0x236   :  { %6912 = vmatprep.subr.bf16.mxu1 %v6911_v36  ;;  %v6931_v36 = vpack.c.bf16 %v1839_v19, %v1838_v18  ;;  %v1828_v18 = vld [vmem:[#allocation5 + $0x2070] sm:$0xff]  ;;  %v1829_v19 = vld [vmem:[#allocation5 + $0x2078] sm:$0xff] }
 0x237   :  { %6882 = vmatpush3.bf16.msra.mxu0 %v6881_v40  ;;  %v6961_v40 = vpack.c.bf16 %v1853_v22, %v1852_v21  ;;  %v278_v1 = vcvt.s32.f32 %v206_v46  ;;  %v1879_v46 = vld [vmem:[#allocation5 + $0x2208] sm:$0xff]  ;;  %v1929_v60 = vld [vmem:[#allocation5 + $0x2398] sm:$0xff] }
 0x238   :  { %6916 = vmatprep.subr.bf16.mxu0 %v6915_v43  ;;  %v1854_v43 = vld [vmem:[#allocation5 + $0x2140] sm:$0xff]  ;;  %v1921_v61 = vld [vmem:[#allocation5 + $0x2358] sm:$0xff] }
 0x239   :  { %6914 = vmatpush3.bf16.msra.mxu1 %v6913_v47  ;;  %v139_v47 = vunpack.c.1.s8 %v8131_v26  ;;  %v6965_v59 = vpack.c.bf16 %v1855_v45, %v1854_v43  ;;  %vm350_vm10 = vcmp.ne.f32.partialorder %v278_v1, 0.0  ;;  %vm422_vm11 = vcmp.ne.f32.partialorder %v278_v1, 144.0  ;;  %v1878_v45 = vld [vmem:[#allocation5 + $0x2200] sm:$0xff] }
 0x23a   :  { %4620 = vmatmul.mubr.msk.f32.vlgmr.msra.gmra.mrb[30].mxu0 %vm8083_vm14, %v7149_v55  ;;  %6948 = vmatprep.subr.bf16.mxu1 %v6947_v51  ;;  %v136_v51 = vunpack.c.2.s8 %v8062_v28  ;;  %v1875_v28 = vld [vmem:[#allocation5 + $0x21e8] sm:$0xff]  ;;  %vm8141_vm12 = vmand %vm350_vm10, %vm422_vm11  ;;  %vm566_vm13 = vcmp.ne.f32.partialorder %v278_v1, 109.0  ;;  %v6979_v43 = vpack.c.bf16 %v1895_v25, %v1894_v24  ;;  %v1886_v25 = vld [vmem:[#allocation5 + $0x2240] sm:$0xff] }
 0x23b   :  { %6918 = vmatpush3.bf16.msra.mxu0 %v6917_v58  ;;  %4623 = vmatprep.mubr.msk.f32.mxu0 %vm8112_vm7, %v7149_v55  ;;  %v141_v58 = vunpack.c.3.s8 %v8131_v26  ;;  %v6971_v6 = vpack.c.bf16 %v1875_v28, %v1874_v44  ;;  %vm8152_vm2 = vmand %vm8141_vm12, %vm566_vm13  ;;  %v1899_v44 = vld [vmem:[#allocation5 + $0x22a8] sm:$0xff] }
 0x23c   :  { %4622 = vmatmul.mubr.msk.f32.vlgmr.msra.gmra.mrb[30].mxu1 %vm636_vm8, %v7149_v55  ;;  %6920 = vmatprep.subr.bf16.mxu0 %v6919_v62  ;;  %v6967_v62 = vpack.c.bf16 %v1873_v50, %v1872_v49  ;;  %v1897_v49 = vld [vmem:[#allocation5 + $0x2298] sm:$0xff]  ;;  %v1888_v50 = vld [vmem:[#allocation5 + $0x2250] sm:$0xff] }
 0x23d   :  { %6950 = vmatpush3.bf16.msra.mxu1 %v6949_v2  ;;  %4625 = vmatprep.mubr.msk.f32.mxu1 %vm641_vm9, %v7149_v55  ;;  %v211_v2 = vand.u32 255, %v139_v47  ;;  %v213_v32 = vand.u32 255, %v141_v58  ;;  %v6977_v47 = vpack.c.bf16 %v1861_v38, %v1860_v37  ;;  %v6981_v58 = vpack.c.bf16 %v1879_v46, %v1878_v45  ;;  %v1904_v38 = vld [vmem:[#allocation5 + $0x22d0] sm:$0xff] }
 0x23e   :  { %6952 = vmatprep.subr.bf16.mxu1 %v6951_v29  ;;  %v208_v29 = vand.u32 255, %v136_v51  ;;  %v7011_v51 = vpack.c.bf16 %v1927_v27, %v1926_v41  ;;  %v138_v41 = vunpack.c.0.s8 %v8131_v26  ;;  %v1936_v46 = vld [vmem:[#allocation5 + $0x23d0] sm:$0xff] }
 0x23f   :  { %6922 = vmatpush3.bf16.msra.mxu0 %v6921_v31  ;;  %v1827_v31 = vld [vmem:[#allocation5 + $0x2068] sm:$0xff]  ;;  %v8136_v9 = vcvt.s32.f32 %v211_v2  ;;  %v7013_v2 = vpack.c.bf16 %v1911_v57, %v1910_v53  ;;  %v1906_v53 = vld [vmem:[#allocation5 + $0x22e0] sm:$0xff] }
 0x240   :  { %6924 = vmatprep.subr.bf16.mxu0 %v6923_v34  ;;  %v6969_v34 = vpack.c.bf16 %v1857_v0, %v1856_v63  ;;  %v6941_v12 = vpack.c.bf16 %v1827_v31, %v1826_v30  ;;  %v280_v14 = vcvt.s32.f32 %v208_v29  ;;  %v1880_v63 = vld [vmem:[#allocation5 + $0x2210] sm:$0xff]  ;;  %v1881_v0 = vld [vmem:[#allocation5 + $0x2218] sm:$0xff]  ;;  %v1930_v31 = vld [vmem:[#allocation5 + $0x23a0] sm:$0xff] }
 0x241   :  { %6954 = vmatpush3.bf16.msra.mxu1 %v6953_v5  ;;  %vm355_vm14 = vcmp.ne.f32.partialorder %v8136_v9, 0.0  ;;  %vm427_vm15 = vcmp.ne.f32.partialorder %v8136_v9, 144.0  ;;  %vm571_vm6 = vcmp.ne.f32.partialorder %v8136_v9, 109.0  ;;  %v1912_v29 = vld [vmem:[#allocation5 + $0x2310] sm:$0xff]  ;;  %v6985_v30 = vpack.c.bf16 %v1881_v0, %v1880_v63  ;;  %v1915_v9 = vld [vmem:[#allocation5 + $0x2328] sm:$0xff]  ;;  %v1938_v63 = vld [vmem:[#allocation5 + $0x23e0] sm:$0xff] }
 0x242   :  { %6956 = vmatprep.subr.bf16.mxu1 %v6955_v8  ;;  %v1859_v8 = vld [vmem:[#allocation5 + $0x2168] sm:$0xff]  ;;  %vm352_vm0 = vcmp.ne.f32.partialorder %v280_v14, 0.0  ;;  %vm424_vm1 = vcmp.ne.f32.partialorder %v280_v14, 144.0  ;;  %vm8160_vm5 = vmand %vm355_vm14, %vm427_vm15  ;;  %vm568_vm8 = vcmp.ne.f32.partialorder %v280_v14, 109.0  ;;  %v1885_v14 = vld [vmem:[#allocation5 + $0x2238] sm:$0xff] }
 0x243   :  { %6926 = vmatpush3.bf16.msra.mxu0 %v6925_v11  ;;  %v6973_v16 = vpack.c.bf16 %v1859_v8, %v1858_v7  ;;  %vm8167_vm7 = vmand %vm352_vm0, %vm424_vm1  ;;  %v1914_v8 = vld [vmem:[#allocation5 + $0x2320] sm:$0xff]  ;;  %v1907_v57 = vld [vmem:[#allocation5 + $0x22e8] sm:$0xff] }
 0x244   :  { %6928 = vmatprep.subr.bf16.mxu0 %v6927_v13  ;;  %v1877_v13 = vld [vmem:[#allocation5 + $0x21f8] sm:$0xff]  ;;  %vm8181_vm11 = vmand %vm8160_vm5, %vm571_vm6  ;;  %v1939_v0 = vld [vmem:[#allocation5 + $0x23e8] sm:$0xff] }
 0x245   :  { %6958 = vmatpush3.bf16.msra.mxu1 %v6957_v17  ;;  %v6943_v17 = vpack.c.bf16 %v1845_v4, %v1844_v35  ;;  %vm640_vm12 = vmand %vm8167_vm7, %vm568_vm8  ;;  %v1883_v35 = vld [vmem:[#allocation5 + $0x2228] sm:$0xff] }
 0x246   :  { %6960 = vmatprep.subr.bf16.mxu1 %v6959_v20  ;;  %v285_v20 = vcvt.s32.f32 %v213_v32  ;;  %v1931_v32 = vld [vmem:[#allocation5 + $0x23a8] sm:$0xff] }
 0x247   :  { %6930 = vmatpush3.bf16.msra.mxu0 %v6929_v23  ;;  %v7019_v7 = vpack.c.bf16 %v1931_v32, %v1930_v31  ;;  %v1935_v23 = vld [vmem:[#allocation5 + $0x23c8] sm:$0xff]  ;;  %v1909_v31 = vld [vmem:[#allocation5 + $0x22f8] sm:$0xff] }
 0x248   :  { %6932 = vmatprep.subr.bf16.mxu0 %v6931_v36  ;;  %v6975_v36 = vpack.c.bf16 %v1877_v13, %v1876_v56  ;;  %vm357_vm3 = vcmp.ne.f32.partialorder %v285_v20, 0.0  ;;  %vm429_vm4 = vcmp.ne.f32.partialorder %v285_v20, 144.0  ;;  %vm573_vm10 = vcmp.ne.f32.partialorder %v285_v20, 109.0  ;;  %v1884_v13 = vld [vmem:[#allocation5 + $0x2230] sm:$0xff] }
 0x249   :  { %6962 = vmatpush3.bf16.msra.mxu1 %v6961_v40  ;;  %v6945_v40 = vpack.c.bf16 %v1829_v19, %v1828_v18  ;;  %vm8173_vm9 = vmand %vm357_vm3, %vm429_vm4  ;;  %v1903_v18 = vld [vmem:[#allocation5 + $0x22c8] sm:$0xff]  ;;  %v1916_v20 = vld [vmem:[#allocation5 + $0x2330] sm:$0xff] }
 0x24a   :  { %6964 = vmatprep.subr.bf16.mxu1 %v6963_v42  ;;  %vm645_vm13 = vmand %vm8173_vm9, %vm573_vm10  ;;  %v1918_v42 = vld [vmem:[#allocation5 + $0x2340] sm:$0xff] }
 0x24b   :  { %6934 = vmatpush3.bf16.msra.mxu0 %v6933_v48  ;;  %v1896_v48 = vld [vmem:[#allocation5 + $0x2290] sm:$0xff] }
 0x24c   :  { %6936 = vmatprep.subr.bf16.mxu0 %v6935_v52 }
 0x24d   :  { %6966 = vmatpush3.bf16.msra.mxu1 %v6965_v59  ;;  %v5293_v33 = vpop.f32.mrb[18].mxu0  ;;  %v1928_v59 = vld [vmem:[#allocation5 + $0x2390] sm:$0xff] }
 0x24e   :  { %v5294_v5 = vpop.f32.mrb[19].mxu0  ;;  %6968 = vmatprep.subr.bf16.mxu1 %v6967_v62  ;;  %v6983_v62 = vpack.c.bf16 %v1897_v49, %v1896_v48  ;;  %v7015_v28 = vpack.c.bf16 %v1929_v60, %v1928_v59  ;;  %v140_v48 = vunpack.c.2.s8 %v8131_v26  ;;  %v1920_v60 = vld [vmem:[#allocation5 + $0x2350] sm:$0xff]  ;;  %v7003_v26 = vpack.c.bf16 %v1907_v57, %v1906_v53 }
 0x24f   :  { %v5295_v10 = vadd.f32 %v5294_v5, %v5293_v33  ;;  %v5328_v11 = vpop.f32.mrb[18].mxu1  ;;  %6938 = vmatpush3.bf16.msra.mxu0 %v6937_v3  ;;  %v1898_v3 = vld [vmem:[#allocation5 + $0x22a0] sm:$0xff]  ;;  %v1900_v5 = vld [vmem:[#allocation5 + $0x22b0] sm:$0xff] }
 0x250   :  { %v5329_v15 = vpop.f32.mrb[19].mxu1  ;;  %6940 = vmatprep.subr.bf16.mxu0 %v6939_v54  ;;  %v1913_v54 = vld [vmem:[#allocation5 + $0x2318] sm:$0xff]  ;;  %v6987_v33 = vpack.c.bf16 %v1899_v44, %v1898_v3  ;;  %v212_v1 = vand.u32 255, %v140_v48  ;;  %v1891_v3 = vld [vmem:[#allocation5 + $0x2268] sm:$0xff]  ;;  %v1922_v44 = vld [vmem:[#allocation5 + $0x2360] sm:$0xff] }
 0x251   :  { %v3276_v21 = vadd.f32 %v5295_v10, %v8078_v39  ;;  %v5330_v22 = vadd.f32 %v5329_v15, %v5328_v11  ;;  %6970 = vmatpush3.bf16.msra.mxu1 %v6969_v34  ;;  %v1882_v34 = vld [vmem:[#allocation5 + $0x2220] sm:$0xff]  ;;  %v7017_v4 = vpack.c.bf16 %v1913_v54, %v1912_v29  ;;  %v1932_v11 = vld [vmem:[#allocation5 + $0x23b0] sm:$0xff]  ;;  %v7021_v15 = vpack.c.bf16 %v1915_v9, %v1914_v8  ;;  %v1923_v54 = vld [vmem:[#allocation5 + $0x2368] sm:$0xff] }
 0x252   :  { %6972 = vmatprep.subr.bf16.mxu1 %v6971_v6  ;;  %v1901_v6 = vld [vmem:[#allocation5 + $0x22b8] sm:$0xff]  ;;  %v6989_v10 = vpack.c.bf16 %v1883_v35, %v1882_v34  ;;  %v7033_v29 = vpack.c.bf16 %v1921_v61, %v1920_v60  ;;  %v7035_v34 = vpack.c.bf16 %v1939_v0, %v1938_v63  ;;  %v284_v8 = vcvt.s32.f32 %v212_v1 }
 0x253   :  { %v8147_v39 = vadd.f32 %v5330_v22, %v3276_v21  ;;  %6942 = vmatpush3.bf16.msra.mxu0 %v6941_v12  ;;  %v1933_v12 = vld [vmem:[#allocation5 + $0x23b8] sm:$0xff]  ;;  %v6991_v56 = vpack.c.bf16 %v1901_v6, %v1900_v5  ;;  %v6993_v22 = vpack.c.bf16 %v1885_v14, %v1884_v13  ;;  %v1940_v6 = vld [vmem:[#allocation5 + $0x23f0] sm:$0xff] }
 0x254   :  { %6944 = vmatprep.subr.bf16.mxu0 %v6943_v17  ;;  %v1902_v17 = vld [vmem:[#allocation5 + $0x22c0] sm:$0xff]  ;;  %v7023_v19 = vpack.c.bf16 %v1933_v12, %v1932_v11  ;;  %v1917_v21 = vld [vmem:[#allocation5 + $0x2338] sm:$0xff]  ;;  %v1892_v12 = vld [vmem:[#allocation5 + $0x2270] sm:$0xff]  ;;  %vm356_vm0 = vcmp.ne.f32.partialorder %v284_v8, 0.0  ;;  %vm428_vm1 = vcmp.ne.f32.partialorder %v284_v8, 144.0  ;;  %vm572_vm5 = vcmp.ne.f32.partialorder %v284_v8, 109.0 }
 0x255   :  { %6974 = vmatpush3.bf16.msra.mxu1 %v6973_v16  ;;  %v1934_v16 = vld [vmem:[#allocation5 + $0x23c0] sm:$0xff]  ;;  %v6995_v24 = vpack.c.bf16 %v1903_v18, %v1902_v17  ;;  %v7025_v37 = vpack.c.bf16 %v1917_v21, %v1916_v20  ;;  %v1924_v17 = vld [vmem:[#allocation5 + $0x2370] sm:$0xff]  ;;  %v1925_v18 = vld [vmem:[#allocation5 + $0x2378] sm:$0xff] }
 0x256   :  { %6976 = vmatprep.subr.bf16.mxu1 %v6975_v36  ;;  %v1887_v36 = vld [vmem:[#allocation5 + $0x2248] sm:$0xff]  ;;  %v7027_v27 = vpack.c.bf16 %v1935_v23, %v1934_v16  ;;  %v7041_v21 = vpack.c.bf16 %v1925_v18, %v1924_v17  ;;  %vm500_vm4 = vmand %vm356_vm0, %vm428_vm1 }
 0x257   :  { %6946 = vmatpush3.bf16.msra.mxu0 %v6945_v40  ;;  %v1905_v40 = vld [vmem:[#allocation5 + $0x22d8] sm:$0xff]  ;;  %v6997_v45 = vpack.c.bf16 %v1887_v36, %v1886_v25  ;;  %vm644_vm7 = vmand %vm500_vm4, %vm572_vm5 }
 0x258   :  { %6980 = vmatprep.subr.bf16.mxu0 %v6979_v43  ;;  %v1919_v43 = vld [vmem:[#allocation5 + $0x2348] sm:$0xff]  ;;  %v6999_v49 = vpack.c.bf16 %v1905_v40, %v1904_v38 }
 0x259   :  { %6978 = vmatpush3.bf16.msra.mxu1 %v6977_v47  ;;  %v1937_v47 = vld [vmem:[#allocation5 + $0x23d8] sm:$0xff]  ;;  %v7029_v52 = vpack.c.bf16 %v1919_v43, %v1918_v42 }
 0x25a   :  { %4624 = vmatmul.mubr.msk.f32.vlgmr.msra.gmra.mrb[32].mxu0 %vm8152_vm2, %v7149_v55  ;;  %7012 = vmatprep.subr.bf16.mxu1 %v7011_v51  ;;  %v1889_v51 = vld [vmem:[#allocation5 + $0x2258] sm:$0xff]  ;;  %v7031_v59 = vpack.c.bf16 %v1937_v47, %v1936_v46 }
 0x25b   :  { %6982 = vmatpush3.bf16.msra.mxu0 %v6981_v58  ;;  %4627 = vmatprep.mubr.msk.f32.mxu0 %vm8181_vm11, %v7149_v55  ;;  %v210_v58 = vand.u32 255, %v138_v41 }
 0x25c   :  { %4626 = vmatmul.mubr.msk.f32.vlgmr.msra.gmra.mrb[32].mxu1 %vm640_vm12, %v7149_v55  ;;  %6984 = vmatprep.subr.bf16.mxu0 %v6983_v62  ;;  %v7001_v62 = vpack.c.bf16 %v1889_v51, %v1888_v50 }
 0x25d   :  { %7014 = vmatpush3.bf16.msra.mxu1 %v7013_v2  ;;  %4629 = vmatprep.mubr.msk.f32.mxu1 %vm645_vm13, %v7149_v55  ;;  %v1890_v2 = vld [vmem:[#allocation5 + $0x2260] sm:$0xff]  ;;  %v282_v32 = vcvt.s32.f32 %v210_v58 }
 0x25e   :  { %7016 = vmatprep.subr.bf16.mxu1 %v7015_v28  ;;  %v7005_v5 = vpack.c.bf16 %v1891_v3, %v1890_v2 }
 0x25f   :  { %6986 = vmatpush3.bf16.msra.mxu0 %v6985_v30  ;;  %v1908_v30 = vld [vmem:[#allocation5 + $0x22f0] sm:$0xff]  ;;  %vm354_vm14 = vcmp.ne.f32.partialorder %v282_v32, 0.0  ;;  %vm426_vm15 = vcmp.ne.f32.partialorder %v282_v32, 144.0  ;;  %vm570_vm3 = vcmp.ne.f32.partialorder %v282_v32, 109.0 }
 0x260   :  { %6988 = vmatprep.subr.bf16.mxu0 %v6987_v33  ;;  %v7007_v11 = vpack.c.bf16 %v1909_v31, %v1908_v30  ;;  %vm498_vm2 = vmand %vm354_vm14, %vm426_vm15 }
 0x261   :  { %7018 = vmatpush3.bf16.msra.mxu1 %v7017_v4  ;;  %vm642_vm6 = vmand %vm498_vm2, %vm570_vm3 }
 0x262   :  { %7020 = vmatprep.subr.bf16.mxu1 %v7019_v7  ;;  %v1941_v7 = vld [vmem:[#allocation5 + $0x23f8] sm:$0xff] }
 0x263   :  { %6990 = vmatpush3.bf16.msra.mxu0 %v6989_v10  ;;  %v7037_v10 = vpack.c.bf16 %v1923_v54, %v1922_v44 }
 0x264   :  { %6992 = vmatprep.subr.bf16.mxu0 %v6991_v56  ;;  %v1893_v56 = vld [vmem:[#allocation5 + $0x2278] sm:$0xff] }
 0x265   :  { %7022 = vmatpush3.bf16.msra.mxu1 %v7021_v15  ;;  %v7039_v15 = vpack.c.bf16 %v1941_v7, %v1940_v6  ;;  %v7009_v20 = vpack.c.bf16 %v1893_v56, %v1892_v12 }
 0x266   :  { %7024 = vmatprep.subr.bf16.mxu1 %v7023_v19 }
 0x267   :  { %6994 = vmatpush3.bf16.msra.mxu0 %v6993_v22 }
 0x268   :  { %6996 = vmatprep.subr.bf16.mxu0 %v6995_v24 }
 0x269   :  { %7026 = vmatpush3.bf16.msra.mxu1 %v7025_v37 }
 0x26a   :  { %7028 = vmatprep.subr.bf16.mxu1 %v7027_v27 }
 0x26b   :  { %6998 = vmatpush3.bf16.msra.mxu0 %v6997_v45 }
 0x26c   :  { %7000 = vmatprep.subr.bf16.mxu0 %v6999_v49 }
 0x26d   :  { %7030 = vmatpush3.bf16.msra.mxu1 %v7029_v52  ;;  %v5363_v28 = vpop.f32.mrb[20].mxu0 }
 0x26e   :  { %v5364_v33 = vpop.f32.mrb[21].mxu0  ;;  %7032 = vmatprep.subr.bf16.mxu1 %v7031_v59 }
 0x26f   :  { %v5365_v35 = vadd.f32 %v5364_v33, %v5363_v28  ;;  %v5398_v4 = vpop.f32.mrb[20].mxu1  ;;  %7002 = vmatpush3.bf16.msra.mxu0 %v7001_v62 }
 0x270   :  { %v5399_v9 = vpop.f32.mrb[21].mxu1  ;;  %7004 = vmatprep.subr.bf16.mxu0 %v7003_v26 }
 0x271   :  { %v3416_v13 = vadd.f32 %v5365_v35, %v8147_v39  ;;  %v5400_v14 = vadd.f32 %v5399_v9, %v5398_v4  ;;  %7034 = vmatpush3.bf16.msra.mxu1 %v7033_v29 }
 0x272   :  { %7036 = vmatprep.subr.bf16.mxu1 %v7035_v34 }
 0x273   :  { %v3486_v19 = vadd.f32 %v5400_v14, %v3416_v13  ;;  %7006 = vmatpush3.bf16.msra.mxu0 %v7005_v5 }
 0x274   :  { %7008 = vmatprep.subr.bf16.mxu0 %v7007_v11 }
 0x275   :  { %7038 = vmatpush3.bf16.msra.mxu1 %v7037_v10 }
 0x276   :  { %7040 = vmatprep.subr.bf16.mxu1 %v7039_v15 }
 0x277   :  { %7010 = vmatpush3.bf16.msra.mxu0 %v7009_v20 }
 0x279   :  { %7042 = vmatpush3.bf16.msra.mxu1 %v7041_v21 }
 0x27a   :  { %4628 = vmatmul.mubr.msk.f32.vlgmr.msra.gmra.mrb[34].mxu0 %vm642_vm6, %v7149_v55 }
 0x27c   :  { %4630 = vmatmul.mubr.msk.f32.vlgmr.msra.gmra.mrb[34].mxu1 %vm644_vm7, %v7149_v55 }
 0x28d   :  { %v5433_v39 = vpop.f32.mrb[22].mxu0 }
 0x28e   :  { %v5434_v22 = vpop.f32.mrb[23].mxu0 }
 0x28f   :  { %v5435_v16 = vadd.f32 %v5434_v22, %v5433_v39  ;;  %v5468_v23 = vpop.f32.mrb[22].mxu1 }
 0x290   :  { %v5469_v24 = vpop.f32.mrb[23].mxu1 }
 0x291   :  { %v3556_v25 = vadd.f32 %v5435_v16, %v3486_v19  ;;  %v5470_v36 = vadd.f32 %v5469_v24, %v5468_v23 }
 0x293   :  { %v3626_v37 = vadd.f32 %v5470_v36, %v3556_v25 }
 0x2ad   :  { %v5503_v38 = vpop.f32.mrb[24].mxu0 }
 0x2ae   :  { %v5504_v40 = vpop.f32.mrb[25].mxu0 }
 0x2af   :  { %v5505_v41 = vadd.f32 %v5504_v40, %v5503_v38  ;;  %v5538_v27 = vpop.f32.mrb[24].mxu1 }
 0x2b0   :  { %v5539_v42 = vpop.f32.mrb[25].mxu1 }
 0x2b1   :  { %v3696_v43 = vadd.f32 %v5505_v41, %v3626_v37  ;;  %v5540_v45 = vadd.f32 %v5539_v42, %v5538_v27 }
 0x2b3   :  { %v3766_v46 = vadd.f32 %v5540_v45, %v3696_v43 }
 0x2cd   :  { %v5573_v47 = vpop.f32.mrb[26].mxu0 }
 0x2ce   :  { %v5574_v48 = vpop.f32.mrb[27].mxu0 }
 0x2cf   :  { %v5575_v49 = vadd.f32 %v5574_v48, %v5573_v47  ;;  %v5608_v55 = vpop.f32.mrb[26].mxu1 }
 0x2d0   :  { %v5609_v50 = vpop.f32.mrb[27].mxu1 }
 0x2d1   :  { %v3836_v51 = vadd.f32 %v5575_v49, %v3766_v46  ;;  %v5610_v52 = vadd.f32 %v5609_v50, %v5608_v55 }
 0x2d3   :  { %v3906_v53 = vadd.f32 %v5610_v52, %v3836_v51 }
 0x2ed   :  { %v5643_v57 = vpop.f32.mrb[28].mxu0 }
 0x2ee   :  { %v5644_v58 = vpop.f32.mrb[29].mxu0 }
 0x2ef   :  { %v5645_v59 = vadd.f32 %v5644_v58, %v5643_v57  ;;  %v5678_v60 = vpop.f32.mrb[28].mxu1 }
 0x2f0   :  { %v5679_v61 = vpop.f32.mrb[29].mxu1 }
 0x2f1   :  { %v3976_v62 = vadd.f32 %v5645_v59, %v3906_v53  ;;  %v5680_v63 = vadd.f32 %v5679_v61, %v5678_v60 }
 0x2f3   :  { %v4046_v0 = vadd.f32 %v5680_v63, %v3976_v62 }
 0x30d   :  { %v5713_v1 = vpop.f32.mrb[30].mxu0 }
 0x30e   :  { %v5714_v26 = vpop.f32.mrb[31].mxu0 }
 0x30f   :  { %v5715_v2 = vadd.f32 %v5714_v26, %v5713_v1  ;;  %v5748_v3 = vpop.f32.mrb[30].mxu1 }
 0x310   :  { %v5749_v44 = vpop.f32.mrb[31].mxu1 }
 0x311   :  { %v4116_v28 = vadd.f32 %v5715_v2, %v4046_v0  ;;  %v5750_v29 = vadd.f32 %v5749_v44, %v5748_v3 }
 0x313   :  { %v4186_v54 = vadd.f32 %v5750_v29, %v4116_v28 }
 0x32d   :  { %v5783_v30 = vpop.f32.mrb[32].mxu0 }
 0x32e   :  { %v5784_v31 = vpop.f32.mrb[33].mxu0 }
 0x32f   :  { %v5785_v32 = vadd.f32 %v5784_v31, %v5783_v30  ;;  %v5818_v33 = vpop.f32.mrb[32].mxu1 }
 0x330   :  { %v5819_v34 = vpop.f32.mrb[33].mxu1 }
 0x331   :  { %v4256_v35 = vadd.f32 %v5785_v32, %v4186_v54  ;;  %v5820_v4 = vadd.f32 %v5819_v34, %v5818_v33 }
 0x333   :  { %v4326_v5 = vadd.f32 %v5820_v4, %v4256_v35 }
 0x34d   :  { %v5853_v6 = vpop.f32.mrb[34].mxu0 }
 0x34e   :  { %v5854_v7 = vpop.f32.mrb[35].mxu0 }
 0x34f   :  { %v5855_v8 = vadd.f32 %v5854_v7, %v5853_v6  ;;  %v5888_v9 = vpop.f32.mrb[34].mxu1 }
 0x350   :  { %v5889_v10 = vpop.f32.mrb[35].mxu1 }
 0x351   :  { %v4396_v11 = vadd.f32 %v5855_v8, %v4326_v5  ;;  %v5890_v12 = vadd.f32 %v5889_v10, %v5888_v9 }
 0x353   :  { %v4466_v56 = vadd.f32 %v5890_v12, %v4396_v11 }
 0x355   :  { %4469 = vst [vmem:[#allocation8] sm:$0xff] %v4466_v56 }
 0x356   :  { %7127 = shalt.err (!%p7124_p0)
}
 0x357   :  { %s7128_s26 = scalar_lea.hbm %s8219_s3, 128 }
 0x358   :  { %p7129_p1 = scmp.ne.s32.totalorder %s8219_s3, %s7128_s26  ;;  %p7132_p2 = scmp.lt.u32.totalorder %s7128_s26, %s8219_s3 }
 0x35a   :  { %p7134_p3 = pnand %p7132_p2, %p7129_p1 }
 0x35c   :  { %7137 = shalt.err (!%p7134_p3)
}
 0x35d   :  { %4479 = dma.vmem_to_hbm [thread:$0]  %s4477_s22, 128, %s8219_s3, [#allocation4]  }
 0x35e   :  { %7142 = dma.done.wait [#allocation4], 128  }
 0x35f   :  { %7143 = vsyncadd [#allocation4], 4294967168 }
 0x360   :  { %4483 = vsyncpa [#allocation3], 1 }
 0x361   :  { %4484 = vsyncpa [#allocation6], 1 }
 0x362   :  { %4485 = vsyncpa [#allocation4], 1 }

</bundles_post_ra>
